<compile_context>
chip_gen: v7x
topology: tpu7x:2x2x1
jax: 0.10.0
libtpu: 0.0.40
codegen_flags: <defaults>
</compile_context>

<pallas_src>
import functools
import math

import jax
import jax.numpy as jnp
from jax import lax
from jax.experimental import pallas as pl
from jax.experimental.pallas import tpu as pltpu


def _round_up(x, m):
    return ((x + m - 1) // m) * m


@functools.lru_cache(maxsize=None)
def _vmem_limit_bytes():
    """Generation-dependent scoped-VMEM limit with headroom for compiler scratch."""
    cap = None
    try:
        info = pltpu.get_tpu_info()
        cap = getattr(info, "vmem_capacity_bytes", None)
    except Exception:
        cap = None
    if not cap:
        cap = 64 * 1024 * 1024          # conservative fallback (= v7x physical)
    return int(min(cap * 3 // 4, 100 * 1024 * 1024))


# ---------------------------------------------------------------------------
# Row-tiled linear kernel:  y[M, Nout] = x[M, K] @ w[K, Nout] + b[1, Nout]
# ---------------------------------------------------------------------------
def _linear_kernel(x_ref, w_ref, b_ref, o_ref):
    acc = jnp.dot(x_ref[...], w_ref[...], preferred_element_type=jnp.float32)
    acc = acc + b_ref[...]                 # bias added once, on the f32 accumulator
    o_ref[...] = acc.astype(o_ref.dtype)


def linear_pallas(x2, w, b, *, tm=256, out_dtype=None):
    """x2: (M, K) @ w: (K, Nout) + b: (Nout,) -> (M, Nout).

    Rows tiled with grid = cdiv(M, tm) (ragged last block handled by Pallas,
    no activation padding / extra HBM round trip).  Weight and bias use
    constant index maps (resident in VMEM) and are single-buffered when the
    installed Pallas supports pl.Buffered(1).
    """
    M, K = x2.shape
    _, Nout = w.shape
    out_dtype = jnp.dtype(out_dtype or x2.dtype)
    tm = max(8, min(tm, _round_up(M, 8)))
    grid = (pl.cdiv(M, tm),)
    b2 = b.reshape(1, Nout).astype(jnp.float32)

    cost = pl.CostEstimate(
        flops=2 * M * K * Nout,
        transcendentals=0,
        bytes_accessed=(M * K * x2.dtype.itemsize
                        + K * Nout * w.dtype.itemsize
                        + Nout * 4
                        + M * Nout * out_dtype.itemsize),
    )

    # TODO(synk): for very large Nout on v7x (weight > ~0.5 * VMEM budget), add an
    # Nout tile axis (grid (Nout//tn, M//tm), weight block (K, tn)) instead of a
    # fully resident weight.

    def build(single_buffer_resident):
        resident_kw = {}
        if single_buffer_resident:
            # Constant-index blocks don't need double buffering; halves weight VMEM.
            resident_kw = dict(pipeline_mode=pl.Buffered(buffer_count=1))
        in_specs = [
            pl.BlockSpec((tm, K), lambda i: (i, 0)),               # activation row tile
            pl.BlockSpec((K, Nout), lambda i: (0, 0), **resident_kw),   # resident weight
            pl.BlockSpec((1, Nout), lambda i: (0, 0), **resident_kw),   # resident bias
        ]
        return pl.pallas_call(
            _linear_kernel,
            out_shape=jax.ShapeDtypeStruct((M, Nout), out_dtype),
            grid_spec=pltpu.PrefetchScalarGridSpec(
                num_scalar_prefetch=0,
                grid=grid,
                in_specs=in_specs,
                out_specs=pl.BlockSpec((tm, Nout), lambda i: (i, 0)),
            ),
            compiler_params=pltpu.CompilerParams(
                dimension_semantics=("parallel",),
                vmem_limit_bytes=_vmem_limit_bytes()),
            cost_estimate=cost,
        )

    try:
        return build(True)(x2, w, b2)
    except Exception:
        # Fallback if this Pallas build rejects single-buffered resident blocks.
        return build(False)(x2, w, b2)


# ---------------------------------------------------------------------------
# Attention core: one (batch, head-group) per grid step, reading q/k/v lane
# slabs straight out of the (B, N, 3, D) qkv view and writing straight into
# the (B, N, D) context buffer (no transposes through HBM).
# ---------------------------------------------------------------------------
def _heads_per_step(num_heads, head_dim):
    """Smallest head group whose lane width is a multiple of 128 (else all heads)."""
    for hp in range(1, num_heads + 1):
        if num_heads % hp == 0 and (hp * head_dim) % 128 == 0:
            return hp
    return num_heads


def _attention_kernel(*refs, scale, heads, dh, mxu_dtype, with_rpb, with_mask):
    i = 0
    rpb_ref = mask_ref = None
    if with_rpb:
        rpb_ref = refs[i]; i += 1          # (heads, N, N) f32
    if with_mask:
        mask_ref = refs[i]; i += 1         # (N, N) f32
    q_ref, k_ref, v_ref, o_ref = refs[i:i + 4]   # each (N, heads*dh)

    if with_mask:
        mbias = (-1e10) * mask_ref[...]    # hoisted out of the per-head loop

    for h in range(heads):                 # static unroll; heads per step is small
        lo, hi = h * dh, (h + 1) * dh
        # Scale folded into q (N*dh ops, not N*N); MXU fed in mxu_dtype, f32 acc.
        q = (q_ref[:, lo:hi].astype(jnp.float32) * scale).astype(mxu_dtype)
        k = k_ref[:, lo:hi].astype(mxu_dtype)
        s = lax.dot_general(q, k, (((1,), (1,)), ((), ())),
                            preferred_element_type=jnp.float32)      # (N, N) f32
        if with_rpb:
            s = s + rpb_ref[h]
        if with_mask:
            s = s + mbias
        # f32 softmax with deferred normalization (EUP reciprocal, approx).
        # TODO(synk): optional bf16 exp on v6e/v7x; kept f32 for cross-gen accuracy.
        m = jnp.max(s, axis=-1, keepdims=True)
        e = jnp.exp(s - m)
        l = jnp.sum(e, axis=-1, keepdims=True)
        # TODO(synk): attn_drop (p=0.0) is identity at inference; no dropout here.
        o = jnp.dot(e.astype(mxu_dtype), v_ref[:, lo:hi].astype(mxu_dtype),
                    preferred_element_type=jnp.float32)
        o = o * pl.reciprocal(l, approx=True)
        o_ref[:, lo:hi] = o.astype(o_ref.dtype)


def attention_core_pallas(qkv3, *, num_heads, head_dim, scale,
                          rel_pos_bias=None, attn_mask=None,
                          mxu_dtype=jnp.bfloat16, out_dtype=None):
    """qkv3: (B, N, 3, D) metadata view of the QKV projection output.

    rel_pos_bias: optional f32 (1|B, H, N, N); attn_mask: optional f32 (1|B, 1, N, N).
    Returns context (B, N, D) with heads already merged along the lane axis.
    """
    B, N, _, D = qkv3.shape
    H, dh = num_heads, head_dim
    hp = _heads_per_step(H, dh)
    lane = hp * dh
    out_dtype = jnp.dtype(out_dtype or qkv3.dtype)
    with_rpb = rel_pos_bias is not None
    with_mask = attn_mask is not None

    in_specs, operands = [], []
    if with_rpb:
        rpb_batched = rel_pos_bias.shape[0] != 1
        rpb_map = (lambda b, h: (b, h, 0, 0)) if rpb_batched else (lambda b, h: (0, h, 0, 0))
        in_specs.append(pl.BlockSpec((None, hp, N, N), rpb_map))
        operands.append(rel_pos_bias)
    if with_mask:
        mask_batched = attn_mask.shape[0] != 1
        mask_map = (lambda b, h: (b, 0, 0, 0)) if mask_batched else (lambda b, h: (0, 0, 0, 0))
        in_specs.append(pl.BlockSpec((None, None, N, N), mask_map))
        operands.append(attn_mask)

    def _qkv_index_map(j):
        def imap(b, h):
            return (b, 0, j, h)      # lane-block h selects heads [h*hp, (h+1)*hp)
        return imap

    for j in range(3):
        in_specs.append(pl.BlockSpec((None, N, None, lane), _qkv_index_map(j)))
        operands.append(qkv3)

    isz = qkv3.dtype.itemsize
    cost = pl.CostEstimate(
        flops=B * H * (4 * N * N * dh + 6 * N * N),
        transcendentals=B * H * N * N,
        bytes_accessed=(4 * B * N * D * isz
                        + (H * N * N * 4 if with_rpb else 0)
                        + (B * N * N * 4 if with_mask else 0)),
    )

    kernel = functools.partial(_attention_kernel, scale=scale, heads=hp, dh=dh,
                               mxu_dtype=mxu_dtype, with_rpb=with_rpb,
                               with_mask=with_mask)

    # TODO(synk): for N >~ 1.5-2K on v7x, switch to a flash-style KV-tiled grid
    # with online-softmax scratch instead of the full NxN score block.
    return pl.pallas_call(
        kernel,
        out_shape=jax.ShapeDtypeStruct((B, N, D), out_dtype),
        grid_spec=pltpu.PrefetchScalarGridSpec(
            num_scalar_prefetch=0,
            grid=(B, H // hp),
            in_specs=in_specs,
            out_specs=pl.BlockSpec((None, N, lane), lambda b, h: (b, 0, h)),
        ),
        compiler_params=pltpu.CompilerParams(
            dimension_semantics=("parallel", "parallel"),
            vmem_limit_bytes=_vmem_limit_bytes()),
        cost_estimate=cost,
    )(*operands)


# ---------------------------------------------------------------------------
# Module-level forward (wrapper): only metadata reshapes in plain JAX; all
# matmuls, softmax and bias adds run inside the Pallas kernels above.
# ---------------------------------------------------------------------------
def relative_position_bias_from_table(table, index):
    """table: (num_relative_distance, H); index: (nt, nt) int -> (1, H, nt, nt).
    The gather stays in plain JAX (mirrors the module's buffer lookup)."""
    nt = index.shape[0]
    rpb = table[index.reshape(-1)].reshape(nt, nt, -1)
    return jnp.transpose(rpb, (2, 0, 1))[None]


def vit_attention_pallas(x, w_qkv, w_proj, b_proj, *, num_heads,
                         q_bias=None, k_bias=None, v_bias=None, qk_scale=None,
                         rel_pos_bias=None, attn_mask=None,
                         compute_dtype=jnp.bfloat16, mxu_dtype=jnp.bfloat16,
                         tm=256):
    """Forward pass of the ViT `Attention` module.

    x: (B, N, C); w_qkv: (C, 3*all_head_dim); w_proj: (all_head_dim, C)
    (PyTorch stores Linear weights as (out, in); transpose once when importing).
    rel_pos_bias: broadcastable to (B, H, N, N) (fold the window-size relative
    position bias table gather / rpb_mask selection into it in plain JAX).
    attn_mask: broadcastable to (B, 1, N, N).
    For serving, pre-cast w_qkv / w_proj to compute_dtype once at load time
    (the astype below is then a no-op).
    """
    B, N, C = x.shape
    D3 = w_qkv.shape[1]
    D = D3 // 3
    dh = D // num_heads
    scale = qk_scale if qk_scale is not None else dh ** (-0.5)
    compute_dtype = jnp.dtype(compute_dtype)

    # qkv bias: concat(q_bias, k_bias|zeros, v_bias), exactly like the module.
    if q_bias is not None:
        zb = jnp.zeros_like(q_bias)
        kb = k_bias if k_bias is not None else zb
        vb = v_bias if v_bias is not None else zb
        qkv_b = jnp.concatenate([q_bias, kb, vb]).astype(jnp.float32)
    else:
        qkv_b = jnp.zeros((D3,), jnp.float32)

    # ---- QKV projection (row-tiled matmul kernel, lane-dense output) ----
    x2 = x.reshape(B * N, C).astype(compute_dtype)
    qkv = linear_pallas(x2, w_qkv.astype(compute_dtype), qkv_b,
                        tm=tm, out_dtype=compute_dtype)            # (B*N, 3D)
    qkv3 = qkv.reshape(B, N, 3, D)                                 # metadata-only view

    # Normalize additive terms (never materialize a (B, H, N, N) slab).
    rpb = None
    if rel_pos_bias is not None:
        rpb = jnp.asarray(rel_pos_bias, jnp.float32)
        rpb = rpb.reshape((1,) * (4 - rpb.ndim) + rpb.shape)
        rpb = jnp.broadcast_to(rpb, (rpb.shape[0], num_heads, N, N))   # heads only
    mask = None
    if attn_mask is not None:
        mask = jnp.asarray(attn_mask, jnp.float32)
        mask = mask.reshape((1,) * (4 - mask.ndim) + mask.shape)
        if mask.shape[1] != 1:
            raise ValueError("attn_mask must broadcast over heads (head dim == 1)")
        mask = jnp.broadcast_to(mask, (mask.shape[0], 1, N, N))

    ctx = attention_core_pallas(qkv3, num_heads=num_heads, head_dim=dh,
                                scale=scale, rel_pos_bias=rpb, attn_mask=mask,
                                mxu_dtype=mxu_dtype, out_dtype=compute_dtype)  # (B, N, D)

    # ---- output projection (merge-heads is a free reshape) ----
    y = linear_pallas(ctx.reshape(B * N, D), w_proj.astype(compute_dtype),
                      b_proj.astype(jnp.float32), tm=tm, out_dtype=x.dtype)
    # TODO(synk): proj_drop (p=0.0) is identity at inference; no dropout here.
    return y.reshape(B, N, C)


# ---------------------------------------------------------------------------
# Pure-JAX reference (mirrors the PyTorch forward, full-precision matmuls).
# ---------------------------------------------------------------------------
def vit_attention_reference(x, w_qkv, w_proj, b_proj, *, num_heads,
                            q_bias=None, k_bias=None, v_bias=None,
                            qk_scale=None, rel_pos_bias=None, attn_mask=None):
    B, N, C = x.shape
    D = w_qkv.shape[1] // 3
    dh = D // num_heads
    scale = qk_scale if qk_scale is not None else dh ** (-0.5)
    hi = lax.Precision.HIGHEST

    qkv = jnp.einsum("bnc,cd->bnd", x, w_qkv, precision=hi)
    if q_bias is not None:
        zb = jnp.zeros_like(q_bias)
        kb = k_bias if k_bias is not None else zb
        vb = v_bias if v_bias is not None else zb
        qkv = qkv + jnp.concatenate([q_bias, kb, vb])
    qkv = qkv.reshape(B, N, 3, num_heads, dh).transpose(2, 0, 3, 1, 4)
    q, k, v = qkv[0] * scale, qkv[1], qkv[2]
    attn = jnp.einsum("bhqd,bhkd->bhqk", q, k, precision=hi)
    if rel_pos_bias is not None:
        attn = attn + rel_pos_bias
    if attn_mask is not None:
        attn = attn - 1e10 * attn_mask
    attn = jax.nn.softmax(attn, axis=-1)
    ctx = jnp.einsum("bhqk,bhkd->bhqd", attn, v, precision=hi)
    ctx = jnp.transpose(ctx, (0, 2, 1, 3)).reshape(B, N, D)
    return jnp.einsum("bnd,dc->bnc", ctx, w_proj, precision=hi) + b_proj


if __name__ == "__main__":
    key = jax.random.PRNGKey(0)

    # Shared parameters: dim=256.
    C = 256
    k0, k1, k2, k3 = jax.random.split(key, 4)
    lim = 1.0 / math.sqrt(C)
    w_qkv = jax.random.uniform(k1, (C, 3 * C), jnp.float32, -lim, lim)
    w_proj = jax.random.uniform(k2, (C, C), jnp.float32, -lim, lim)
    b_proj = jax.random.uniform(k3, (C,), jnp.float32, -lim, lim)
    # Pre-cast weights once ("model load time") so the per-call astype is a no-op.
    w_qkv_bf16 = w_qkv.astype(jnp.bfloat16)
    w_proj_bf16 = w_proj.astype(jnp.bfloat16)

    # ---- Test A: 2 heads -> head_dim=128 (one head per step), no biases ----
    B, N, H = 2, 128, 2
    x = jax.random.normal(k0, (B, N, C), jnp.float32)
    y = vit_attention_pallas(x, w_qkv_bf16, w_proj_bf16, b_proj, num_heads=H)
    y = jax.block_until_ready(y)
    y_ref = vit_attention_reference(x, w_qkv, w_proj, b_proj, num_heads=H)
    assert y.shape == (B, N, C)
    err_a = float(jnp.max(jnp.abs(y - y_ref)))
    assert jnp.allclose(y, y_ref, atol=5e-2, rtol=5e-2), (
        "Test A mismatch, max abs err = %g" % err_a)

    # ---- Test B: 4 heads -> head_dim=64 (paired heads, 128-lane slabs),
    # ---- qkv bias + relative-position bias + attention mask, ragged row grid.
    B2, N2, H2 = 2, 120, 4
    k4, k5, k6, k7, k8, k9 = jax.random.split(jax.random.PRNGKey(1), 6)
    xb = jax.random.normal(k4, (B2, N2, C), jnp.float32)
    q_bias = 0.1 * jax.random.normal(k5, (C,), jnp.float32)
    v_bias = 0.1 * jax.random.normal(k6, (C,), jnp.float32)
    num_rel = 16
    table = 0.1 * jax.random.normal(k7, (num_rel, H2), jnp.float32)
    rel_index = jax.random.randint(k8, (N2, N2), 0, num_rel)
    rpb = relative_position_bias_from_table(table, rel_index)       # (1, H2, N2, N2)
    attn_mask = (jax.random.uniform(k9, (B2, 1, N2, N2)) < 0.2).astype(jnp.float32)

    y2 = vit_attention_pallas(xb, w_qkv_bf16, w_proj_bf16, b_proj, num_heads=H2,
                              q_bias=q_bias, v_bias=v_bias,
                              rel_pos_bias=rpb, attn_mask=attn_mask,
                              compute_dtype=jnp.bfloat16, tm=128)
    y2 = jax.block_until_ready(y2)
    y2_ref = vit_attention_reference(xb, w_qkv, w_proj, b_proj, num_heads=H2,
                                     q_bias=q_bias, v_bias=v_bias,
                                     rel_pos_bias=rpb, attn_mask=attn_mask)
    assert y2.shape == (B2, N2, C)
    err_b = float(jnp.max(jnp.abs(y2.astype(jnp.float32) - y2_ref)))
    assert jnp.allclose(y2.astype(jnp.float32), y2_ref, atol=5e-2, rtol=5e-2), (
        "Test B mismatch, max abs err = %g" % err_b)

    print("KERNEL_OK")
</pallas_src>

<mosaic_0001>
module attributes {stable_mosaic.version = 11 : i64} {
  func.func @_linear_kernel(%arg0: i32, %arg1: memref<256x256xbf16, #tpu.memory_space<vmem>>, %arg2: memref<256x768xbf16, #tpu.memory_space<vmem>>, %arg3: memref<1x768xf32, #tpu.memory_space<vmem>>, %arg4: memref<256x768xbf16, #tpu.memory_space<vmem>>) attributes {dimension_semantics = [#tpu.dimension_semantics<parallel>], iteration_bounds = array<i64: 1>, scalar_prefetch = 0 : i64, scratch_operands = 0 : i64, tpu.core_type = #tpu.core_type<tc>, window_params = [{transform_indices = @transform_0, window_bounds = array<i64: 256, 256>}, {pipeline_mode = #tpu.pipeline_mode<synchronous>, transform_indices = @transform_1, window_bounds = array<i64: 256, 768>}, {pipeline_mode = #tpu.pipeline_mode<synchronous>, transform_indices = @transform_2, window_bounds = array<i64: 1, 768>}, {transform_indices = @transform_3, window_bounds = array<i64: 256, 768>}]} {
    %c0 = arith.constant 0 : index
    %c0_0 = arith.constant 0 : index
    %0 = vector.load %arg1[%c0, %c0_0] : memref<256x256xbf16, #tpu.memory_space<vmem>>, vector<256x256xbf16>
    %c0_1 = arith.constant 0 : index
    %c0_2 = arith.constant 0 : index
    %1 = vector.load %arg2[%c0_1, %c0_2] : memref<256x768xbf16, #tpu.memory_space<vmem>>, vector<256x768xbf16>
    %cst = arith.constant dense<0.000000e+00> : vector<256x768xf32>
    %2 = tpu.matmul %0, %1, %cst {dimension_numbers = #tpu.dot_dimension_numbers<[1], [0], [0], [1], [0, 0, 1, 1], [], []>} : vector<256x256xbf16>, vector<256x768xbf16>, vector<256x768xf32> -> vector<256x768xf32>
    %c0_3 = arith.constant 0 : index
    %c0_4 = arith.constant 0 : index
    %3 = vector.load %arg3[%c0_3, %c0_4] : memref<1x768xf32, #tpu.memory_space<vmem>>, vector<1x768xf32>
    %4 = vector.broadcast %3 : vector<1x768xf32> to vector<256x768xf32>
    %5 = arith.addf %2, %4 : vector<256x768xf32>
    %6 = arith.truncf %5 : vector<256x768xf32> to vector<256x768xbf16>
    %c0_5 = arith.constant 0 : index
    %c0_6 = arith.constant 0 : index
    %7 = vector.load %arg4[%c0_5, %c0_6] : memref<256x768xbf16, #tpu.memory_space<vmem>>, vector<256x768xbf16>
    tpu.vector_store %arg4[%c0_5, %c0_6], %6 {strides = array<i32>} : memref<256x768xbf16, #tpu.memory_space<vmem>>, vector<256x768xbf16>,
    return
  }
  func.func @transform_0(%arg0: i32) -> (i32, i32) {
    %c0_i32 = arith.constant 0 : i32
    %c0_i32_0 = arith.constant 0 : i32
    return %arg0, %c0_i32 : i32, i32
  }
  func.func @transform_1(%arg0: i32) -> (i32, i32) {
    %c0_i32 = arith.constant 0 : i32
    %c0_i32_0 = arith.constant 0 : i32
    %c0_i32_1 = arith.constant 0 : i32
    return %c0_i32, %c0_i32_0 : i32, i32
  }
  func.func @transform_2(%arg0: i32) -> (i32, i32) {
    %c0_i32 = arith.constant 0 : i32
    %c0_i32_0 = arith.constant 0 : i32
    %c0_i32_1 = arith.constant 0 : i32
    return %c0_i32, %c0_i32_0 : i32, i32
  }
  func.func @transform_3(%arg0: i32) -> (i32, i32) {
    %c0_i32 = arith.constant 0 : i32
    %c0_i32_0 = arith.constant 0 : i32
    return %arg0, %c0_i32 : i32, i32
  }
}

module attributes {stable_mosaic.version = 11 : i64} {
  func.func @_linear_kernel(%arg0: i32, %arg1: memref<256x256xbf16, #tpu.memory_space<vmem>>, %arg2: memref<256x768xbf16, #tpu.memory_space<vmem>>, %arg3: memref<1x768xf32, #tpu.memory_space<vmem>>, %arg4: memref<256x768xbf16, #tpu.memory_space<vmem>>) attributes {dimension_semantics = [#tpu.dimension_semantics<parallel>], iteration_bounds = array<i64: 1>, scalar_prefetch = 0 : i64, scratch_operands = 0 : i64, tpu.core_type = #tpu.core_type<tc>, window_params = [{transform_indices = @transform_0, window_bounds = array<i64: 256, 256>}, {pipeline_mode = #tpu.pipeline_mode<synchronous>, transform_indices = @transform_1, window_bounds = array<i64: 256, 768>}, {pipeline_mode = #tpu.pipeline_mode<synchronous>, transform_indices = @transform_2, window_bounds = array<i64: 1, 768>}, {transform_indices = @transform_3, window_bounds = array<i64: 256, 768>}]} {
    %c0 = arith.constant 0 : index
    %c0_0 = arith.constant 0 : index
    %0 = vector.load %arg1[%c0, %c0_0] : memref<256x256xbf16, #tpu.memory_space<vmem>>, vector<256x256xbf16>
    %c0_1 = arith.constant 0 : index
    %c0_2 = arith.constant 0 : index
    %1 = vector.load %arg2[%c0_1, %c0_2] : memref<256x768xbf16, #tpu.memory_space<vmem>>, vector<256x768xbf16>
    %cst = arith.constant dense<0.000000e+00> : vector<256x768xf32>
    %2 = tpu.matmul %0, %1, %cst {dimension_numbers = #tpu.dot_dimension_numbers<[1], [0], [0], [1], [0, 0, 1, 1], [], []>} : vector<256x256xbf16>, vector<256x768xbf16>, vector<256x768xf32> -> vector<256x768xf32>
    %c0_3 = arith.constant 0 : index
    %c0_4 = arith.constant 0 : index
    %3 = vector.load %arg3[%c0_3, %c0_4] : memref<1x768xf32, #tpu.memory_space<vmem>>, vector<1x768xf32>
    %4 = vector.broadcast %3 : vector<1x768xf32> to vector<256x768xf32>
    %5 = arith.addf %2, %4 : vector<256x768xf32>
    %6 = arith.truncf %5 : vector<256x768xf32> to vector<256x768xbf16>
    %c0_5 = arith.constant 0 : index
    %c0_6 = arith.constant 0 : index
    %7 = vector.load %arg4[%c0_5, %c0_6] : memref<256x768xbf16, #tpu.memory_space<vmem>>, vector<256x768xbf16>
    tpu.vector_store %arg4[%c0_5, %c0_6], %6 {strides = array<i32>} : memref<256x768xbf16, #tpu.memory_space<vmem>>, vector<256x768xbf16>,
    return
  }
  func.func @transform_0(%arg0: i32) -> (i32, i32) {
    %c0_i32 = arith.constant 0 : i32
    %c0_i32_0 = arith.constant 0 : i32
    return %arg0, %c0_i32 : i32, i32
  }
  func.func @transform_1(%arg0: i32) -> (i32, i32) {
    %c0_i32 = arith.constant 0 : i32
    %c0_i32_0 = arith.constant 0 : i32
    %c0_i32_1 = arith.constant 0 : i32
    return %c0_i32, %c0_i32_0 : i32, i32
  }
  func.func @transform_2(%arg0: i32) -> (i32, i32) {
    %c0_i32 = arith.constant 0 : i32
    %c0_i32_0 = arith.constant 0 : i32
    %c0_i32_1 = arith.constant 0 : i32
    return %c0_i32, %c0_i32_0 : i32, i32
  }
  func.func @transform_3(%arg0: i32) -> (i32, i32) {
    %c0_i32 = arith.constant 0 : i32
    %c0_i32_0 = arith.constant 0 : i32
    return %arg0, %c0_i32 : i32, i32
  }
}

</mosaic_0001>

<bundles_post_ra>
// kernel: tpu_custom_call.1
= control target key start
LH: loop header
LB: loop body
LE: loop exit
PB: predicated region body
PF: predicated region fallthrough
CT: control target
= control target key end

     0   :  { %8 = vsyncpa [#allocation3], 0  ;;  %s3161_s0 = inlined_call_operand.hbm [shape: bf16[256,256], index: 0, kind: input, shape index: {}]   ;;  %s3162_s1 = inlined_call_operand.hbm [shape: bf16[256,768], index: 1, kind: input, shape index: {}]   ;;  %s3163_s2 = inlined_call_operand.vmem [shape: f32[1,768], index: 2, kind: input, shape index: {}]   ;;  %s3164_s3 = inlined_call_operand.hbm [shape: bf16[256,768], index: 3, kind: output, shape index: {}]  }
   0x1   :  { %9 = vsyncpa [#allocation6], 0 }
   0x2   :  { %10 = vsyncpa [#allocation4], 0  ;;  %s2735_s12 = smov [#allocation2]   ;;  %s2663_s16 = scalar_lea.hbm %s3161_s0, 4096 }
   0x3   :  { %s16_s13 = sshll.u32 %s2735_s12, 4  ;;  %p2664_p0 = scmp.ne.s32.totalorder %s3161_s0, %s2663_s16  ;;  %s17_s13 = int_to_ptr.vmem [resolvable:$true] %s16_s13 }
   0x4   :  { %p2667_p1 = scmp.lt.u32.totalorder %s2663_s16, %s3161_s0 }
   0x6   :  { %p2669_p2 = pnand %p2667_p1, %p2664_p0 }
   0x8   :  { %2672 = shalt.err (!%p2669_p2)
}
   0x9   :  { %s2673_s21 = scalar_lea.vmem %s17_s13, 4096  ;;  %p2678_p4 = scmp.lt.s32.totalorder %s17_s13, %s17_s13 }
   0xa   :  { %p2674_p3 = scmp.ne.s32.totalorder %s17_s13, %s2673_s21  ;;  %p2679_p5 = scmp.lt.s32.totalorder %s2673_s21, %s2673_s21 }
   0xc   :  { %p2680_p6 = por %p2679_p5, %p2678_p4 }
   0xe   :  { %p2681_p7 = pnand %p2680_p6, %p2674_p3 }
  0x10   :  { %2684 = shalt.err (!%p2681_p7)
}
  0x11   :  { %s2736_s22 = smov 128   ;;  %s2737_s23 = smov 8  }
  0x12   :  { %22 = dma.hbm_to_vmem [thread:$0]  %s3161_s0, 4096, %s17_s13, [#allocation3], %s2736_s22, %s2736_s22, %s2737_s23  }
  0x13   :  { %s2738_s26 = smov [#allocation5]   ;;  %s2685_s30 = scalar_lea.hbm %s3162_s1, 12288 }
  0x14   :  { %s28_s27 = sshll.u32 %s2738_s26, 4  ;;  %p2686_p8 = scmp.ne.s32.totalorder %s3162_s1, %s2685_s30  ;;  %s29_s27 = int_to_ptr.vmem [resolvable:$true] %s28_s27 }
  0x15   :  { %p2689_p9 = scmp.lt.u32.totalorder %s2685_s30, %s3162_s1 }
  0x17   :  { %p2691_p10 = pnand %p2689_p9, %p2686_p8 }
  0x19   :  { %2694 = shalt.err (!%p2691_p10)
}
  0x1a   :  { %s2695_s8 = scalar_lea.vmem %s29_s27, 12288  ;;  %p2700_p12 = scmp.lt.s32.totalorder %s29_s27, %s29_s27 }
  0x1b   :  { %p2696_p11 = scmp.ne.s32.totalorder %s29_s27, %s2695_s8  ;;  %p2701_p13 = scmp.lt.s32.totalorder %s2695_s8, %s2695_s8 }
  0x1d   :  { %p2702_p0 = por %p2701_p13, %p2700_p12 }
  0x1f   :  { %p2703_p1 = pnand %p2702_p0, %p2696_p11 }
  0x21   :  { %2706 = shalt.err (!%p2703_p1)
}
  0x22   :  { %s2739_s0 = smov 384   ;;  %s2740_s9 = smov 24  }
  0x23   :  { %34 = dma.hbm_to_vmem [thread:$0]  %s3162_s1, 12288, %s29_s27, [#allocation6], %s2739_s0, %s2739_s0, %s2740_s9  }
  0x24   :  { %2729 = dma.done.wait [#allocation3], 4096  }
  0x25   :  { %2730 = vsyncadd [#allocation3], 4294963200 }
  0x26   :  { %2731 = dma.done.wait [#allocation6], 12288  }
  0x27   :  { %2732 = vsyncadd [#allocation6], 4294955008  ;;  %v2471_v0 = vld [vmem:[#allocation5 + $0x4] ss:$24 sps:$4 sm:$0xff]   ;;  %v2473_v1 = vld [vmem:[#allocation5] ss:$24 sps:$4 sm:$0xff]  }
  0x28   :  { %843 = vmatprep.subr.bf16.mxu0 %v2471_v0  ;;  %2432 = vmatprep.subr.bf16.mxu1 %v2471_v0  ;;  %v2474_v2 = vld [vmem:[#allocation5 + $0x34] ss:$24 sps:$4 sm:$0xff]   ;;  %v2476_v3 = vld [vmem:[#allocation5 + $0x30] ss:$24 sps:$4 sm:$0xff]   ;;  %v2477_v4 = vld [vmem:[#allocation5 + $0x64] ss:$24 sps:$4 sm:$0xff]  }
  0x29   :  { %844 = vmatpush1.bf16.msra.mxu0 %v2473_v1  ;;  %2448 = vmatpush1.bf16.msra.mxu1 %v2473_v1  ;;  %v2479_v5 = vld [vmem:[#allocation5 + $0x60] ss:$24 sps:$4 sm:$0xff]   ;;  %v2480_v6 = vld [vmem:[#allocation5 + $0x94] ss:$24 sps:$4 sm:$0xff]   ;;  %v2482_v7 = vld [vmem:[#allocation5 + $0x90] ss:$24 sps:$4 sm:$0xff]  }
  0x2a   :  { %845 = vmatprep.subr.bf16.mxu0 %v2474_v2  ;;  %2433 = vmatprep.subr.bf16.mxu1 %v2474_v2  ;;  %v2483_v8 = vld [vmem:[#allocation5 + $0xc4] ss:$24 sps:$4 sm:$0xff]   ;;  %v2485_v9 = vld [vmem:[#allocation5 + $0xc0] ss:$24 sps:$4 sm:$0xff]   ;;  %v2486_v10 = vld [vmem:[#allocation5 + $0xf4] ss:$24 sps:$4 sm:$0xff]  }
  0x2b   :  { %v2488_v11 = vld [vmem:[#allocation5 + $0xf0] ss:$24 sps:$4 sm:$0xff]   ;;  %v2489_v12 = vld [vmem:[#allocation5 + $0x124] ss:$24 sps:$4 sm:$0xff]   ;;  %v2491_v14 = vld [vmem:[#allocation5 + $0x120] ss:$24 sps:$4 sm:$0xff]  }
  0x2c   :  { %v2789_v13 = vld [vmem:[#allocation2 + $0x4] ss:$8 sps:$4 sm:$0xff]   ;;  %v2494_v17 = vld [vmem:[#allocation5 + $0x150] ss:$24 sps:$4 sm:$0xff]   ;;  %v2497_v19 = vld [vmem:[#allocation5 + $0x180] ss:$24 sps:$4 sm:$0xff]  }
  0x2d   :  { %846 = vmatpush1.bf16.msra.mxu0 %v2476_v3  ;;  %2449 = vmatpush1.bf16.msra.mxu1 %v2476_v3  ;;  %v2791_v15 = vld [vmem:[#allocation2 + $0x84] ss:$8 sps:$4 sm:$0xff]   ;;  %v2500_v21 = vld [vmem:[#allocation5 + $0x1b0] ss:$24 sps:$4 sm:$0xff]   ;;  %v2503_v23 = vld [vmem:[#allocation5 + $0x1e0] ss:$24 sps:$4 sm:$0xff]  }
  0x2e   :  { %847 = vmatprep.subr.bf16.mxu0 %v2477_v4  ;;  %2434 = vmatprep.subr.bf16.mxu1 %v2477_v4  ;;  %v2492_v16 = vld [vmem:[#allocation5 + $0x154] ss:$24 sps:$4 sm:$0xff]   ;;  %v2495_v18 = vld [vmem:[#allocation5 + $0x184] ss:$24 sps:$4 sm:$0xff]   ;;  %v2506_v25 = vld [vmem:[#allocation5 + $0x210] ss:$24 sps:$4 sm:$0xff]  }
  0x2f   :  { %875 = vmatprep.mubr.bf16.mxu0 %v2789_v13  ;;  %955 = vmatprep.mubr.bf16.mxu1 %v2791_v15  ;;  %v2498_v20 = vld [vmem:[#allocation5 + $0x1b4] ss:$24 sps:$4 sm:$0xff]   ;;  %v2501_v22 = vld [vmem:[#allocation5 + $0x1e4] ss:$24 sps:$4 sm:$0xff]   ;;  %v2509_v27 = vld [vmem:[#allocation5 + $0x240] ss:$24 sps:$4 sm:$0xff]  }
  0x30   :  { %v2504_v24 = vld [vmem:[#allocation5 + $0x214] ss:$24 sps:$4 sm:$0xff]   ;;  %v2507_v26 = vld [vmem:[#allocation5 + $0x244] ss:$24 sps:$4 sm:$0xff]   ;;  %v2512_v29 = vld [vmem:[#allocation5 + $0x270] ss:$24 sps:$4 sm:$0xff]  }
  0x31   :  { %848 = vmatpush1.bf16.msra.mxu0 %v2479_v5  ;;  %2450 = vmatpush1.bf16.msra.mxu1 %v2479_v5  ;;  %v2510_v28 = vld [vmem:[#allocation5 + $0x274] ss:$24 sps:$4 sm:$0xff]   ;;  %v2513_v30 = vld [vmem:[#allocation5 + $0x2a4] ss:$24 sps:$4 sm:$0xff]   ;;  %v2515_v31 = vld [vmem:[#allocation5 + $0x2a0] ss:$24 sps:$4 sm:$0xff]  }
  0x32   :  { %849 = vmatprep.subr.bf16.mxu0 %v2480_v6  ;;  %2435 = vmatprep.subr.bf16.mxu1 %v2480_v6  ;;  %v2516_v32 = vld [vmem:[#allocation5 + $0x2d4] ss:$24 sps:$4 sm:$0xff]   ;;  %v2518_v33 = vld [vmem:[#allocation5 + $0x2d0] ss:$24 sps:$4 sm:$0xff]   ;;  %v2536_v41 = vld [vmem:[#allocation5 + $0x44] ss:$24 sps:$4 sm:$0xff]  }
  0x33   :  { %v2527_v34 = vld [vmem:[#allocation5 + $0xc] ss:$24 sps:$4 sm:$0xff]   ;;  %v2795_v35 = vld [vmem:[#allocation2] ss:$8 sps:$4 sm:$0xff]   ;;  %v2533_v40 = vld [vmem:[#allocation5 + $0x3c] ss:$24 sps:$4 sm:$0xff]  }
  0x34   :  { %v2530_v36 = vld [vmem:[#allocation5 + $0x14] ss:$24 sps:$4 sm:$0xff]   ;;  %v2797_v37 = vld [vmem:[#allocation2 + $0x80] ss:$8 sps:$4 sm:$0xff]   ;;  %v2531_v44 = vld [vmem:[#allocation5 + $0x38] ss:$24 sps:$4 sm:$0xff]  }
  0x35   :  { %850 = vmatpush1.bf16.msra.mxu0 %v2482_v7  ;;  %2451 = vmatpush1.bf16.msra.mxu1 %v2482_v7  ;;  %v2525_v38 = vld [vmem:[#allocation5 + $0x8] ss:$24 sps:$4 sm:$0xff]   ;;  %v2799_v42 = vld [vmem:[#allocation2 + $0x14] ss:$8 sps:$4 sm:$0xff]   ;;  %v2545_v46 = vld [vmem:[#allocation5 + $0x6c] ss:$24 sps:$4 sm:$0xff]  }
  0x36   :  { %851 = vmatprep.subr.bf16.mxu0 %v2483_v8  ;;  %2436 = vmatprep.subr.bf16.mxu1 %v2483_v8  ;;  %v2528_v39 = vld [vmem:[#allocation5 + $0x10] ss:$24 sps:$4 sm:$0xff]   ;;  %v2801_v43 = vld [vmem:[#allocation2 + $0x94] ss:$8 sps:$4 sm:$0xff]   ;;  %v2534_v45 = vld [vmem:[#allocation5 + $0x40] ss:$24 sps:$4 sm:$0xff]  }
  0x37   :  { %v2805_v47 = vld [vmem:[#allocation2 + $0x10] ss:$8 sps:$4 sm:$0xff]   ;;  %v2548_v48 = vld [vmem:[#allocation5 + $0x74] ss:$24 sps:$4 sm:$0xff]   ;;  %v2543_v50 = vld [vmem:[#allocation5 + $0x68] ss:$24 sps:$4 sm:$0xff]  }
  0x38   :  { %v2809_v49 = vld [vmem:[#allocation2 + $0x90] ss:$8 sps:$4 sm:$0xff]   ;;  %v2551_v52 = vld [vmem:[#allocation5 + $0x9c] ss:$24 sps:$4 sm:$0xff]   ;;  %v2811_v54 = vld [vmem:[#allocation2 + $0x24] ss:$8 sps:$4 sm:$0xff]  }
  0x39   :  { %852 = vmatpush1.bf16.msra.mxu0 %v2485_v9  ;;  %2452 = vmatpush1.bf16.msra.mxu1 %v2485_v9  ;;  %v2546_v51 = vld [vmem:[#allocation5 + $0x70] ss:$24 sps:$4 sm:$0xff]   ;;  %v2554_v53 = vld [vmem:[#allocation5 + $0xa4] ss:$24 sps:$4 sm:$0xff]   ;;  %v2552_v57 = vld [vmem:[#allocation5 + $0xa0] ss:$24 sps:$4 sm:$0xff]  }
  0x3a   :  { %853 = vmatprep.subr.bf16.mxu0 %v2486_v10  ;;  %2437 = vmatprep.subr.bf16.mxu1 %v2486_v10  ;;  %v2813_v55 = vld [vmem:[#allocation2 + $0xa4] ss:$8 sps:$4 sm:$0xff]   ;;  %v2549_v56 = vld [vmem:[#allocation5 + $0x98] ss:$24 sps:$4 sm:$0xff]   ;;  %v2817_v59 = vld [vmem:[#allocation2 + $0x20] ss:$8 sps:$4 sm:$0xff]  }
  0x3b   :  { %v2563_v58 = vld [vmem:[#allocation5 + $0xcc] ss:$24 sps:$4 sm:$0xff]   ;;  %v2821_v61 = vld [vmem:[#allocation2 + $0xa0] ss:$8 sps:$4 sm:$0xff]   ;;  %v2569_v0 = vld [vmem:[#allocation5 + $0xfc] ss:$24 sps:$4 sm:$0xff]  }
  0x3c   :  { %v2566_v60 = vld [vmem:[#allocation5 + $0xd4] ss:$24 sps:$4 sm:$0xff]   ;;  %v2561_v62 = vld [vmem:[#allocation5 + $0xc8] ss:$24 sps:$4 sm:$0xff]   ;;  %v2572_v1 = vld [vmem:[#allocation5 + $0x104] ss:$24 sps:$4 sm:$0xff]  }
  0x3d   :  { %854 = vmatpush1.bf16.msra.mxu0 %v2488_v11  ;;  %2453 = vmatpush1.bf16.msra.mxu1 %v2488_v11  ;;  %v2564_v63 = vld [vmem:[#allocation5 + $0xd0] ss:$24 sps:$4 sm:$0xff]   ;;  %v2823_v2 = vld [vmem:[#allocation2 + $0x34] ss:$8 sps:$4 sm:$0xff]   ;;  %v2570_v5 = vld [vmem:[#allocation5 + $0x100] ss:$24 sps:$4 sm:$0xff]  }
  0x3e   :  { %855 = vmatprep.subr.bf16.mxu0 %v2489_v12  ;;  %2438 = vmatprep.subr.bf16.mxu1 %v2489_v12  ;;  %v2825_v3 = vld [vmem:[#allocation2 + $0xb4] ss:$8 sps:$4 sm:$0xff]   ;;  %v2567_v4 = vld [vmem:[#allocation5 + $0xf8] ss:$24 sps:$4 sm:$0xff]   ;;  %v2581_v6 = vld [vmem:[#allocation5 + $0x12c] ss:$24 sps:$4 sm:$0xff]  }
  0x3f   :  { %v2584_v7 = vld [vmem:[#allocation5 + $0x134] ss:$24 sps:$4 sm:$0xff]   ;;  %v2831_v8 = vld [vmem:[#allocation2 + $0x30] ss:$8 sps:$4 sm:$0xff]   ;;  %v2579_v10 = vld [vmem:[#allocation5 + $0x128] ss:$24 sps:$4 sm:$0xff]  }
  0x40   :  { %v2833_v9 = vld [vmem:[#allocation2 + $0xb0] ss:$8 sps:$4 sm:$0xff]   ;;  %v2587_v12 = vld [vmem:[#allocation5 + $0x15c] ss:$24 sps:$4 sm:$0xff]  }
  0x41   :  { %856 = vmatpush1.bf16.msra.mxu0 %v2491_v14  ;;  %2454 = vmatpush1.bf16.msra.mxu1 %v2491_v14  ;;  %v2582_v11 = vld [vmem:[#allocation5 + $0x130] ss:$24 sps:$4 sm:$0xff]   ;;  %v2590_v14 = vld [vmem:[#allocation5 + $0x164] ss:$24 sps:$4 sm:$0xff]  }
  0x42   :  { %857 = vmatprep.subr.bf16.mxu0 %v2492_v16  ;;  %2439 = vmatprep.subr.bf16.mxu1 %v2492_v16  ;;  %v2835_v16 = vld [vmem:[#allocation2 + $0x44] ss:$8 sps:$4 sm:$0xff]  }
  0x45   :  { %858 = vmatpush1.bf16.msra.mxu0 %v2494_v17  ;;  %2455 = vmatpush1.bf16.msra.mxu1 %v2494_v17  ;;  %v2837_v17 = vld [vmem:[#allocation2 + $0xc4] ss:$8 sps:$4 sm:$0xff]  }
  0x46   :  { %859 = vmatprep.subr.bf16.mxu0 %v2495_v18  ;;  %2440 = vmatprep.subr.bf16.mxu1 %v2495_v18  ;;  %v2585_v18 = vld [vmem:[#allocation5 + $0x158] ss:$24 sps:$4 sm:$0xff]  }
  0x49   :  { %860 = vmatpush1.bf16.msra.mxu0 %v2497_v19  ;;  %2456 = vmatpush1.bf16.msra.mxu1 %v2497_v19  ;;  %v2588_v19 = vld [vmem:[#allocation5 + $0x160] ss:$24 sps:$4 sm:$0xff]  }
  0x4a   :  { %861 = vmatprep.subr.bf16.mxu0 %v2498_v20  ;;  %2441 = vmatprep.subr.bf16.mxu1 %v2498_v20  ;;  %v2599_v20 = vld [vmem:[#allocation5 + $0x18c] ss:$24 sps:$4 sm:$0xff]  }
  0x4d   :  { %862 = vmatpush1.bf16.msra.mxu0 %v2500_v21  ;;  %2457 = vmatpush1.bf16.msra.mxu1 %v2500_v21  ;;  %v2602_v21 = vld [vmem:[#allocation5 + $0x194] ss:$24 sps:$4 sm:$0xff]  }
  0x4e   :  { %863 = vmatprep.subr.bf16.mxu0 %v2501_v22  ;;  %2442 = vmatprep.subr.bf16.mxu1 %v2501_v22  ;;  %v2843_v22 = vld [vmem:[#allocation2 + $0x40] ss:$8 sps:$4 sm:$0xff]  }
  0x51   :  { %864 = vmatpush1.bf16.msra.mxu0 %v2503_v23  ;;  %2458 = vmatpush1.bf16.msra.mxu1 %v2503_v23  ;;  %v2845_v23 = vld [vmem:[#allocation2 + $0xc0] ss:$8 sps:$4 sm:$0xff]  }
  0x52   :  { %865 = vmatprep.subr.bf16.mxu0 %v2504_v24  ;;  %2443 = vmatprep.subr.bf16.mxu1 %v2504_v24  ;;  %v2597_v24 = vld [vmem:[#allocation5 + $0x188] ss:$24 sps:$4 sm:$0xff]  }
  0x55   :  { %866 = vmatpush1.bf16.msra.mxu0 %v2506_v25  ;;  %2459 = vmatpush1.bf16.msra.mxu1 %v2506_v25  ;;  %v2600_v25 = vld [vmem:[#allocation5 + $0x190] ss:$24 sps:$4 sm:$0xff]  }
  0x56   :  { %867 = vmatprep.subr.bf16.mxu0 %v2507_v26  ;;  %2444 = vmatprep.subr.bf16.mxu1 %v2507_v26  ;;  %v2605_v26 = vld [vmem:[#allocation5 + $0x1bc] ss:$24 sps:$4 sm:$0xff]  }
  0x59   :  { %868 = vmatpush1.bf16.msra.mxu0 %v2509_v27  ;;  %2460 = vmatpush1.bf16.msra.mxu1 %v2509_v27  ;;  %v2608_v27 = vld [vmem:[#allocation5 + $0x1c4] ss:$24 sps:$4 sm:$0xff]  }
  0x5a   :  { %869 = vmatprep.subr.bf16.mxu0 %v2510_v28  ;;  %2445 = vmatprep.subr.bf16.mxu1 %v2510_v28  ;;  %v2847_v28 = vld [vmem:[#allocation2 + $0x54] ss:$8 sps:$4 sm:$0xff]  }
  0x5d   :  { %870 = vmatpush1.bf16.msra.mxu0 %v2512_v29  ;;  %2461 = vmatpush1.bf16.msra.mxu1 %v2512_v29  ;;  %v2849_v29 = vld [vmem:[#allocation2 + $0xd4] ss:$8 sps:$4 sm:$0xff]  }
  0x5e   :  { %871 = vmatprep.subr.bf16.mxu0 %v2513_v30  ;;  %2446 = vmatprep.subr.bf16.mxu1 %v2513_v30  ;;  %v2603_v30 = vld [vmem:[#allocation5 + $0x1b8] ss:$24 sps:$4 sm:$0xff]  }
  0x61   :  { %872 = vmatpush1.bf16.msra.mxu0 %v2515_v31  ;;  %2462 = vmatpush1.bf16.msra.mxu1 %v2515_v31  ;;  %v2606_v31 = vld [vmem:[#allocation5 + $0x1c0] ss:$24 sps:$4 sm:$0xff]  }
  0x62   :  { %873 = vmatprep.subr.bf16.mxu0 %v2516_v32  ;;  %2447 = vmatprep.subr.bf16.mxu1 %v2516_v32  ;;  %v2617_v32 = vld [vmem:[#allocation5 + $0x1ec] ss:$24 sps:$4 sm:$0xff]  }
  0x65   :  { %874 = vmatpush1.bf16.msra.mxu0 %v2518_v33  ;;  %2463 = vmatpush1.bf16.msra.mxu1 %v2518_v33  ;;  %v2620_v33 = vld [vmem:[#allocation5 + $0x1f4] ss:$24 sps:$4 sm:$0xff]  }
  0x66   :  { %1036 = vmatprep.subr.bf16.mxu1 %v2527_v34  ;;  %1229 = vmatprep.subr.bf16.mxu0 %v2530_v36  ;;  %v2855_v34 = vld [vmem:[#allocation2 + $0x50] ss:$8 sps:$4 sm:$0xff]  }
  0x67   :  { %v2857_v36 = vld [vmem:[#allocation2 + $0xd0] ss:$8 sps:$4 sm:$0xff]  }
  0x68   :  { %876 = vmatmul.mubr.bf16.vlgmr.msra.gmra.mrb[0].mxu0 %v2795_v35  ;;  %956 = vmatmul.mubr.bf16.vlgmr.msra.gmra.mrb[0].mxu1 %v2797_v37 }
  0x69   :  { %1037 = vmatpush1.bf16.msra.mxu1 %v2525_v38  ;;  %1230 = vmatpush1.bf16.msra.mxu0 %v2528_v39  ;;  %v2615_v38 = vld [vmem:[#allocation5 + $0x1e8] ss:$24 sps:$4 sm:$0xff]  }
  0x6a   :  { %1038 = vmatprep.subr.bf16.mxu1 %v2533_v40  ;;  %1231 = vmatprep.subr.bf16.mxu0 %v2536_v41  ;;  %v2618_v39 = vld [vmem:[#allocation5 + $0x1f0] ss:$24 sps:$4 sm:$0xff]   ;;  %v2623_v40 = vld [vmem:[#allocation5 + $0x21c] ss:$24 sps:$4 sm:$0xff]  }
  0x6b   :  { %885 = vmatprep.mubr.bf16.mxu0 %v2799_v42  ;;  %965 = vmatprep.mubr.bf16.mxu1 %v2801_v43  ;;  %v2626_v41 = vld [vmem:[#allocation5 + $0x224] ss:$24 sps:$4 sm:$0xff]  }
  0x6d   :  { %1039 = vmatpush1.bf16.msra.mxu1 %v2531_v44  ;;  %1232 = vmatpush1.bf16.msra.mxu0 %v2534_v45  ;;  %v2859_v44 = vld [vmem:[#allocation2 + $0x64] ss:$8 sps:$4 sm:$0xff]  }
  0x6e   :  { %1040 = vmatprep.subr.bf16.mxu1 %v2545_v46  ;;  %1233 = vmatprep.subr.bf16.mxu0 %v2548_v48  ;;  %v2861_v45 = vld [vmem:[#allocation2 + $0xe4] ss:$8 sps:$4 sm:$0xff]   ;;  %v2621_v46 = vld [vmem:[#allocation5 + $0x218] ss:$24 sps:$4 sm:$0xff]  }
  0x6f   :  { %v2624_v48 = vld [vmem:[#allocation5 + $0x220] ss:$24 sps:$4 sm:$0xff]  }
  0x70   :  { %886 = vmatmul.mubr.bf16.gmra.mrb[4].mxu0 %v2805_v47  ;;  %966 = vmatmul.mubr.bf16.gmra.mrb[4].mxu1 %v2809_v49 }
  0x71   :  { %1041 = vmatpush1.bf16.msra.mxu1 %v2543_v50  ;;  %1234 = vmatpush1.bf16.msra.mxu0 %v2546_v51  ;;  %v2635_v50 = vld [vmem:[#allocation5 + $0x24c] ss:$24 sps:$4 sm:$0xff]  }
  0x72   :  { %1042 = vmatprep.subr.bf16.mxu1 %v2551_v52  ;;  %1235 = vmatprep.subr.bf16.mxu0 %v2554_v53  ;;  %v2638_v51 = vld [vmem:[#allocation5 + $0x254] ss:$24 sps:$4 sm:$0xff]   ;;  %v2867_v52 = vld [vmem:[#allocation2 + $0x60] ss:$8 sps:$4 sm:$0xff]  }
  0x73   :  { %895 = vmatprep.mubr.bf16.mxu0 %v2811_v54  ;;  %975 = vmatprep.mubr.bf16.mxu1 %v2813_v55  ;;  %v2869_v53 = vld [vmem:[#allocation2 + $0xe0] ss:$8 sps:$4 sm:$0xff]  }
  0x75   :  { %1043 = vmatpush1.bf16.msra.mxu1 %v2549_v56  ;;  %1236 = vmatpush1.bf16.msra.mxu0 %v2552_v57  ;;  %v2633_v56 = vld [vmem:[#allocation5 + $0x248] ss:$24 sps:$4 sm:$0xff]  }
  0x76   :  { %1044 = vmatprep.subr.bf16.mxu1 %v2563_v58  ;;  %1237 = vmatprep.subr.bf16.mxu0 %v2566_v60  ;;  %v2636_v57 = vld [vmem:[#allocation5 + $0x250] ss:$24 sps:$4 sm:$0xff]   ;;  %v2641_v58 = vld [vmem:[#allocation5 + $0x27c] ss:$24 sps:$4 sm:$0xff]  }
  0x77   :  { %v2644_v60 = vld [vmem:[#allocation5 + $0x284] ss:$24 sps:$4 sm:$0xff]  }
  0x78   :  { %896 = vmatmul.mubr.bf16.gmra.mrb[8].mxu0 %v2817_v59  ;;  %976 = vmatmul.mubr.bf16.gmra.mrb[8].mxu1 %v2821_v61 }
  0x79   :  { %1045 = vmatpush1.bf16.msra.mxu1 %v2561_v62  ;;  %1238 = vmatpush1.bf16.msra.mxu0 %v2564_v63  ;;  %v2645_v62 = vld [vmem:[#allocation2 + $0x74] ss:$8 sps:$4 sm:$0xff]  }
  0x7a   :  { %1046 = vmatprep.subr.bf16.mxu1 %v2569_v0  ;;  %1239 = vmatprep.subr.bf16.mxu0 %v2572_v1  ;;  %v2871_v63 = vld [vmem:[#allocation2 + $0xf4] ss:$8 sps:$4 sm:$0xff]   ;;  %v2639_v0 = vld [vmem:[#allocation5 + $0x278] ss:$24 sps:$4 sm:$0xff]  }
  0x7b   :  { %905 = vmatprep.mubr.bf16.mxu0 %v2823_v2  ;;  %985 = vmatprep.mubr.bf16.mxu1 %v2825_v3  ;;  %v2642_v1 = vld [vmem:[#allocation5 + $0x280] ss:$24 sps:$4 sm:$0xff]  }
  0x7d   :  { %1047 = vmatpush1.bf16.msra.mxu1 %v2567_v4  ;;  %1240 = vmatpush1.bf16.msra.mxu0 %v2570_v5  ;;  %v2653_v4 = vld [vmem:[#allocation5 + $0x2ac] ss:$24 sps:$4 sm:$0xff]  }
  0x7e   :  { %1048 = vmatprep.subr.bf16.mxu1 %v2581_v6  ;;  %1241 = vmatprep.subr.bf16.mxu0 %v2584_v7  ;;  %v2656_v5 = vld [vmem:[#allocation5 + $0x2b4] ss:$24 sps:$4 sm:$0xff]   ;;  %v2649_v6 = vld [vmem:[#allocation2 + $0x70] ss:$8 sps:$4 sm:$0xff]  }
  0x7f   :  { %v2876_v7 = vld [vmem:[#allocation2 + $0xf0] ss:$8 sps:$4 sm:$0xff]  }
  0x80   :  { %906 = vmatmul.mubr.bf16.gmra.mrb[12].mxu0 %v2831_v8  ;;  %986 = vmatmul.mubr.bf16.gmra.mrb[12].mxu1 %v2833_v9 }
  0x81   :  { %1049 = vmatpush1.bf16.msra.mxu1 %v2579_v10  ;;  %1242 = vmatpush1.bf16.msra.mxu0 %v2582_v11  ;;  %v2651_v10 = vld [vmem:[#allocation5 + $0x2a8] ss:$24 sps:$4 sm:$0xff]  }
  0x82   :  { %1050 = vmatprep.subr.bf16.mxu1 %v2587_v12  ;;  %1243 = vmatprep.subr.bf16.mxu0 %v2590_v14  ;;  %v2654_v11 = vld [vmem:[#allocation5 + $0x2b0] ss:$24 sps:$4 sm:$0xff]   ;;  %v2659_v12 = vld [vmem:[#allocation5 + $0x2dc] ss:$24 sps:$4 sm:$0xff]  }
  0x83   :  { %915 = vmatprep.mubr.bf16.mxu0 %v2835_v16  ;;  %995 = vmatprep.mubr.bf16.mxu1 %v2837_v17  ;;  %v2662_v14 = vld [vmem:[#allocation5 + $0x2e4] ss:$24 sps:$4 sm:$0xff]  }
  0x85   :  { %1051 = vmatpush1.bf16.msra.mxu1 %v2585_v18  ;;  %1244 = vmatpush1.bf16.msra.mxu0 %v2588_v19  ;;  %v2657_v18 = vld [vmem:[#allocation5 + $0x2d8] ss:$24 sps:$4 sm:$0xff]  }
  0x86   :  { %1052 = vmatprep.subr.bf16.mxu1 %v2599_v20  ;;  %1245 = vmatprep.subr.bf16.mxu0 %v2602_v21  ;;  %v2660_v19 = vld [vmem:[#allocation5 + $0x2e0] ss:$24 sps:$4 sm:$0xff]  }
  0x88   :  { %916 = vmatmul.mubr.bf16.gmra.mrb[16].mxu0 %v2843_v22  ;;  %996 = vmatmul.mubr.bf16.gmra.mrb[16].mxu1 %v2845_v23 }
  0x89   :  { %1053 = vmatpush1.bf16.msra.mxu1 %v2597_v24  ;;  %1246 = vmatpush1.bf16.msra.mxu0 %v2600_v25 }
  0x8a   :  { %1054 = vmatprep.subr.bf16.mxu1 %v2605_v26  ;;  %1247 = vmatprep.subr.bf16.mxu0 %v2608_v27 }
  0x8b   :  { %925 = vmatprep.mubr.bf16.mxu0 %v2847_v28  ;;  %1005 = vmatprep.mubr.bf16.mxu1 %v2849_v29 }
  0x8d   :  { %1055 = vmatpush1.bf16.msra.mxu1 %v2603_v30  ;;  %1248 = vmatpush1.bf16.msra.mxu0 %v2606_v31 }
  0x8e   :  { %1056 = vmatprep.subr.bf16.mxu1 %v2617_v32  ;;  %1249 = vmatprep.subr.bf16.mxu0 %v2620_v33 }
  0x90   :  { %926 = vmatmul.mubr.bf16.gmra.mrb[20].mxu0 %v2855_v34  ;;  %1006 = vmatmul.mubr.bf16.gmra.mrb[20].mxu1 %v2857_v36 }
  0x91   :  { %1057 = vmatpush1.bf16.msra.mxu1 %v2615_v38  ;;  %1250 = vmatpush1.bf16.msra.mxu0 %v2618_v39 }
  0x92   :  { %1058 = vmatprep.subr.bf16.mxu1 %v2623_v40  ;;  %1251 = vmatprep.subr.bf16.mxu0 %v2626_v41 }
  0x93   :  { %935 = vmatprep.mubr.bf16.mxu0 %v2859_v44  ;;  %1015 = vmatprep.mubr.bf16.mxu1 %v2861_v45 }
  0x95   :  { %1059 = vmatpush1.bf16.msra.mxu1 %v2621_v46  ;;  %1252 = vmatpush1.bf16.msra.mxu0 %v2624_v48 }
  0x96   :  { %1060 = vmatprep.subr.bf16.mxu1 %v2635_v50  ;;  %1253 = vmatprep.subr.bf16.mxu0 %v2638_v51 }
  0x98   :  { %936 = vmatmul.mubr.bf16.gmra.mrb[24].mxu0 %v2867_v52  ;;  %1016 = vmatmul.mubr.bf16.gmra.mrb[24].mxu1 %v2869_v53 }
  0x99   :  { %1061 = vmatpush1.bf16.msra.mxu1 %v2633_v56  ;;  %1254 = vmatpush1.bf16.msra.mxu0 %v2636_v57 }
  0x9a   :  { %1062 = vmatprep.subr.bf16.mxu1 %v2641_v58  ;;  %1255 = vmatprep.subr.bf16.mxu0 %v2644_v60 }
  0x9b   :  { %945 = vmatprep.mubr.bf16.mxu0 %v2645_v62  ;;  %1025 = vmatprep.mubr.bf16.mxu1 %v2871_v63 }
  0x9d   :  { %1063 = vmatpush1.bf16.msra.mxu1 %v2639_v0  ;;  %1256 = vmatpush1.bf16.msra.mxu0 %v2642_v1 }
  0x9e   :  { %1064 = vmatprep.subr.bf16.mxu1 %v2653_v4  ;;  %1257 = vmatprep.subr.bf16.mxu0 %v2656_v5 }
  0xa0   :  { %946 = vmatmul.mubr.bf16.gmra.mrb[28].mxu0 %v2649_v6  ;;  %1026 = vmatmul.mubr.bf16.gmra.mrb[28].mxu1 %v2876_v7 }
  0xa1   :  { %1065 = vmatpush1.bf16.msra.mxu1 %v2651_v10  ;;  %1258 = vmatpush1.bf16.msra.mxu0 %v2654_v11 }
  0xa2   :  { %1066 = vmatprep.subr.bf16.mxu1 %v2659_v12  ;;  %1259 = vmatprep.subr.bf16.mxu0 %v2662_v14 }
  0xa3   :  { %1068 = vmatprep.mubr.bf16.mxu1 %v2789_v13  ;;  %1261 = vmatprep.mubr.bf16.mxu0 %v2789_v13  ;;  %v173_v13 = vlaneseq }
  0xa5   :  { %1067 = vmatpush1.bf16.msra.mxu1 %v2657_v18  ;;  %1260 = vmatpush1.bf16.msra.mxu0 %v2660_v19 }
  0xa8   :  { %1069 = vmatmul.mubr.bf16.vlgmr.msra.gmra.mrb[32].mxu1 %v2795_v35  ;;  %1262 = vmatmul.mubr.bf16.vlgmr.msra.gmra.mrb[32].mxu0 %v2795_v35  ;;  %v174_v35 = vshrl.u32 %v173_v13, 7 }
  0xa9   :  { %1078 = vmatprep.mubr.bf16.mxu1 %v2799_v42  ;;  %1271 = vmatprep.mubr.bf16.mxu0 %v2799_v42  ;;  %v171_v42 = vld [vmem:[%s3163_s2] sm:$0x3f]  ;;  %s2741_s2 = smov [#allocation7]  }
  0xaa   :  { %s2099_s13 = sshll.u32 %s2741_s2, 4  ;;  %s2100_s13 = int_to_ptr.vmem [resolvable:$true] %s2099_s13 }
  0xab   :  { %s2707_s14 = scalar_lea.vmem %s2100_s13, 12288  ;;  %p2712_p3 = scmp.lt.s32.totalorder %s2100_s13, %s2100_s13 }
  0xac   :  { %p2708_p2 = scmp.ne.s32.totalorder %s2100_s13, %s2707_s14  ;;  %p2713_p4 = scmp.lt.s32.totalorder %s2707_s14, %s2707_s14 }
  0xae   :  { %p2714_p5 = por %p2713_p4, %p2712_p3 }
  0xb0   :  { %1079 = vmatmul.mubr.bf16.gmra.mrb[36].mxu1 %v2805_v47  ;;  %1272 = vmatmul.mubr.bf16.gmra.mrb[36].mxu0 %v2805_v47  ;;  %v195_v47 = vsub.s32 5, %v174_v35  ;;  %p2715_p6 = pnand %p2714_p5, %p2708_p2 }
  0xb1   :  { %1088 = vmatprep.mubr.bf16.mxu1 %v2811_v54  ;;  %1281 = vmatprep.mubr.bf16.mxu0 %v2811_v54 }
  0xb8   :  { %1089 = vmatmul.mubr.bf16.gmra.mrb[40].mxu1 %v2817_v59  ;;  %1282 = vmatmul.mubr.bf16.gmra.mrb[40].mxu0 %v2817_v59  ;;  %v2930_v59 = vrot.slane %v171_v42, %v195_v47 }
  0xb9   :  { %1098 = vmatprep.mubr.bf16.mxu1 %v2823_v2  ;;  %1291 = vmatprep.mubr.bf16.mxu0 %v2823_v2  ;;  %v179_v2 = vsub.s32 1, %v174_v35 }
  0xc0   :  { %1099 = vmatmul.mubr.bf16.gmra.mrb[44].mxu1 %v2831_v8  ;;  %1292 = vmatmul.mubr.bf16.gmra.mrb[44].mxu0 %v2831_v8  ;;  %v2952_v8 = vrot.slane %v171_v42, %v179_v2 }
  0xc1   :  { %1108 = vmatprep.mubr.bf16.mxu1 %v2835_v16  ;;  %1301 = vmatprep.mubr.bf16.mxu0 %v2835_v16 }
  0xc8   :  { %1109 = vmatmul.mubr.bf16.gmra.mrb[48].mxu1 %v2843_v22  ;;  %1302 = vmatmul.mubr.bf16.gmra.mrb[48].mxu0 %v2843_v22 }
  0xc9   :  { %1118 = vmatprep.mubr.bf16.mxu1 %v2847_v28  ;;  %1311 = vmatprep.mubr.bf16.mxu0 %v2847_v28 }
  0xd0   :  { %1119 = vmatmul.mubr.bf16.gmra.mrb[52].mxu1 %v2855_v34  ;;  %1312 = vmatmul.mubr.bf16.gmra.mrb[52].mxu0 %v2855_v34 }
  0xd1   :  { %1128 = vmatprep.mubr.bf16.mxu1 %v2859_v44  ;;  %1321 = vmatprep.mubr.bf16.mxu0 %v2859_v44 }
  0xd8   :  { %1129 = vmatmul.mubr.bf16.gmra.mrb[56].mxu1 %v2867_v52  ;;  %1322 = vmatmul.mubr.bf16.gmra.mrb[56].mxu0 %v2867_v52 }
  0xd9   :  { %1138 = vmatprep.mubr.bf16.mxu1 %v2645_v62  ;;  %1331 = vmatprep.mubr.bf16.mxu0 %v2645_v62 }
  0xe0   :  { %1139 = vmatmul.mubr.bf16.gmra.mrb[60].mxu1 %v2649_v6  ;;  %1332 = vmatmul.mubr.bf16.gmra.mrb[60].mxu0 %v2649_v6 }
  0xe1   :  { %1148 = vmatprep.mubr.bf16.mxu1 %v2791_v15  ;;  %1341 = vmatprep.mubr.bf16.mxu0 %v2791_v15  ;;  %v183_v15 = vsub.s32 2, %v174_v35 }
  0xe8   :  { %1149 = vmatmul.mubr.bf16.gmra.mrb[64].mxu1 %v2797_v37  ;;  %1342 = vmatmul.mubr.bf16.gmra.mrb[64].mxu0 %v2797_v37  ;;  %v191_v37 = vsub.s32 4, %v174_v35 }
  0xe9   :  { %1158 = vmatprep.mubr.bf16.mxu1 %v2801_v43  ;;  %1351 = vmatprep.mubr.bf16.mxu0 %v2801_v43  ;;  %v187_v43 = vsub.s32 3, %v174_v35 }
  0xea   :  { %v2926_v54 = vrot.slane %v171_v42, %v191_v37 }
  0xf0   :  { %1159 = vmatmul.mubr.bf16.gmra.mrb[68].mxu1 %v2809_v49  ;;  %1352 = vmatmul.mubr.bf16.gmra.mrb[68].mxu0 %v2809_v49  ;;  %v2924_v49 = vrot.slane %v171_v42, %v183_v15 }
  0xf1   :  { %1168 = vmatprep.mubr.bf16.mxu1 %v2813_v55  ;;  %1361 = vmatprep.mubr.bf16.mxu0 %v2813_v55  ;;  %v2928_v55 = vrot.slane %v171_v42, %v187_v43 }
  0xf8   :  { %1169 = vmatmul.mubr.bf16.gmra.mrb[72].mxu1 %v2821_v61  ;;  %1362 = vmatmul.mubr.bf16.gmra.mrb[72].mxu0 %v2821_v61  ;;  %v175_v61 = vsub.s32 0, %v174_v35 }
  0xf9   :  { %1178 = vmatprep.mubr.bf16.mxu1 %v2825_v3  ;;  %1371 = vmatprep.mubr.bf16.mxu0 %v2825_v3 }
  0xfa   :  { %v2950_v3 = vrot.slane %v171_v42, %v175_v61 }
 0x100   :  { %1179 = vmatmul.mubr.bf16.gmra.mrb[76].mxu1 %v2833_v9  ;;  %1372 = vmatmul.mubr.bf16.gmra.mrb[76].mxu0 %v2833_v9 }
 0x101   :  { %1188 = vmatprep.mubr.bf16.mxu1 %v2837_v17  ;;  %1381 = vmatprep.mubr.bf16.mxu0 %v2837_v17 }
 0x108   :  { %1189 = vmatmul.mubr.bf16.gmra.mrb[80].mxu1 %v2845_v23  ;;  %1382 = vmatmul.mubr.bf16.gmra.mrb[80].mxu0 %v2845_v23 }
 0x109   :  { %1198 = vmatprep.mubr.bf16.mxu1 %v2849_v29  ;;  %1391 = vmatprep.mubr.bf16.mxu0 %v2849_v29 }
 0x110   :  { %1199 = vmatmul.mubr.bf16.gmra.mrb[84].mxu1 %v2857_v36  ;;  %1392 = vmatmul.mubr.bf16.gmra.mrb[84].mxu0 %v2857_v36 }
 0x111   :  { %1208 = vmatprep.mubr.bf16.mxu1 %v2861_v45  ;;  %1401 = vmatprep.mubr.bf16.mxu0 %v2861_v45 }
 0x118   :  { %1209 = vmatmul.mubr.bf16.gmra.mrb[88].mxu1 %v2869_v53  ;;  %1402 = vmatmul.mubr.bf16.gmra.mrb[88].mxu0 %v2869_v53 }
 0x119   :  { %1218 = vmatprep.mubr.bf16.mxu1 %v2871_v63  ;;  %1411 = vmatprep.mubr.bf16.mxu0 %v2871_v63 }
 0x120   :  { %1219 = vmatmul.mubr.bf16.gmra.mrb[92].mxu1 %v2876_v7  ;;  %1412 = vmatmul.mubr.bf16.gmra.mrb[92].mxu0 %v2876_v7 }
 0x13b   :  { %v877_v9 = vpop.f32.mrb[0].mxu0  ;;  %v957_v16 = vpop.f32.mrb[0].mxu1 }
 0x13c   :  { %v878_v17 = vadd.f32 %v877_v9, %v2950_v3  ;;  %v958_v20 = vadd.f32 %v957_v16, %v2950_v3  ;;  %v879_v21 = vpop.f32.mrb[1].mxu0  ;;  %v959_v22 = vpop.f32.mrb[1].mxu1 }
 0x13d   :  { %v880_v23 = vadd.f32 %v879_v21, %v2952_v8  ;;  %v960_v24 = vadd.f32 %v959_v22, %v2952_v8  ;;  %v881_v25 = vpop.f32.mrb[2].mxu0  ;;  %v961_v26 = vpop.f32.mrb[2].mxu1 }
 0x13e   :  { %v882_v27 = vadd.f32 %v881_v25, %v2950_v3  ;;  %v962_v28 = vadd.f32 %v961_v26, %v2950_v3  ;;  %v883_v29 = vpop.f32.mrb[3].mxu0  ;;  %v963_v30 = vpop.f32.mrb[3].mxu1 }
 0x13f   :  { %v2336_v31 = vpack.c.bf16 %v880_v23, %v878_v17  ;;  %v2384_v32 = vpack.c.bf16 %v960_v24, %v958_v20  ;;  %v884_v33 = vadd.f32 %v883_v29, %v2952_v8  ;;  %v964_v34 = vadd.f32 %v963_v30, %v2952_v8 }
 0x141   :  { %1998 = vst [vmem:[#allocation7] sm:$0xff] %v2336_v31  ;;  %2046 = vst [vmem:[#allocation7 + $0x180] sm:$0xff] %v2384_v32  ;;  %v2339_v36 = vpack.c.bf16 %v884_v33, %v882_v27  ;;  %v2387_v38 = vpack.c.bf16 %v964_v34, %v962_v28 }
 0x143   :  { %2001 = vst [vmem:[#allocation7 + $0x18] sm:$0xff] %v2339_v36  ;;  %2049 = vst [vmem:[#allocation7 + $0x198] sm:$0xff] %v2387_v38  ;;  %v887_v39 = vpop.f32.mrb[4].mxu0  ;;  %v967_v40 = vpop.f32.mrb[4].mxu1 }
 0x144   :  { %v888_v41 = vadd.f32 %v887_v39, %v2950_v3  ;;  %v968_v44 = vadd.f32 %v967_v40, %v2950_v3  ;;  %v889_v45 = vpop.f32.mrb[5].mxu0  ;;  %v969_v46 = vpop.f32.mrb[5].mxu1 }
 0x145   :  { %v890_v48 = vadd.f32 %v889_v45, %v2952_v8  ;;  %v970_v50 = vadd.f32 %v969_v46, %v2952_v8  ;;  %v891_v51 = vpop.f32.mrb[6].mxu0  ;;  %v971_v52 = vpop.f32.mrb[6].mxu1 }
 0x146   :  { %v892_v53 = vadd.f32 %v891_v51, %v2950_v3  ;;  %v972_v56 = vadd.f32 %v971_v52, %v2950_v3  ;;  %v893_v57 = vpop.f32.mrb[7].mxu0  ;;  %v973_v58 = vpop.f32.mrb[7].mxu1 }
 0x147   :  { %v2342_v60 = vpack.c.bf16 %v890_v48, %v888_v41  ;;  %v2390_v62 = vpack.c.bf16 %v970_v50, %v968_v44  ;;  %v894_v63 = vadd.f32 %v893_v57, %v2952_v8  ;;  %v974_v0 = vadd.f32 %v973_v58, %v2952_v8 }
 0x149   :  { %2004 = vst [vmem:[#allocation7 + $0x30] sm:$0xff] %v2342_v60  ;;  %2052 = vst [vmem:[#allocation7 + $0x1b0] sm:$0xff] %v2390_v62  ;;  %v2345_v1 = vpack.c.bf16 %v894_v63, %v892_v53  ;;  %v2393_v4 = vpack.c.bf16 %v974_v0, %v972_v56 }
 0x14b   :  { %2007 = vst [vmem:[#allocation7 + $0x48] sm:$0xff] %v2345_v1  ;;  %2055 = vst [vmem:[#allocation7 + $0x1c8] sm:$0xff] %v2393_v4  ;;  %v897_v5 = vpop.f32.mrb[8].mxu0  ;;  %v977_v6 = vpop.f32.mrb[8].mxu1 }
 0x14c   :  { %v898_v7 = vadd.f32 %v897_v5, %v2950_v3  ;;  %v978_v10 = vadd.f32 %v977_v6, %v2950_v3  ;;  %v899_v11 = vpop.f32.mrb[9].mxu0  ;;  %v979_v12 = vpop.f32.mrb[9].mxu1 }
 0x14d   :  { %v900_v14 = vadd.f32 %v899_v11, %v2952_v8  ;;  %v980_v18 = vadd.f32 %v979_v12, %v2952_v8  ;;  %v901_v19 = vpop.f32.mrb[10].mxu0  ;;  %v981_v13 = vpop.f32.mrb[10].mxu1 }
 0x14e   :  { %v902_v35 = vadd.f32 %v901_v19, %v2950_v3  ;;  %v982_v15 = vadd.f32 %v981_v13, %v2950_v3  ;;  %v903_v37 = vpop.f32.mrb[11].mxu0  ;;  %v983_v42 = vpop.f32.mrb[11].mxu1 }
 0x14f   :  { %v2348_v43 = vpack.c.bf16 %v900_v14, %v898_v7  ;;  %v2396_v47 = vpack.c.bf16 %v980_v18, %v978_v10  ;;  %v904_v61 = vadd.f32 %v903_v37, %v2952_v8  ;;  %v984_v2 = vadd.f32 %v983_v42, %v2952_v8 }
 0x151   :  { %2010 = vst [vmem:[#allocation7 + $0x60] sm:$0xff] %v2348_v43  ;;  %2058 = vst [vmem:[#allocation7 + $0x1e0] sm:$0xff] %v2396_v47  ;;  %v2351_v9 = vpack.c.bf16 %v904_v61, %v902_v35  ;;  %v2399_v16 = vpack.c.bf16 %v984_v2, %v982_v15 }
 0x153   :  { %2013 = vst [vmem:[#allocation7 + $0x78] sm:$0xff] %v2351_v9  ;;  %2061 = vst [vmem:[#allocation7 + $0x1f8] sm:$0xff] %v2399_v16  ;;  %v907_v17 = vpop.f32.mrb[12].mxu0  ;;  %v987_v20 = vpop.f32.mrb[12].mxu1 }
 0x154   :  { %v908_v21 = vadd.f32 %v907_v17, %v2950_v3  ;;  %v988_v22 = vadd.f32 %v987_v20, %v2950_v3  ;;  %v909_v23 = vpop.f32.mrb[13].mxu0  ;;  %v989_v24 = vpop.f32.mrb[13].mxu1 }
 0x155   :  { %v910_v25 = vadd.f32 %v909_v23, %v2952_v8  ;;  %v990_v26 = vadd.f32 %v989_v24, %v2952_v8  ;;  %v911_v27 = vpop.f32.mrb[14].mxu0  ;;  %v991_v28 = vpop.f32.mrb[14].mxu1 }
 0x156   :  { %v912_v29 = vadd.f32 %v911_v27, %v2950_v3  ;;  %v992_v30 = vadd.f32 %v991_v28, %v2950_v3  ;;  %v913_v31 = vpop.f32.mrb[15].mxu0  ;;  %v993_v32 = vpop.f32.mrb[15].mxu1 }
 0x157   :  { %v2354_v33 = vpack.c.bf16 %v910_v25, %v908_v21  ;;  %v2402_v34 = vpack.c.bf16 %v990_v26, %v988_v22  ;;  %v914_v36 = vadd.f32 %v913_v31, %v2952_v8  ;;  %v994_v38 = vadd.f32 %v993_v32, %v2952_v8 }
 0x159   :  { %2016 = vst [vmem:[#allocation7 + $0x90] sm:$0xff] %v2354_v33  ;;  %2064 = vst [vmem:[#allocation7 + $0x210] sm:$0xff] %v2402_v34  ;;  %v2357_v39 = vpack.c.bf16 %v914_v36, %v912_v29  ;;  %v2405_v40 = vpack.c.bf16 %v994_v38, %v992_v30 }
 0x15b   :  { %2019 = vst [vmem:[#allocation7 + $0xa8] sm:$0xff] %v2357_v39  ;;  %2067 = vst [vmem:[#allocation7 + $0x228] sm:$0xff] %v2405_v40  ;;  %v917_v41 = vpop.f32.mrb[16].mxu0  ;;  %v997_v44 = vpop.f32.mrb[16].mxu1 }
 0x15c   :  { %v918_v45 = vadd.f32 %v917_v41, %v2950_v3  ;;  %v998_v46 = vadd.f32 %v997_v44, %v2950_v3  ;;  %v919_v48 = vpop.f32.mrb[17].mxu0  ;;  %v999_v50 = vpop.f32.mrb[17].mxu1 }
 0x15d   :  { %v920_v51 = vadd.f32 %v919_v48, %v2952_v8  ;;  %v1000_v52 = vadd.f32 %v999_v50, %v2952_v8  ;;  %v921_v53 = vpop.f32.mrb[18].mxu0  ;;  %v1001_v56 = vpop.f32.mrb[18].mxu1 }
 0x15e   :  { %v922_v57 = vadd.f32 %v921_v53, %v2950_v3  ;;  %v1002_v58 = vadd.f32 %v1001_v56, %v2950_v3  ;;  %v923_v60 = vpop.f32.mrb[19].mxu0  ;;  %v1003_v62 = vpop.f32.mrb[19].mxu1 }
 0x15f   :  { %v2360_v63 = vpack.c.bf16 %v920_v51, %v918_v45  ;;  %v2408_v0 = vpack.c.bf16 %v1000_v52, %v998_v46  ;;  %v924_v1 = vadd.f32 %v923_v60, %v2952_v8  ;;  %v1004_v4 = vadd.f32 %v1003_v62, %v2952_v8 }
 0x161   :  { %2022 = vst [vmem:[#allocation7 + $0xc0] sm:$0xff] %v2360_v63  ;;  %2070 = vst [vmem:[#allocation7 + $0x240] sm:$0xff] %v2408_v0  ;;  %v2363_v5 = vpack.c.bf16 %v924_v1, %v922_v57  ;;  %v2411_v6 = vpack.c.bf16 %v1004_v4, %v1002_v58 }
 0x163   :  { %2025 = vst [vmem:[#allocation7 + $0xd8] sm:$0xff] %v2363_v5  ;;  %2073 = vst [vmem:[#allocation7 + $0x258] sm:$0xff] %v2411_v6  ;;  %v927_v7 = vpop.f32.mrb[20].mxu0  ;;  %v1007_v10 = vpop.f32.mrb[20].mxu1 }
 0x164   :  { %v928_v11 = vadd.f32 %v927_v7, %v2950_v3  ;;  %v1008_v12 = vadd.f32 %v1007_v10, %v2950_v3  ;;  %v929_v14 = vpop.f32.mrb[21].mxu0  ;;  %v1009_v18 = vpop.f32.mrb[21].mxu1 }
 0x165   :  { %v930_v19 = vadd.f32 %v929_v14, %v2952_v8  ;;  %v1010_v13 = vadd.f32 %v1009_v18, %v2952_v8  ;;  %v931_v35 = vpop.f32.mrb[22].mxu0  ;;  %v1011_v15 = vpop.f32.mrb[22].mxu1 }
 0x166   :  { %v932_v37 = vadd.f32 %v931_v35, %v2950_v3  ;;  %v1012_v42 = vadd.f32 %v1011_v15, %v2950_v3  ;;  %v933_v43 = vpop.f32.mrb[23].mxu0  ;;  %v1013_v47 = vpop.f32.mrb[23].mxu1 }
 0x167   :  { %v2366_v61 = vpack.c.bf16 %v930_v19, %v928_v11  ;;  %v2414_v2 = vpack.c.bf16 %v1010_v13, %v1008_v12  ;;  %v934_v9 = vadd.f32 %v933_v43, %v2952_v8  ;;  %v1014_v16 = vadd.f32 %v1013_v47, %v2952_v8 }
 0x169   :  { %2028 = vst [vmem:[#allocation7 + $0xf0] sm:$0xff] %v2366_v61  ;;  %2076 = vst [vmem:[#allocation7 + $0x270] sm:$0xff] %v2414_v2  ;;  %v2369_v17 = vpack.c.bf16 %v934_v9, %v932_v37  ;;  %v2417_v20 = vpack.c.bf16 %v1014_v16, %v1012_v42 }
 0x16b   :  { %2031 = vst [vmem:[#allocation7 + $0x108] sm:$0xff] %v2369_v17  ;;  %2079 = vst [vmem:[#allocation7 + $0x288] sm:$0xff] %v2417_v20  ;;  %v937_v21 = vpop.f32.mrb[24].mxu0  ;;  %v1017_v22 = vpop.f32.mrb[24].mxu1 }
 0x16c   :  { %v938_v23 = vadd.f32 %v937_v21, %v2950_v3  ;;  %v1018_v24 = vadd.f32 %v1017_v22, %v2950_v3  ;;  %v939_v25 = vpop.f32.mrb[25].mxu0  ;;  %v1019_v26 = vpop.f32.mrb[25].mxu1 }
 0x16d   :  { %v940_v27 = vadd.f32 %v939_v25, %v2952_v8  ;;  %v1020_v28 = vadd.f32 %v1019_v26, %v2952_v8  ;;  %v941_v29 = vpop.f32.mrb[26].mxu0  ;;  %v1021_v30 = vpop.f32.mrb[26].mxu1 }
 0x16e   :  { %v942_v31 = vadd.f32 %v941_v29, %v2950_v3  ;;  %v1022_v32 = vadd.f32 %v1021_v30, %v2950_v3  ;;  %v943_v33 = vpop.f32.mrb[27].mxu0  ;;  %v1023_v34 = vpop.f32.mrb[27].mxu1 }
 0x16f   :  { %v2372_v36 = vpack.c.bf16 %v940_v27, %v938_v23  ;;  %v2420_v38 = vpack.c.bf16 %v1020_v28, %v1018_v24  ;;  %v944_v39 = vadd.f32 %v943_v33, %v2952_v8  ;;  %v1024_v40 = vadd.f32 %v1023_v34, %v2952_v8 }
 0x171   :  { %2034 = vst [vmem:[#allocation7 + $0x120] sm:$0xff] %v2372_v36  ;;  %2082 = vst [vmem:[#allocation7 + $0x2a0] sm:$0xff] %v2420_v38  ;;  %v2375_v41 = vpack.c.bf16 %v944_v39, %v942_v31  ;;  %v2423_v44 = vpack.c.bf16 %v1024_v40, %v1022_v32 }
 0x173   :  { %2037 = vst [vmem:[#allocation7 + $0x138] sm:$0xff] %v2375_v41  ;;  %2085 = vst [vmem:[#allocation7 + $0x2b8] sm:$0xff] %v2423_v44  ;;  %v947_v45 = vpop.f32.mrb[28].mxu0  ;;  %v1027_v46 = vpop.f32.mrb[28].mxu1 }
 0x174   :  { %v948_v48 = vadd.f32 %v947_v45, %v2950_v3  ;;  %v1028_v50 = vadd.f32 %v1027_v46, %v2950_v3  ;;  %v949_v51 = vpop.f32.mrb[29].mxu0  ;;  %v1029_v52 = vpop.f32.mrb[29].mxu1 }
 0x175   :  { %v950_v53 = vadd.f32 %v949_v51, %v2952_v8  ;;  %v1030_v56 = vadd.f32 %v1029_v52, %v2952_v8  ;;  %v951_v57 = vpop.f32.mrb[30].mxu0  ;;  %v1031_v58 = vpop.f32.mrb[30].mxu1 }
 0x176   :  { %v952_v60 = vadd.f32 %v951_v57, %v2950_v3  ;;  %v1032_v62 = vadd.f32 %v1031_v58, %v2950_v3  ;;  %v953_v63 = vpop.f32.mrb[31].mxu0  ;;  %v1033_v0 = vpop.f32.mrb[31].mxu1 }
 0x177   :  { %v2378_v1 = vpack.c.bf16 %v950_v53, %v948_v48  ;;  %v2426_v4 = vpack.c.bf16 %v1030_v56, %v1028_v50  ;;  %v954_v5 = vadd.f32 %v953_v63, %v2952_v8  ;;  %v1034_v6 = vadd.f32 %v1033_v0, %v2952_v8 }
 0x179   :  { %2040 = vst [vmem:[#allocation7 + $0x150] sm:$0xff] %v2378_v1  ;;  %2088 = vst [vmem:[#allocation7 + $0x2d0] sm:$0xff] %v2426_v4  ;;  %v2381_v7 = vpack.c.bf16 %v954_v5, %v952_v60  ;;  %v2429_v10 = vpack.c.bf16 %v1034_v6, %v1032_v62 }
 0x17b   :  { %2043 = vst [vmem:[#allocation7 + $0x168] sm:$0xff] %v2381_v7  ;;  %2091 = vst [vmem:[#allocation7 + $0x2e8] sm:$0xff] %v2429_v10  ;;  %v1070_v11 = vpop.f32.mrb[32].mxu1  ;;  %v1263_v12 = vpop.f32.mrb[32].mxu0 }
 0x17c   :  { %v1071_v14 = vadd.f32 %v1070_v11, %v2924_v49  ;;  %v1264_v3 = vadd.f32 %v1263_v12, %v2926_v54  ;;  %v1072_v18 = vpop.f32.mrb[33].mxu1  ;;  %v1265_v19 = vpop.f32.mrb[33].mxu0 }
 0x17d   :  { %v1073_v13 = vadd.f32 %v1072_v18, %v2928_v55  ;;  %v1266_v35 = vadd.f32 %v1265_v19, %v2930_v59  ;;  %v1074_v15 = vpop.f32.mrb[34].mxu1  ;;  %v1267_v8 = vpop.f32.mrb[34].mxu0 }
 0x17e   :  { %v1075_v37 = vadd.f32 %v1074_v15, %v2924_v49  ;;  %v1268_v42 = vadd.f32 %v1267_v8, %v2926_v54  ;;  %v1076_v43 = vpop.f32.mrb[35].mxu1  ;;  %v1269_v47 = vpop.f32.mrb[35].mxu0 }
 0x17f   :  { %v2337_v61 = vpack.c.bf16 %v1073_v13, %v1071_v14  ;;  %v2338_v2 = vpack.c.bf16 %v1266_v35, %v1264_v3  ;;  %v1077_v9 = vadd.f32 %v1076_v43, %v2928_v55  ;;  %v1270_v16 = vadd.f32 %v1269_v47, %v2930_v59 }
 0x181   :  { %1999 = vst [vmem:[#allocation7 + $0x8] sm:$0xff] %v2337_v61  ;;  %2000 = vst [vmem:[#allocation7 + $0x10] sm:$0xff] %v2338_v2  ;;  %v2340_v17 = vpack.c.bf16 %v1077_v9, %v1075_v37  ;;  %v2341_v20 = vpack.c.bf16 %v1270_v16, %v1268_v42 }
 0x183   :  { %2002 = vst [vmem:[#allocation7 + $0x20] sm:$0xff] %v2340_v17  ;;  %2003 = vst [vmem:[#allocation7 + $0x28] sm:$0xff] %v2341_v20  ;;  %v1080_v21 = vpop.f32.mrb[36].mxu1  ;;  %v1273_v22 = vpop.f32.mrb[36].mxu0 }
 0x184   :  { %v1081_v23 = vadd.f32 %v1080_v21, %v2924_v49  ;;  %v1274_v24 = vadd.f32 %v1273_v22, %v2926_v54  ;;  %v1082_v25 = vpop.f32.mrb[37].mxu1  ;;  %v1275_v26 = vpop.f32.mrb[37].mxu0 }
 0x185   :  { %v1083_v27 = vadd.f32 %v1082_v25, %v2928_v55  ;;  %v1276_v28 = vadd.f32 %v1275_v26, %v2930_v59  ;;  %v1084_v29 = vpop.f32.mrb[38].mxu1  ;;  %v1277_v30 = vpop.f32.mrb[38].mxu0 }
 0x186   :  { %v1085_v31 = vadd.f32 %v1084_v29, %v2924_v49  ;;  %v1278_v32 = vadd.f32 %v1277_v30, %v2926_v54  ;;  %v1086_v33 = vpop.f32.mrb[39].mxu1  ;;  %v1279_v34 = vpop.f32.mrb[39].mxu0 }
 0x187   :  { %v2343_v36 = vpack.c.bf16 %v1083_v27, %v1081_v23  ;;  %v2344_v38 = vpack.c.bf16 %v1276_v28, %v1274_v24  ;;  %v1087_v39 = vadd.f32 %v1086_v33, %v2928_v55  ;;  %v1280_v40 = vadd.f32 %v1279_v34, %v2930_v59 }
 0x189   :  { %2005 = vst [vmem:[#allocation7 + $0x38] sm:$0xff] %v2343_v36  ;;  %2006 = vst [vmem:[#allocation7 + $0x40] sm:$0xff] %v2344_v38  ;;  %v2346_v41 = vpack.c.bf16 %v1087_v39, %v1085_v31  ;;  %v2347_v44 = vpack.c.bf16 %v1280_v40, %v1278_v32 }
 0x18b   :  { %2008 = vst [vmem:[#allocation7 + $0x50] sm:$0xff] %v2346_v41  ;;  %2009 = vst [vmem:[#allocation7 + $0x58] sm:$0xff] %v2347_v44  ;;  %v1090_v45 = vpop.f32.mrb[40].mxu1  ;;  %v1283_v46 = vpop.f32.mrb[40].mxu0 }
 0x18c   :  { %v1091_v48 = vadd.f32 %v1090_v45, %v2924_v49  ;;  %v1284_v50 = vadd.f32 %v1283_v46, %v2926_v54  ;;  %v1092_v51 = vpop.f32.mrb[41].mxu1  ;;  %v1285_v52 = vpop.f32.mrb[41].mxu0 }
 0x18d   :  { %v1093_v53 = vadd.f32 %v1092_v51, %v2928_v55  ;;  %v1286_v56 = vadd.f32 %v1285_v52, %v2930_v59  ;;  %v1094_v57 = vpop.f32.mrb[42].mxu1  ;;  %v1287_v58 = vpop.f32.mrb[42].mxu0 }
 0x18e   :  { %v1095_v60 = vadd.f32 %v1094_v57, %v2924_v49  ;;  %v1288_v62 = vadd.f32 %v1287_v58, %v2926_v54  ;;  %v1096_v63 = vpop.f32.mrb[43].mxu1  ;;  %v1289_v0 = vpop.f32.mrb[43].mxu0 }
 0x18f   :  { %v2349_v1 = vpack.c.bf16 %v1093_v53, %v1091_v48  ;;  %v2350_v4 = vpack.c.bf16 %v1286_v56, %v1284_v50  ;;  %v1097_v5 = vadd.f32 %v1096_v63, %v2928_v55  ;;  %v1290_v6 = vadd.f32 %v1289_v0, %v2930_v59 }
 0x191   :  { %2011 = vst [vmem:[#allocation7 + $0x68] sm:$0xff] %v2349_v1  ;;  %2012 = vst [vmem:[#allocation7 + $0x70] sm:$0xff] %v2350_v4  ;;  %v2352_v7 = vpack.c.bf16 %v1097_v5, %v1095_v60  ;;  %v2353_v10 = vpack.c.bf16 %v1290_v6, %v1288_v62 }
 0x193   :  { %2014 = vst [vmem:[#allocation7 + $0x80] sm:$0xff] %v2352_v7  ;;  %2015 = vst [vmem:[#allocation7 + $0x88] sm:$0xff] %v2353_v10  ;;  %v1100_v11 = vpop.f32.mrb[44].mxu1  ;;  %v1293_v12 = vpop.f32.mrb[44].mxu0 }
 0x194   :  { %v1101_v14 = vadd.f32 %v1100_v11, %v2924_v49  ;;  %v1294_v3 = vadd.f32 %v1293_v12, %v2926_v54  ;;  %v1102_v18 = vpop.f32.mrb[45].mxu1  ;;  %v1295_v19 = vpop.f32.mrb[45].mxu0 }
 0x195   :  { %v1103_v13 = vadd.f32 %v1102_v18, %v2928_v55  ;;  %v1296_v35 = vadd.f32 %v1295_v19, %v2930_v59  ;;  %v1104_v15 = vpop.f32.mrb[46].mxu1  ;;  %v1297_v8 = vpop.f32.mrb[46].mxu0 }
 0x196   :  { %v1105_v37 = vadd.f32 %v1104_v15, %v2924_v49  ;;  %v1298_v42 = vadd.f32 %v1297_v8, %v2926_v54  ;;  %v1106_v43 = vpop.f32.mrb[47].mxu1  ;;  %v1299_v47 = vpop.f32.mrb[47].mxu0 }
 0x197   :  { %v2355_v61 = vpack.c.bf16 %v1103_v13, %v1101_v14  ;;  %v2356_v2 = vpack.c.bf16 %v1296_v35, %v1294_v3  ;;  %v1107_v9 = vadd.f32 %v1106_v43, %v2928_v55  ;;  %v1300_v16 = vadd.f32 %v1299_v47, %v2930_v59 }
 0x199   :  { %2017 = vst [vmem:[#allocation7 + $0x98] sm:$0xff] %v2355_v61  ;;  %2018 = vst [vmem:[#allocation7 + $0xa0] sm:$0xff] %v2356_v2  ;;  %v2358_v17 = vpack.c.bf16 %v1107_v9, %v1105_v37  ;;  %v2359_v20 = vpack.c.bf16 %v1300_v16, %v1298_v42 }
 0x19b   :  { %2020 = vst [vmem:[#allocation7 + $0xb0] sm:$0xff] %v2358_v17  ;;  %2021 = vst [vmem:[#allocation7 + $0xb8] sm:$0xff] %v2359_v20  ;;  %v1110_v21 = vpop.f32.mrb[48].mxu1  ;;  %v1303_v22 = vpop.f32.mrb[48].mxu0 }
 0x19c   :  { %v1111_v23 = vadd.f32 %v1110_v21, %v2924_v49  ;;  %v1304_v24 = vadd.f32 %v1303_v22, %v2926_v54  ;;  %v1112_v25 = vpop.f32.mrb[49].mxu1  ;;  %v1305_v26 = vpop.f32.mrb[49].mxu0 }
 0x19d   :  { %v1113_v27 = vadd.f32 %v1112_v25, %v2928_v55  ;;  %v1306_v28 = vadd.f32 %v1305_v26, %v2930_v59  ;;  %v1114_v29 = vpop.f32.mrb[50].mxu1  ;;  %v1307_v30 = vpop.f32.mrb[50].mxu0 }
 0x19e   :  { %v1115_v31 = vadd.f32 %v1114_v29, %v2924_v49  ;;  %v1308_v32 = vadd.f32 %v1307_v30, %v2926_v54  ;;  %v1116_v33 = vpop.f32.mrb[51].mxu1  ;;  %v1309_v34 = vpop.f32.mrb[51].mxu0 }
 0x19f   :  { %v2361_v36 = vpack.c.bf16 %v1113_v27, %v1111_v23  ;;  %v2362_v38 = vpack.c.bf16 %v1306_v28, %v1304_v24  ;;  %v1117_v39 = vadd.f32 %v1116_v33, %v2928_v55  ;;  %v1310_v40 = vadd.f32 %v1309_v34, %v2930_v59 }
 0x1a1   :  { %2023 = vst [vmem:[#allocation7 + $0xc8] sm:$0xff] %v2361_v36  ;;  %2024 = vst [vmem:[#allocation7 + $0xd0] sm:$0xff] %v2362_v38  ;;  %v2364_v41 = vpack.c.bf16 %v1117_v39, %v1115_v31  ;;  %v2365_v44 = vpack.c.bf16 %v1310_v40, %v1308_v32 }
 0x1a3   :  { %2026 = vst [vmem:[#allocation7 + $0xe0] sm:$0xff] %v2364_v41  ;;  %2027 = vst [vmem:[#allocation7 + $0xe8] sm:$0xff] %v2365_v44  ;;  %v1120_v45 = vpop.f32.mrb[52].mxu1  ;;  %v1313_v46 = vpop.f32.mrb[52].mxu0 }
 0x1a4   :  { %v1121_v48 = vadd.f32 %v1120_v45, %v2924_v49  ;;  %v1314_v50 = vadd.f32 %v1313_v46, %v2926_v54  ;;  %v1122_v51 = vpop.f32.mrb[53].mxu1  ;;  %v1315_v52 = vpop.f32.mrb[53].mxu0 }
 0x1a5   :  { %v1123_v53 = vadd.f32 %v1122_v51, %v2928_v55  ;;  %v1316_v56 = vadd.f32 %v1315_v52, %v2930_v59  ;;  %v1124_v57 = vpop.f32.mrb[54].mxu1  ;;  %v1317_v58 = vpop.f32.mrb[54].mxu0 }
 0x1a6   :  { %v1125_v60 = vadd.f32 %v1124_v57, %v2924_v49  ;;  %v1318_v62 = vadd.f32 %v1317_v58, %v2926_v54  ;;  %v1126_v63 = vpop.f32.mrb[55].mxu1  ;;  %v1319_v0 = vpop.f32.mrb[55].mxu0 }
 0x1a7   :  { %v2367_v1 = vpack.c.bf16 %v1123_v53, %v1121_v48  ;;  %v2368_v4 = vpack.c.bf16 %v1316_v56, %v1314_v50  ;;  %v1127_v5 = vadd.f32 %v1126_v63, %v2928_v55  ;;  %v1320_v6 = vadd.f32 %v1319_v0, %v2930_v59 }
 0x1a9   :  { %2029 = vst [vmem:[#allocation7 + $0xf8] sm:$0xff] %v2367_v1  ;;  %2030 = vst [vmem:[#allocation7 + $0x100] sm:$0xff] %v2368_v4  ;;  %v2370_v7 = vpack.c.bf16 %v1127_v5, %v1125_v60  ;;  %v2371_v10 = vpack.c.bf16 %v1320_v6, %v1318_v62 }
 0x1ab   :  { %2032 = vst [vmem:[#allocation7 + $0x110] sm:$0xff] %v2370_v7  ;;  %2033 = vst [vmem:[#allocation7 + $0x118] sm:$0xff] %v2371_v10  ;;  %v1130_v11 = vpop.f32.mrb[56].mxu1  ;;  %v1323_v12 = vpop.f32.mrb[56].mxu0 }
 0x1ac   :  { %v1131_v14 = vadd.f32 %v1130_v11, %v2924_v49  ;;  %v1324_v3 = vadd.f32 %v1323_v12, %v2926_v54  ;;  %v1132_v18 = vpop.f32.mrb[57].mxu1  ;;  %v1325_v19 = vpop.f32.mrb[57].mxu0 }
 0x1ad   :  { %v1133_v13 = vadd.f32 %v1132_v18, %v2928_v55  ;;  %v1326_v35 = vadd.f32 %v1325_v19, %v2930_v59  ;;  %v1134_v15 = vpop.f32.mrb[58].mxu1  ;;  %v1327_v8 = vpop.f32.mrb[58].mxu0 }
 0x1ae   :  { %v1135_v37 = vadd.f32 %v1134_v15, %v2924_v49  ;;  %v1328_v42 = vadd.f32 %v1327_v8, %v2926_v54  ;;  %v1136_v43 = vpop.f32.mrb[59].mxu1  ;;  %v1329_v47 = vpop.f32.mrb[59].mxu0 }
 0x1af   :  { %v2373_v61 = vpack.c.bf16 %v1133_v13, %v1131_v14  ;;  %v2374_v2 = vpack.c.bf16 %v1326_v35, %v1324_v3  ;;  %v1137_v9 = vadd.f32 %v1136_v43, %v2928_v55  ;;  %v1330_v16 = vadd.f32 %v1329_v47, %v2930_v59 }
 0x1b1   :  { %2035 = vst [vmem:[#allocation7 + $0x128] sm:$0xff] %v2373_v61  ;;  %2036 = vst [vmem:[#allocation7 + $0x130] sm:$0xff] %v2374_v2  ;;  %v2376_v17 = vpack.c.bf16 %v1137_v9, %v1135_v37  ;;  %v2377_v20 = vpack.c.bf16 %v1330_v16, %v1328_v42 }
 0x1b3   :  { %2038 = vst [vmem:[#allocation7 + $0x140] sm:$0xff] %v2376_v17  ;;  %2039 = vst [vmem:[#allocation7 + $0x148] sm:$0xff] %v2377_v20  ;;  %v1140_v21 = vpop.f32.mrb[60].mxu1  ;;  %v1333_v22 = vpop.f32.mrb[60].mxu0 }
 0x1b4   :  { %v1141_v23 = vadd.f32 %v1140_v21, %v2924_v49  ;;  %v1334_v24 = vadd.f32 %v1333_v22, %v2926_v54  ;;  %v1142_v25 = vpop.f32.mrb[61].mxu1  ;;  %v1335_v26 = vpop.f32.mrb[61].mxu0 }
 0x1b5   :  { %v1143_v27 = vadd.f32 %v1142_v25, %v2928_v55  ;;  %v1336_v28 = vadd.f32 %v1335_v26, %v2930_v59  ;;  %v1144_v29 = vpop.f32.mrb[62].mxu1  ;;  %v1337_v30 = vpop.f32.mrb[62].mxu0 }
 0x1b6   :  { %v1145_v31 = vadd.f32 %v1144_v29, %v2924_v49  ;;  %v1338_v32 = vadd.f32 %v1337_v30, %v2926_v54  ;;  %v1146_v33 = vpop.f32.mrb[63].mxu1  ;;  %v1339_v34 = vpop.f32.mrb[63].mxu0 }
 0x1b7   :  { %v2379_v36 = vpack.c.bf16 %v1143_v27, %v1141_v23  ;;  %v2380_v38 = vpack.c.bf16 %v1336_v28, %v1334_v24  ;;  %v1147_v39 = vadd.f32 %v1146_v33, %v2928_v55  ;;  %v1340_v40 = vadd.f32 %v1339_v34, %v2930_v59 }
 0x1b9   :  { %2041 = vst [vmem:[#allocation7 + $0x158] sm:$0xff] %v2379_v36  ;;  %2042 = vst [vmem:[#allocation7 + $0x160] sm:$0xff] %v2380_v38  ;;  %v2382_v41 = vpack.c.bf16 %v1147_v39, %v1145_v31  ;;  %v2383_v44 = vpack.c.bf16 %v1340_v40, %v1338_v32 }
 0x1bb   :  { %2044 = vst [vmem:[#allocation7 + $0x170] sm:$0xff] %v2382_v41  ;;  %2045 = vst [vmem:[#allocation7 + $0x178] sm:$0xff] %v2383_v44  ;;  %v1150_v45 = vpop.f32.mrb[64].mxu1  ;;  %v1343_v46 = vpop.f32.mrb[64].mxu0 }
 0x1bc   :  { %v1151_v48 = vadd.f32 %v1150_v45, %v2924_v49  ;;  %v1344_v50 = vadd.f32 %v1343_v46, %v2926_v54  ;;  %v1152_v51 = vpop.f32.mrb[65].mxu1  ;;  %v1345_v52 = vpop.f32.mrb[65].mxu0 }
 0x1bd   :  { %v1153_v53 = vadd.f32 %v1152_v51, %v2928_v55  ;;  %v1346_v56 = vadd.f32 %v1345_v52, %v2930_v59  ;;  %v1154_v57 = vpop.f32.mrb[66].mxu1  ;;  %v1347_v58 = vpop.f32.mrb[66].mxu0 }
 0x1be   :  { %v1155_v60 = vadd.f32 %v1154_v57, %v2924_v49  ;;  %v1348_v62 = vadd.f32 %v1347_v58, %v2926_v54  ;;  %v1156_v63 = vpop.f32.mrb[67].mxu1  ;;  %v1349_v0 = vpop.f32.mrb[67].mxu0 }
 0x1bf   :  { %v2385_v1 = vpack.c.bf16 %v1153_v53, %v1151_v48  ;;  %v2386_v4 = vpack.c.bf16 %v1346_v56, %v1344_v50  ;;  %v1157_v5 = vadd.f32 %v1156_v63, %v2928_v55  ;;  %v1350_v6 = vadd.f32 %v1349_v0, %v2930_v59 }
 0x1c1   :  { %2047 = vst [vmem:[#allocation7 + $0x188] sm:$0xff] %v2385_v1  ;;  %2048 = vst [vmem:[#allocation7 + $0x190] sm:$0xff] %v2386_v4  ;;  %v2388_v7 = vpack.c.bf16 %v1157_v5, %v1155_v60  ;;  %v2389_v10 = vpack.c.bf16 %v1350_v6, %v1348_v62 }
 0x1c3   :  { %2050 = vst [vmem:[#allocation7 + $0x1a0] sm:$0xff] %v2388_v7  ;;  %2051 = vst [vmem:[#allocation7 + $0x1a8] sm:$0xff] %v2389_v10  ;;  %v1160_v11 = vpop.f32.mrb[68].mxu1  ;;  %v1353_v12 = vpop.f32.mrb[68].mxu0 }
 0x1c4   :  { %v1161_v14 = vadd.f32 %v1160_v11, %v2924_v49  ;;  %v1354_v3 = vadd.f32 %v1353_v12, %v2926_v54  ;;  %v1162_v18 = vpop.f32.mrb[69].mxu1  ;;  %v1355_v19 = vpop.f32.mrb[69].mxu0 }
 0x1c5   :  { %v1163_v13 = vadd.f32 %v1162_v18, %v2928_v55  ;;  %v1356_v35 = vadd.f32 %v1355_v19, %v2930_v59  ;;  %v1164_v15 = vpop.f32.mrb[70].mxu1  ;;  %v1357_v8 = vpop.f32.mrb[70].mxu0 }
 0x1c6   :  { %v1165_v37 = vadd.f32 %v1164_v15, %v2924_v49  ;;  %v1358_v42 = vadd.f32 %v1357_v8, %v2926_v54  ;;  %v1166_v43 = vpop.f32.mrb[71].mxu1  ;;  %v1359_v47 = vpop.f32.mrb[71].mxu0 }
 0x1c7   :  { %v2391_v61 = vpack.c.bf16 %v1163_v13, %v1161_v14  ;;  %v2392_v2 = vpack.c.bf16 %v1356_v35, %v1354_v3  ;;  %v1167_v9 = vadd.f32 %v1166_v43, %v2928_v55  ;;  %v1360_v16 = vadd.f32 %v1359_v47, %v2930_v59 }
 0x1c9   :  { %2053 = vst [vmem:[#allocation7 + $0x1b8] sm:$0xff] %v2391_v61  ;;  %2054 = vst [vmem:[#allocation7 + $0x1c0] sm:$0xff] %v2392_v2  ;;  %v2394_v17 = vpack.c.bf16 %v1167_v9, %v1165_v37  ;;  %v2395_v20 = vpack.c.bf16 %v1360_v16, %v1358_v42 }
 0x1cb   :  { %2056 = vst [vmem:[#allocation7 + $0x1d0] sm:$0xff] %v2394_v17  ;;  %2057 = vst [vmem:[#allocation7 + $0x1d8] sm:$0xff] %v2395_v20  ;;  %v1170_v21 = vpop.f32.mrb[72].mxu1  ;;  %v1363_v22 = vpop.f32.mrb[72].mxu0 }
 0x1cc   :  { %v1171_v23 = vadd.f32 %v1170_v21, %v2924_v49  ;;  %v1364_v24 = vadd.f32 %v1363_v22, %v2926_v54  ;;  %v1172_v25 = vpop.f32.mrb[73].mxu1  ;;  %v1365_v26 = vpop.f32.mrb[73].mxu0 }
 0x1cd   :  { %v1173_v27 = vadd.f32 %v1172_v25, %v2928_v55  ;;  %v1366_v28 = vadd.f32 %v1365_v26, %v2930_v59  ;;  %v1174_v29 = vpop.f32.mrb[74].mxu1  ;;  %v1367_v30 = vpop.f32.mrb[74].mxu0 }
 0x1ce   :  { %v1175_v31 = vadd.f32 %v1174_v29, %v2924_v49  ;;  %v1368_v32 = vadd.f32 %v1367_v30, %v2926_v54  ;;  %v1176_v33 = vpop.f32.mrb[75].mxu1  ;;  %v1369_v34 = vpop.f32.mrb[75].mxu0 }
 0x1cf   :  { %v2397_v36 = vpack.c.bf16 %v1173_v27, %v1171_v23  ;;  %v2398_v38 = vpack.c.bf16 %v1366_v28, %v1364_v24  ;;  %v1177_v39 = vadd.f32 %v1176_v33, %v2928_v55  ;;  %v1370_v40 = vadd.f32 %v1369_v34, %v2930_v59 }
 0x1d1   :  { %2059 = vst [vmem:[#allocation7 + $0x1e8] sm:$0xff] %v2397_v36  ;;  %2060 = vst [vmem:[#allocation7 + $0x1f0] sm:$0xff] %v2398_v38  ;;  %v2400_v41 = vpack.c.bf16 %v1177_v39, %v1175_v31  ;;  %v2401_v44 = vpack.c.bf16 %v1370_v40, %v1368_v32 }
 0x1d3   :  { %2062 = vst [vmem:[#allocation7 + $0x200] sm:$0xff] %v2400_v41  ;;  %2063 = vst [vmem:[#allocation7 + $0x208] sm:$0xff] %v2401_v44  ;;  %v1180_v45 = vpop.f32.mrb[76].mxu1  ;;  %v1373_v46 = vpop.f32.mrb[76].mxu0 }
 0x1d4   :  { %v1181_v48 = vadd.f32 %v1180_v45, %v2924_v49  ;;  %v1374_v50 = vadd.f32 %v1373_v46, %v2926_v54  ;;  %v1182_v51 = vpop.f32.mrb[77].mxu1  ;;  %v1375_v52 = vpop.f32.mrb[77].mxu0 }
 0x1d5   :  { %v1183_v53 = vadd.f32 %v1182_v51, %v2928_v55  ;;  %v1376_v56 = vadd.f32 %v1375_v52, %v2930_v59  ;;  %v1184_v57 = vpop.f32.mrb[78].mxu1  ;;  %v1377_v58 = vpop.f32.mrb[78].mxu0 }
 0x1d6   :  { %v1185_v60 = vadd.f32 %v1184_v57, %v2924_v49  ;;  %v1378_v62 = vadd.f32 %v1377_v58, %v2926_v54  ;;  %v1186_v63 = vpop.f32.mrb[79].mxu1  ;;  %v1379_v0 = vpop.f32.mrb[79].mxu0 }
 0x1d7   :  { %v2403_v1 = vpack.c.bf16 %v1183_v53, %v1181_v48  ;;  %v2404_v4 = vpack.c.bf16 %v1376_v56, %v1374_v50  ;;  %v1187_v5 = vadd.f32 %v1186_v63, %v2928_v55  ;;  %v1380_v6 = vadd.f32 %v1379_v0, %v2930_v59 }
 0x1d9   :  { %2065 = vst [vmem:[#allocation7 + $0x218] sm:$0xff] %v2403_v1  ;;  %2066 = vst [vmem:[#allocation7 + $0x220] sm:$0xff] %v2404_v4  ;;  %v2406_v7 = vpack.c.bf16 %v1187_v5, %v1185_v60  ;;  %v2407_v10 = vpack.c.bf16 %v1380_v6, %v1378_v62 }
 0x1db   :  { %2068 = vst [vmem:[#allocation7 + $0x230] sm:$0xff] %v2406_v7  ;;  %2069 = vst [vmem:[#allocation7 + $0x238] sm:$0xff] %v2407_v10  ;;  %v1190_v11 = vpop.f32.mrb[80].mxu1  ;;  %v1383_v12 = vpop.f32.mrb[80].mxu0 }
 0x1dc   :  { %v1191_v14 = vadd.f32 %v1190_v11, %v2924_v49  ;;  %v1384_v3 = vadd.f32 %v1383_v12, %v2926_v54  ;;  %v1192_v18 = vpop.f32.mrb[81].mxu1  ;;  %v1385_v19 = vpop.f32.mrb[81].mxu0 }
 0x1dd   :  { %v1193_v13 = vadd.f32 %v1192_v18, %v2928_v55  ;;  %v1386_v35 = vadd.f32 %v1385_v19, %v2930_v59  ;;  %v1194_v15 = vpop.f32.mrb[82].mxu1  ;;  %v1387_v8 = vpop.f32.mrb[82].mxu0 }
 0x1de   :  { %v1195_v37 = vadd.f32 %v1194_v15, %v2924_v49  ;;  %v1388_v42 = vadd.f32 %v1387_v8, %v2926_v54  ;;  %v1196_v43 = vpop.f32.mrb[83].mxu1  ;;  %v1389_v47 = vpop.f32.mrb[83].mxu0 }
 0x1df   :  { %v2409_v61 = vpack.c.bf16 %v1193_v13, %v1191_v14  ;;  %v2410_v2 = vpack.c.bf16 %v1386_v35, %v1384_v3  ;;  %v1197_v9 = vadd.f32 %v1196_v43, %v2928_v55  ;;  %v1390_v16 = vadd.f32 %v1389_v47, %v2930_v59 }
 0x1e1   :  { %2071 = vst [vmem:[#allocation7 + $0x248] sm:$0xff] %v2409_v61  ;;  %2072 = vst [vmem:[#allocation7 + $0x250] sm:$0xff] %v2410_v2  ;;  %v2412_v17 = vpack.c.bf16 %v1197_v9, %v1195_v37  ;;  %v2413_v20 = vpack.c.bf16 %v1390_v16, %v1388_v42 }
 0x1e3   :  { %2074 = vst [vmem:[#allocation7 + $0x260] sm:$0xff] %v2412_v17  ;;  %2075 = vst [vmem:[#allocation7 + $0x268] sm:$0xff] %v2413_v20  ;;  %v1200_v21 = vpop.f32.mrb[84].mxu1  ;;  %v1393_v22 = vpop.f32.mrb[84].mxu0 }
 0x1e4   :  { %v1201_v23 = vadd.f32 %v1200_v21, %v2924_v49  ;;  %v1394_v24 = vadd.f32 %v1393_v22, %v2926_v54  ;;  %v1202_v25 = vpop.f32.mrb[85].mxu1  ;;  %v1395_v26 = vpop.f32.mrb[85].mxu0 }
 0x1e5   :  { %v1203_v27 = vadd.f32 %v1202_v25, %v2928_v55  ;;  %v1396_v28 = vadd.f32 %v1395_v26, %v2930_v59  ;;  %v1204_v29 = vpop.f32.mrb[86].mxu1  ;;  %v1397_v30 = vpop.f32.mrb[86].mxu0 }
 0x1e6   :  { %v1205_v31 = vadd.f32 %v1204_v29, %v2924_v49  ;;  %v1398_v32 = vadd.f32 %v1397_v30, %v2926_v54  ;;  %v1206_v33 = vpop.f32.mrb[87].mxu1  ;;  %v1399_v34 = vpop.f32.mrb[87].mxu0 }
 0x1e7   :  { %v2415_v36 = vpack.c.bf16 %v1203_v27, %v1201_v23  ;;  %v2416_v38 = vpack.c.bf16 %v1396_v28, %v1394_v24  ;;  %v1207_v39 = vadd.f32 %v1206_v33, %v2928_v55  ;;  %v1400_v40 = vadd.f32 %v1399_v34, %v2930_v59 }
 0x1e9   :  { %2077 = vst [vmem:[#allocation7 + $0x278] sm:$0xff] %v2415_v36  ;;  %2078 = vst [vmem:[#allocation7 + $0x280] sm:$0xff] %v2416_v38  ;;  %v2418_v41 = vpack.c.bf16 %v1207_v39, %v1205_v31  ;;  %v2419_v44 = vpack.c.bf16 %v1400_v40, %v1398_v32 }
 0x1eb   :  { %2080 = vst [vmem:[#allocation7 + $0x290] sm:$0xff] %v2418_v41  ;;  %2081 = vst [vmem:[#allocation7 + $0x298] sm:$0xff] %v2419_v44  ;;  %v1210_v45 = vpop.f32.mrb[88].mxu1  ;;  %v1403_v46 = vpop.f32.mrb[88].mxu0 }
 0x1ec   :  { %v1211_v48 = vadd.f32 %v1210_v45, %v2924_v49  ;;  %v1404_v50 = vadd.f32 %v1403_v46, %v2926_v54  ;;  %v1212_v51 = vpop.f32.mrb[89].mxu1  ;;  %v1405_v52 = vpop.f32.mrb[89].mxu0 }
 0x1ed   :  { %v1213_v53 = vadd.f32 %v1212_v51, %v2928_v55  ;;  %v1406_v56 = vadd.f32 %v1405_v52, %v2930_v59  ;;  %v1214_v57 = vpop.f32.mrb[90].mxu1  ;;  %v1407_v58 = vpop.f32.mrb[90].mxu0 }
 0x1ee   :  { %v1215_v60 = vadd.f32 %v1214_v57, %v2924_v49  ;;  %v1408_v62 = vadd.f32 %v1407_v58, %v2926_v54  ;;  %v1216_v63 = vpop.f32.mrb[91].mxu1  ;;  %v1409_v0 = vpop.f32.mrb[91].mxu0 }
 0x1ef   :  { %v2421_v1 = vpack.c.bf16 %v1213_v53, %v1211_v48  ;;  %v2422_v4 = vpack.c.bf16 %v1406_v56, %v1404_v50  ;;  %v1217_v5 = vadd.f32 %v1216_v63, %v2928_v55  ;;  %v1410_v6 = vadd.f32 %v1409_v0, %v2930_v59 }
 0x1f1   :  { %2083 = vst [vmem:[#allocation7 + $0x2a8] sm:$0xff] %v2421_v1  ;;  %2084 = vst [vmem:[#allocation7 + $0x2b0] sm:$0xff] %v2422_v4  ;;  %v2424_v7 = vpack.c.bf16 %v1217_v5, %v1215_v60  ;;  %v2425_v10 = vpack.c.bf16 %v1410_v6, %v1408_v62 }
 0x1f3   :  { %2086 = vst [vmem:[#allocation7 + $0x2c0] sm:$0xff] %v2424_v7  ;;  %2087 = vst [vmem:[#allocation7 + $0x2c8] sm:$0xff] %v2425_v10  ;;  %v1220_v11 = vpop.f32.mrb[92].mxu1  ;;  %v1413_v12 = vpop.f32.mrb[92].mxu0 }
 0x1f4   :  { %v1221_v14 = vadd.f32 %v1220_v11, %v2924_v49  ;;  %v1414_v3 = vadd.f32 %v1413_v12, %v2926_v54  ;;  %v1222_v18 = vpop.f32.mrb[93].mxu1  ;;  %v1415_v19 = vpop.f32.mrb[93].mxu0 }
 0x1f5   :  { %v1223_v13 = vadd.f32 %v1222_v18, %v2928_v55  ;;  %v1416_v35 = vadd.f32 %v1415_v19, %v2930_v59  ;;  %v1224_v15 = vpop.f32.mrb[94].mxu1  ;;  %v1417_v8 = vpop.f32.mrb[94].mxu0 }
 0x1f6   :  { %v1225_v37 = vadd.f32 %v1224_v15, %v2924_v49  ;;  %v1418_v42 = vadd.f32 %v1417_v8, %v2926_v54  ;;  %v1226_v43 = vpop.f32.mrb[95].mxu1  ;;  %v1419_v47 = vpop.f32.mrb[95].mxu0 }
 0x1f7   :  { %v2427_v61 = vpack.c.bf16 %v1223_v13, %v1221_v14  ;;  %v2428_v2 = vpack.c.bf16 %v1416_v35, %v1414_v3  ;;  %v1227_v9 = vadd.f32 %v1226_v43, %v2928_v55  ;;  %v1420_v16 = vadd.f32 %v1419_v47, %v2930_v59 }
 0x1f9   :  { %2089 = vst [vmem:[#allocation7 + $0x2d8] sm:$0xff] %v2427_v61  ;;  %2090 = vst [vmem:[#allocation7 + $0x2e0] sm:$0xff] %v2428_v2  ;;  %v2430_v17 = vpack.c.bf16 %v1227_v9, %v1225_v37  ;;  %v2431_v20 = vpack.c.bf16 %v1420_v16, %v1418_v42 }
 0x1fb   :  { %2092 = vst [vmem:[#allocation7 + $0x2f0] sm:$0xff] %v2430_v17  ;;  %2093 = vst [vmem:[#allocation7 + $0x2f8] sm:$0xff] %v2431_v20 }
 0x1fc   :  { %2718 = shalt.err (!%p2715_p6)
}
 0x1fd   :  { %s2719_s17 = scalar_lea.hbm %s3164_s3, 12288 }
 0x1fe   :  { %p2720_p7 = scmp.ne.s32.totalorder %s3164_s3, %s2719_s17  ;;  %p2723_p8 = scmp.lt.u32.totalorder %s2719_s17, %s3164_s3 }
 0x200   :  { %p2725_p9 = pnand %p2723_p8, %p2720_p7 }
 0x202   :  { %2728 = shalt.err (!%p2725_p9)
}
 0x203   :  { %2105 = dma.vmem_to_hbm [thread:$0]  %s2100_s13, 12288, %s3164_s3, [#allocation4], %s2739_s0, %s2739_s0, %s2740_s9  }
 0x204   :  { %2733 = dma.done.wait [#allocation4], 12288  }
 0x205   :  { %2734 = vsyncadd [#allocation4], 4294955008 }
 0x206   :  { %2109 = vsyncpa [#allocation3], 1 }
 0x207   :  { %2110 = vsyncpa [#allocation6], 1 }
 0x208   :  { %2111 = vsyncpa [#allocation4], 1 }

// kernel: tpu_custom_call.1
= control target key start
LH: loop header
LB: loop body
LE: loop exit
PB: predicated region body
PF: predicated region fallthrough
CT: control target
= control target key end

     0   :  { %8 = vsyncpa [#allocation3], 0  ;;  %s3161_s0 = inlined_call_operand.hbm [shape: bf16[256,256], index: 0, kind: input, shape index: {}]   ;;  %s3162_s1 = inlined_call_operand.hbm [shape: bf16[256,768], index: 1, kind: input, shape index: {}]   ;;  %s3163_s2 = inlined_call_operand.vmem [shape: f32[1,768], index: 2, kind: input, shape index: {}]   ;;  %s3164_s3 = inlined_call_operand.hbm [shape: bf16[256,768], index: 3, kind: output, shape index: {}]  }
   0x1   :  { %9 = vsyncpa [#allocation6], 0 }
   0x2   :  { %10 = vsyncpa [#allocation4], 0  ;;  %s2735_s12 = smov [#allocation2]   ;;  %s2663_s16 = scalar_lea.hbm %s3161_s0, 4096 }
   0x3   :  { %s16_s13 = sshll.u32 %s2735_s12, 4  ;;  %p2664_p0 = scmp.ne.s32.totalorder %s3161_s0, %s2663_s16  ;;  %s17_s13 = int_to_ptr.vmem [resolvable:$true] %s16_s13 }
   0x4   :  { %p2667_p1 = scmp.lt.u32.totalorder %s2663_s16, %s3161_s0 }
   0x6   :  { %p2669_p2 = pnand %p2667_p1, %p2664_p0 }
   0x8   :  { %2672 = shalt.err (!%p2669_p2)
}
   0x9   :  { %s2673_s21 = scalar_lea.vmem %s17_s13, 4096  ;;  %p2678_p4 = scmp.lt.s32.totalorder %s17_s13, %s17_s13 }
   0xa   :  { %p2674_p3 = scmp.ne.s32.totalorder %s17_s13, %s2673_s21  ;;  %p2679_p5 = scmp.lt.s32.totalorder %s2673_s21, %s2673_s21 }
   0xc   :  { %p2680_p6 = por %p2679_p5, %p2678_p4 }
   0xe   :  { %p2681_p7 = pnand %p2680_p6, %p2674_p3 }
  0x10   :  { %2684 = shalt.err (!%p2681_p7)
}
  0x11   :  { %s2736_s22 = smov 128   ;;  %s2737_s23 = smov 8  }
  0x12   :  { %22 = dma.hbm_to_vmem [thread:$0]  %s3161_s0, 4096, %s17_s13, [#allocation3], %s2736_s22, %s2736_s22, %s2737_s23  }
  0x13   :  { %s2738_s26 = smov [#allocation5]   ;;  %s2685_s30 = scalar_lea.hbm %s3162_s1, 12288 }
  0x14   :  { %s28_s27 = sshll.u32 %s2738_s26, 4  ;;  %p2686_p8 = scmp.ne.s32.totalorder %s3162_s1, %s2685_s30  ;;  %s29_s27 = int_to_ptr.vmem [resolvable:$true] %s28_s27 }
  0x15   :  { %p2689_p9 = scmp.lt.u32.totalorder %s2685_s30, %s3162_s1 }
  0x17   :  { %p2691_p10 = pnand %p2689_p9, %p2686_p8 }
  0x19   :  { %2694 = shalt.err (!%p2691_p10)
}
  0x1a   :  { %s2695_s8 = scalar_lea.vmem %s29_s27, 12288  ;;  %p2700_p12 = scmp.lt.s32.totalorder %s29_s27, %s29_s27 }
  0x1b   :  { %p2696_p11 = scmp.ne.s32.totalorder %s29_s27, %s2695_s8  ;;  %p2701_p13 = scmp.lt.s32.totalorder %s2695_s8, %s2695_s8 }
  0x1d   :  { %p2702_p0 = por %p2701_p13, %p2700_p12 }
  0x1f   :  { %p2703_p1 = pnand %p2702_p0, %p2696_p11 }
  0x21   :  { %2706 = shalt.err (!%p2703_p1)
}
  0x22   :  { %s2739_s0 = smov 384   ;;  %s2740_s9 = smov 24  }
  0x23   :  { %34 = dma.hbm_to_vmem [thread:$0]  %s3162_s1, 12288, %s29_s27, [#allocation6], %s2739_s0, %s2739_s0, %s2740_s9  }
  0x24   :  { %2729 = dma.done.wait [#allocation3], 4096  }
  0x25   :  { %2730 = vsyncadd [#allocation3], 4294963200 }
  0x26   :  { %2731 = dma.done.wait [#allocation6], 12288  }
  0x27   :  { %2732 = vsyncadd [#allocation6], 4294955008  ;;  %v2471_v0 = vld [vmem:[#allocation5 + $0x4] ss:$24 sps:$4 sm:$0xff]   ;;  %v2473_v1 = vld [vmem:[#allocation5] ss:$24 sps:$4 sm:$0xff]  }
  0x28   :  { %843 = vmatprep.subr.bf16.mxu0 %v2471_v0  ;;  %2432 = vmatprep.subr.bf16.mxu1 %v2471_v0  ;;  %v2474_v2 = vld [vmem:[#allocation5 + $0x34] ss:$24 sps:$4 sm:$0xff]   ;;  %v2476_v3 = vld [vmem:[#allocation5 + $0x30] ss:$24 sps:$4 sm:$0xff]   ;;  %v2477_v4 = vld [vmem:[#allocation5 + $0x64] ss:$24 sps:$4 sm:$0xff]  }
  0x29   :  { %844 = vmatpush1.bf16.msra.mxu0 %v2473_v1  ;;  %2448 = vmatpush1.bf16.msra.mxu1 %v2473_v1  ;;  %v2479_v5 = vld [vmem:[#allocation5 + $0x60] ss:$24 sps:$4 sm:$0xff]   ;;  %v2480_v6 = vld [vmem:[#allocation5 + $0x94] ss:$24 sps:$4 sm:$0xff]   ;;  %v2482_v7 = vld [vmem:[#allocation5 + $0x90] ss:$24 sps:$4 sm:$0xff]  }
  0x2a   :  { %845 = vmatprep.subr.bf16.mxu0 %v2474_v2  ;;  %2433 = vmatprep.subr.bf16.mxu1 %v2474_v2  ;;  %v2483_v8 = vld [vmem:[#allocation5 + $0xc4] ss:$24 sps:$4 sm:$0xff]   ;;  %v2485_v9 = vld [vmem:[#allocation5 + $0xc0] ss:$24 sps:$4 sm:$0xff]   ;;  %v2486_v10 = vld [vmem:[#allocation5 + $0xf4] ss:$24 sps:$4 sm:$0xff]  }
  0x2b   :  { %v2488_v11 = vld [vmem:[#allocation5 + $0xf0] ss:$24 sps:$4 sm:$0xff]   ;;  %v2489_v12 = vld [vmem:[#allocation5 + $0x124] ss:$24 sps:$4 sm:$0xff]   ;;  %v2491_v14 = vld [vmem:[#allocation5 + $0x120] ss:$24 sps:$4 sm:$0xff]  }
  0x2c   :  { %v2789_v13 = vld [vmem:[#allocation2 + $0x4] ss:$8 sps:$4 sm:$0xff]   ;;  %v2494_v17 = vld [vmem:[#allocation5 + $0x150] ss:$24 sps:$4 sm:$0xff]   ;;  %v2497_v19 = vld [vmem:[#allocation5 + $0x180] ss:$24 sps:$4 sm:$0xff]  }
  0x2d   :  { %846 = vmatpush1.bf16.msra.mxu0 %v2476_v3  ;;  %2449 = vmatpush1.bf16.msra.mxu1 %v2476_v3  ;;  %v2791_v15 = vld [vmem:[#allocation2 + $0x84] ss:$8 sps:$4 sm:$0xff]   ;;  %v2500_v21 = vld [vmem:[#allocation5 + $0x1b0] ss:$24 sps:$4 sm:$0xff]   ;;  %v2503_v23 = vld [vmem:[#allocation5 + $0x1e0] ss:$24 sps:$4 sm:$0xff]  }
  0x2e   :  { %847 = vmatprep.subr.bf16.mxu0 %v2477_v4  ;;  %2434 = vmatprep.subr.bf16.mxu1 %v2477_v4  ;;  %v2492_v16 = vld [vmem:[#allocation5 + $0x154] ss:$24 sps:$4 sm:$0xff]   ;;  %v2495_v18 = vld [vmem:[#allocation5 + $0x184] ss:$24 sps:$4 sm:$0xff]   ;;  %v2506_v25 = vld [vmem:[#allocation5 + $0x210] ss:$24 sps:$4 sm:$0xff]  }
  0x2f   :  { %875 = vmatprep.mubr.bf16.mxu0 %v2789_v13  ;;  %955 = vmatprep.mubr.bf16.mxu1 %v2791_v15  ;;  %v2498_v20 = vld [vmem:[#allocation5 + $0x1b4] ss:$24 sps:$4 sm:$0xff]   ;;  %v2501_v22 = vld [vmem:[#allocation5 + $0x1e4] ss:$24 sps:$4 sm:$0xff]   ;;  %v2509_v27 = vld [vmem:[#allocation5 + $0x240] ss:$24 sps:$4 sm:$0xff]  }
  0x30   :  { %v2504_v24 = vld [vmem:[#allocation5 + $0x214] ss:$24 sps:$4 sm:$0xff]   ;;  %v2507_v26 = vld [vmem:[#allocation5 + $0x244] ss:$24 sps:$4 sm:$0xff]   ;;  %v2512_v29 = vld [vmem:[#allocation5 + $0x270] ss:$24 sps:$4 sm:$0xff]  }
  0x31   :  { %848 = vmatpush1.bf16.msra.mxu0 %v2479_v5  ;;  %2450 = vmatpush1.bf16.msra.mxu1 %v2479_v5  ;;  %v2510_v28 = vld [vmem:[#allocation5 + $0x274] ss:$24 sps:$4 sm:$0xff]   ;;  %v2513_v30 = vld [vmem:[#allocation5 + $0x2a4] ss:$24 sps:$4 sm:$0xff]   ;;  %v2515_v31 = vld [vmem:[#allocation5 + $0x2a0] ss:$24 sps:$4 sm:$0xff]  }
  0x32   :  { %849 = vmatprep.subr.bf16.mxu0 %v2480_v6  ;;  %2435 = vmatprep.subr.bf16.mxu1 %v2480_v6  ;;  %v2516_v32 = vld [vmem:[#allocation5 + $0x2d4] ss:$24 sps:$4 sm:$0xff]   ;;  %v2518_v33 = vld [vmem:[#allocation5 + $0x2d0] ss:$24 sps:$4 sm:$0xff]   ;;  %v2536_v41 = vld [vmem:[#allocation5 + $0x44] ss:$24 sps:$4 sm:$0xff]  }
  0x33   :  { %v2527_v34 = vld [vmem:[#allocation5 + $0xc] ss:$24 sps:$4 sm:$0xff]   ;;  %v2795_v35 = vld [vmem:[#allocation2] ss:$8 sps:$4 sm:$0xff]   ;;  %v2533_v40 = vld [vmem:[#allocation5 + $0x3c] ss:$24 sps:$4 sm:$0xff]  }
  0x34   :  { %v2530_v36 = vld [vmem:[#allocation5 + $0x14] ss:$24 sps:$4 sm:$0xff]   ;;  %v2797_v37 = vld [vmem:[#allocation2 + $0x80] ss:$8 sps:$4 sm:$0xff]   ;;  %v2531_v44 = vld [vmem:[#allocation5 + $0x38] ss:$24 sps:$4 sm:$0xff]  }
  0x35   :  { %850 = vmatpush1.bf16.msra.mxu0 %v2482_v7  ;;  %2451 = vmatpush1.bf16.msra.mxu1 %v2482_v7  ;;  %v2525_v38 = vld [vmem:[#allocation5 + $0x8] ss:$24 sps:$4 sm:$0xff]   ;;  %v2799_v42 = vld [vmem:[#allocation2 + $0x14] ss:$8 sps:$4 sm:$0xff]   ;;  %v2545_v46 = vld [vmem:[#allocation5 + $0x6c] ss:$24 sps:$4 sm:$0xff]  }
  0x36   :  { %851 = vmatprep.subr.bf16.mxu0 %v2483_v8  ;;  %2436 = vmatprep.subr.bf16.mxu1 %v2483_v8  ;;  %v2528_v39 = vld [vmem:[#allocation5 + $0x10] ss:$24 sps:$4 sm:$0xff]   ;;  %v2801_v43 = vld [vmem:[#allocation2 + $0x94] ss:$8 sps:$4 sm:$0xff]   ;;  %v2534_v45 = vld [vmem:[#allocation5 + $0x40] ss:$24 sps:$4 sm:$0xff]  }
  0x37   :  { %v2805_v47 = vld [vmem:[#allocation2 + $0x10] ss:$8 sps:$4 sm:$0xff]   ;;  %v2548_v48 = vld [vmem:[#allocation5 + $0x74] ss:$24 sps:$4 sm:$0xff]   ;;  %v2543_v50 = vld [vmem:[#allocation5 + $0x68] ss:$24 sps:$4 sm:$0xff]  }
  0x38   :  { %v2809_v49 = vld [vmem:[#allocation2 + $0x90] ss:$8 sps:$4 sm:$0xff]   ;;  %v2551_v52 = vld [vmem:[#allocation5 + $0x9c] ss:$24 sps:$4 sm:$0xff]   ;;  %v2811_v54 = vld [vmem:[#allocation2 + $0x24] ss:$8 sps:$4 sm:$0xff]  }
  0x39   :  { %852 = vmatpush1.bf16.msra.mxu0 %v2485_v9  ;;  %2452 = vmatpush1.bf16.msra.mxu1 %v2485_v9  ;;  %v2546_v51 = vld [vmem:[#allocation5 + $0x70] ss:$24 sps:$4 sm:$0xff]   ;;  %v2554_v53 = vld [vmem:[#allocation5 + $0xa4] ss:$24 sps:$4 sm:$0xff]   ;;  %v2552_v57 = vld [vmem:[#allocation5 + $0xa0] ss:$24 sps:$4 sm:$0xff]  }
  0x3a   :  { %853 = vmatprep.subr.bf16.mxu0 %v2486_v10  ;;  %2437 = vmatprep.subr.bf16.mxu1 %v2486_v10  ;;  %v2813_v55 = vld [vmem:[#allocation2 + $0xa4] ss:$8 sps:$4 sm:$0xff]   ;;  %v2549_v56 = vld [vmem:[#allocation5 + $0x98] ss:$24 sps:$4 sm:$0xff]   ;;  %v2817_v59 = vld [vmem:[#allocation2 + $0x20] ss:$8 sps:$4 sm:$0xff]  }
  0x3b   :  { %v2563_v58 = vld [vmem:[#allocation5 + $0xcc] ss:$24 sps:$4 sm:$0xff]   ;;  %v2821_v61 = vld [vmem:[#allocation2 + $0xa0] ss:$8 sps:$4 sm:$0xff]   ;;  %v2569_v0 = vld [vmem:[#allocation5 + $0xfc] ss:$24 sps:$4 sm:$0xff]  }
  0x3c   :  { %v2566_v60 = vld [vmem:[#allocation5 + $0xd4] ss:$24 sps:$4 sm:$0xff]   ;;  %v2561_v62 = vld [vmem:[#allocation5 + $0xc8] ss:$24 sps:$4 sm:$0xff]   ;;  %v2572_v1 = vld [vmem:[#allocation5 + $0x104] ss:$24 sps:$4 sm:$0xff]  }
  0x3d   :  { %854 = vmatpush1.bf16.msra.mxu0 %v2488_v11  ;;  %2453 = vmatpush1.bf16.msra.mxu1 %v2488_v11  ;;  %v2564_v63 = vld [vmem:[#allocation5 + $0xd0] ss:$24 sps:$4 sm:$0xff]   ;;  %v2823_v2 = vld [vmem:[#allocation2 + $0x34] ss:$8 sps:$4 sm:$0xff]   ;;  %v2570_v5 = vld [vmem:[#allocation5 + $0x100] ss:$24 sps:$4 sm:$0xff]  }
  0x3e   :  { %855 = vmatprep.subr.bf16.mxu0 %v2489_v12  ;;  %2438 = vmatprep.subr.bf16.mxu1 %v2489_v12  ;;  %v2825_v3 = vld [vmem:[#allocation2 + $0xb4] ss:$8 sps:$4 sm:$0xff]   ;;  %v2567_v4 = vld [vmem:[#allocation5 + $0xf8] ss:$24 sps:$4 sm:$0xff]   ;;  %v2581_v6 = vld [vmem:[#allocation5 + $0x12c] ss:$24 sps:$4 sm:$0xff]  }
  0x3f   :  { %v2584_v7 = vld [vmem:[#allocation5 + $0x134] ss:$24 sps:$4 sm:$0xff]   ;;  %v2831_v8 = vld [vmem:[#allocation2 + $0x30] ss:$8 sps:$4 sm:$0xff]   ;;  %v2579_v10 = vld [vmem:[#allocation5 + $0x128] ss:$24 sps:$4 sm:$0xff]  }
  0x40   :  { %v2833_v9 = vld [vmem:[#allocation2 + $0xb0] ss:$8 sps:$4 sm:$0xff]   ;;  %v2587_v12 = vld [vmem:[#allocation5 + $0x15c] ss:$24 sps:$4 sm:$0xff]  }
  0x41   :  { %856 = vmatpush1.bf16.msra.mxu0 %v2491_v14  ;;  %2454 = vmatpush1.bf16.msra.mxu1 %v2491_v14  ;;  %v2582_v11 = vld [vmem:[#allocation5 + $0x130] ss:$24 sps:$4 sm:$0xff]   ;;  %v2590_v14 = vld [vmem:[#allocation5 + $0x164] ss:$24 sps:$4 sm:$0xff]  }
  0x42   :  { %857 = vmatprep.subr.bf16.mxu0 %v2492_v16  ;;  %2439 = vmatprep.subr.bf16.mxu1 %v2492_v16  ;;  %v2835_v16 = vld [vmem:[#allocation2 + $0x44] ss:$8 sps:$4 sm:$0xff]  }
  0x45   :  { %858 = vmatpush1.bf16.msra.mxu0 %v2494_v17  ;;  %2455 = vmatpush1.bf16.msra.mxu1 %v2494_v17  ;;  %v2837_v17 = vld [vmem:[#allocation2 + $0xc4] ss:$8 sps:$4 sm:$0xff]  }
  0x46   :  { %859 = vmatprep.subr.bf16.mxu0 %v2495_v18  ;;  %2440 = vmatprep.subr.bf16.mxu1 %v2495_v18  ;;  %v2585_v18 = vld [vmem:[#allocation5 + $0x158] ss:$24 sps:$4 sm:$0xff]  }
  0x49   :  { %860 = vmatpush1.bf16.msra.mxu0 %v2497_v19  ;;  %2456 = vmatpush1.bf16.msra.mxu1 %v2497_v19  ;;  %v2588_v19 = vld [vmem:[#allocation5 + $0x160] ss:$24 sps:$4 sm:$0xff]  }
  0x4a   :  { %861 = vmatprep.subr.bf16.mxu0 %v2498_v20  ;;  %2441 = vmatprep.subr.bf16.mxu1 %v2498_v20  ;;  %v2599_v20 = vld [vmem:[#allocation5 + $0x18c] ss:$24 sps:$4 sm:$0xff]  }
  0x4d   :  { %862 = vmatpush1.bf16.msra.mxu0 %v2500_v21  ;;  %2457 = vmatpush1.bf16.msra.mxu1 %v2500_v21  ;;  %v2602_v21 = vld [vmem:[#allocation5 + $0x194] ss:$24 sps:$4 sm:$0xff]  }
  0x4e   :  { %863 = vmatprep.subr.bf16.mxu0 %v2501_v22  ;;  %2442 = vmatprep.subr.bf16.mxu1 %v2501_v22  ;;  %v2843_v22 = vld [vmem:[#allocation2 + $0x40] ss:$8 sps:$4 sm:$0xff]  }
  0x51   :  { %864 = vmatpush1.bf16.msra.mxu0 %v2503_v23  ;;  %2458 = vmatpush1.bf16.msra.mxu1 %v2503_v23  ;;  %v2845_v23 = vld [vmem:[#allocation2 + $0xc0] ss:$8 sps:$4 sm:$0xff]  }
  0x52   :  { %865 = vmatprep.subr.bf16.mxu0 %v2504_v24  ;;  %2443 = vmatprep.subr.bf16.mxu1 %v2504_v24  ;;  %v2597_v24 = vld [vmem:[#allocation5 + $0x188] ss:$24 sps:$4 sm:$0xff]  }
  0x55   :  { %866 = vmatpush1.bf16.msra.mxu0 %v2506_v25  ;;  %2459 = vmatpush1.bf16.msra.mxu1 %v2506_v25  ;;  %v2600_v25 = vld [vmem:[#allocation5 + $0x190] ss:$24 sps:$4 sm:$0xff]  }
  0x56   :  { %867 = vmatprep.subr.bf16.mxu0 %v2507_v26  ;;  %2444 = vmatprep.subr.bf16.mxu1 %v2507_v26  ;;  %v2605_v26 = vld [vmem:[#allocation5 + $0x1bc] ss:$24 sps:$4 sm:$0xff]  }
  0x59   :  { %868 = vmatpush1.bf16.msra.mxu0 %v2509_v27  ;;  %2460 = vmatpush1.bf16.msra.mxu1 %v2509_v27  ;;  %v2608_v27 = vld [vmem:[#allocation5 + $0x1c4] ss:$24 sps:$4 sm:$0xff]  }
  0x5a   :  { %869 = vmatprep.subr.bf16.mxu0 %v2510_v28  ;;  %2445 = vmatprep.subr.bf16.mxu1 %v2510_v28  ;;  %v2847_v28 = vld [vmem:[#allocation2 + $0x54] ss:$8 sps:$4 sm:$0xff]  }
  0x5d   :  { %870 = vmatpush1.bf16.msra.mxu0 %v2512_v29  ;;  %2461 = vmatpush1.bf16.msra.mxu1 %v2512_v29  ;;  %v2849_v29 = vld [vmem:[#allocation2 + $0xd4] ss:$8 sps:$4 sm:$0xff]  }
  0x5e   :  { %871 = vmatprep.subr.bf16.mxu0 %v2513_v30  ;;  %2446 = vmatprep.subr.bf16.mxu1 %v2513_v30  ;;  %v2603_v30 = vld [vmem:[#allocation5 + $0x1b8] ss:$24 sps:$4 sm:$0xff]  }
  0x61   :  { %872 = vmatpush1.bf16.msra.mxu0 %v2515_v31  ;;  %2462 = vmatpush1.bf16.msra.mxu1 %v2515_v31  ;;  %v2606_v31 = vld [vmem:[#allocation5 + $0x1c0] ss:$24 sps:$4 sm:$0xff]  }
  0x62   :  { %873 = vmatprep.subr.bf16.mxu0 %v2516_v32  ;;  %2447 = vmatprep.subr.bf16.mxu1 %v2516_v32  ;;  %v2617_v32 = vld [vmem:[#allocation5 + $0x1ec] ss:$24 sps:$4 sm:$0xff]  }
  0x65   :  { %874 = vmatpush1.bf16.msra.mxu0 %v2518_v33  ;;  %2463 = vmatpush1.bf16.msra.mxu1 %v2518_v33  ;;  %v2620_v33 = vld [vmem:[#allocation5 + $0x1f4] ss:$24 sps:$4 sm:$0xff]  }
  0x66   :  { %1036 = vmatprep.subr.bf16.mxu1 %v2527_v34  ;;  %1229 = vmatprep.subr.bf16.mxu0 %v2530_v36  ;;  %v2855_v34 = vld [vmem:[#allocation2 + $0x50] ss:$8 sps:$4 sm:$0xff]  }
  0x67   :  { %v2857_v36 = vld [vmem:[#allocation2 + $0xd0] ss:$8 sps:$4 sm:$0xff]  }
  0x68   :  { %876 = vmatmul.mubr.bf16.vlgmr.msra.gmra.mrb[0].mxu0 %v2795_v35  ;;  %956 = vmatmul.mubr.bf16.vlgmr.msra.gmra.mrb[0].mxu1 %v2797_v37 }
  0x69   :  { %1037 = vmatpush1.bf16.msra.mxu1 %v2525_v38  ;;  %1230 = vmatpush1.bf16.msra.mxu0 %v2528_v39  ;;  %v2615_v38 = vld [vmem:[#allocation5 + $0x1e8] ss:$24 sps:$4 sm:$0xff]  }
  0x6a   :  { %1038 = vmatprep.subr.bf16.mxu1 %v2533_v40  ;;  %1231 = vmatprep.subr.bf16.mxu0 %v2536_v41  ;;  %v2618_v39 = vld [vmem:[#allocation5 + $0x1f0] ss:$24 sps:$4 sm:$0xff]   ;;  %v2623_v40 = vld [vmem:[#allocation5 + $0x21c] ss:$24 sps:$4 sm:$0xff]  }
  0x6b   :  { %885 = vmatprep.mubr.bf16.mxu0 %v2799_v42  ;;  %965 = vmatprep.mubr.bf16.mxu1 %v2801_v43  ;;  %v2626_v41 = vld [vmem:[#allocation5 + $0x224] ss:$24 sps:$4 sm:$0xff]  }
  0x6d   :  { %1039 = vmatpush1.bf16.msra.mxu1 %v2531_v44  ;;  %1232 = vmatpush1.bf16.msra.mxu0 %v2534_v45  ;;  %v2859_v44 = vld [vmem:[#allocation2 + $0x64] ss:$8 sps:$4 sm:$0xff]  }
  0x6e   :  { %1040 = vmatprep.subr.bf16.mxu1 %v2545_v46  ;;  %1233 = vmatprep.subr.bf16.mxu0 %v2548_v48  ;;  %v2861_v45 = vld [vmem:[#allocation2 + $0xe4] ss:$8 sps:$4 sm:$0xff]   ;;  %v2621_v46 = vld [vmem:[#allocation5 + $0x218] ss:$24 sps:$4 sm:$0xff]  }
  0x6f   :  { %v2624_v48 = vld [vmem:[#allocation5 + $0x220] ss:$24 sps:$4 sm:$0xff]  }
  0x70   :  { %886 = vmatmul.mubr.bf16.gmra.mrb[4].mxu0 %v2805_v47  ;;  %966 = vmatmul.mubr.bf16.gmra.mrb[4].mxu1 %v2809_v49 }
  0x71   :  { %1041 = vmatpush1.bf16.msra.mxu1 %v2543_v50  ;;  %1234 = vmatpush1.bf16.msra.mxu0 %v2546_v51  ;;  %v2635_v50 = vld [vmem:[#allocation5 + $0x24c] ss:$24 sps:$4 sm:$0xff]  }
  0x72   :  { %1042 = vmatprep.subr.bf16.mxu1 %v2551_v52  ;;  %1235 = vmatprep.subr.bf16.mxu0 %v2554_v53  ;;  %v2638_v51 = vld [vmem:[#allocation5 + $0x254] ss:$24 sps:$4 sm:$0xff]   ;;  %v2867_v52 = vld [vmem:[#allocation2 + $0x60] ss:$8 sps:$4 sm:$0xff]  }
  0x73   :  { %895 = vmatprep.mubr.bf16.mxu0 %v2811_v54  ;;  %975 = vmatprep.mubr.bf16.mxu1 %v2813_v55  ;;  %v2869_v53 = vld [vmem:[#allocation2 + $0xe0] ss:$8 sps:$4 sm:$0xff]  }
  0x75   :  { %1043 = vmatpush1.bf16.msra.mxu1 %v2549_v56  ;;  %1236 = vmatpush1.bf16.msra.mxu0 %v2552_v57  ;;  %v2633_v56 = vld [vmem:[#allocation5 + $0x248] ss:$24 sps:$4 sm:$0xff]  }
  0x76   :  { %1044 = vmatprep.subr.bf16.mxu1 %v2563_v58  ;;  %1237 = vmatprep.subr.bf16.mxu0 %v2566_v60  ;;  %v2636_v57 = vld [vmem:[#allocation5 + $0x250] ss:$24 sps:$4 sm:$0xff]   ;;  %v2641_v58 = vld [vmem:[#allocation5 + $0x27c] ss:$24 sps:$4 sm:$0xff]  }
  0x77   :  { %v2644_v60 = vld [vmem:[#allocation5 + $0x284] ss:$24 sps:$4 sm:$0xff]  }
  0x78   :  { %896 = vmatmul.mubr.bf16.gmra.mrb[8].mxu0 %v2817_v59  ;;  %976 = vmatmul.mubr.bf16.gmra.mrb[8].mxu1 %v2821_v61 }
  0x79   :  { %1045 = vmatpush1.bf16.msra.mxu1 %v2561_v62  ;;  %1238 = vmatpush1.bf16.msra.mxu0 %v2564_v63  ;;  %v2645_v62 = vld [vmem:[#allocation2 + $0x74] ss:$8 sps:$4 sm:$0xff]  }
  0x7a   :  { %1046 = vmatprep.subr.bf16.mxu1 %v2569_v0  ;;  %1239 = vmatprep.subr.bf16.mxu0 %v2572_v1  ;;  %v2871_v63 = vld [vmem:[#allocation2 + $0xf4] ss:$8 sps:$4 sm:$0xff]   ;;  %v2639_v0 = vld [vmem:[#allocation5 + $0x278] ss:$24 sps:$4 sm:$0xff]  }
  0x7b   :  { %905 = vmatprep.mubr.bf16.mxu0 %v2823_v2  ;;  %985 = vmatprep.mubr.bf16.mxu1 %v2825_v3  ;;  %v2642_v1 = vld [vmem:[#allocation5 + $0x280] ss:$24 sps:$4 sm:$0xff]  }
  0x7d   :  { %1047 = vmatpush1.bf16.msra.mxu1 %v2567_v4  ;;  %1240 = vmatpush1.bf16.msra.mxu0 %v2570_v5  ;;  %v2653_v4 = vld [vmem:[#allocation5 + $0x2ac] ss:$24 sps:$4 sm:$0xff]  }
  0x7e   :  { %1048 = vmatprep.subr.bf16.mxu1 %v2581_v6  ;;  %1241 = vmatprep.subr.bf16.mxu0 %v2584_v7  ;;  %v2656_v5 = vld [vmem:[#allocation5 + $0x2b4] ss:$24 sps:$4 sm:$0xff]   ;;  %v2649_v6 = vld [vmem:[#allocation2 + $0x70] ss:$8 sps:$4 sm:$0xff]  }
  0x7f   :  { %v2876_v7 = vld [vmem:[#allocation2 + $0xf0] ss:$8 sps:$4 sm:$0xff]  }
  0x80   :  { %906 = vmatmul.mubr.bf16.gmra.mrb[12].mxu0 %v2831_v8  ;;  %986 = vmatmul.mubr.bf16.gmra.mrb[12].mxu1 %v2833_v9 }
  0x81   :  { %1049 = vmatpush1.bf16.msra.mxu1 %v2579_v10  ;;  %1242 = vmatpush1.bf16.msra.mxu0 %v2582_v11  ;;  %v2651_v10 = vld [vmem:[#allocation5 + $0x2a8] ss:$24 sps:$4 sm:$0xff]  }
  0x82   :  { %1050 = vmatprep.subr.bf16.mxu1 %v2587_v12  ;;  %1243 = vmatprep.subr.bf16.mxu0 %v2590_v14  ;;  %v2654_v11 = vld [vmem:[#allocation5 + $0x2b0] ss:$24 sps:$4 sm:$0xff]   ;;  %v2659_v12 = vld [vmem:[#allocation5 + $0x2dc] ss:$24 sps:$4 sm:$0xff]  }
  0x83   :  { %915 = vmatprep.mubr.bf16.mxu0 %v2835_v16  ;;  %995 = vmatprep.mubr.bf16.mxu1 %v2837_v17  ;;  %v2662_v14 = vld [vmem:[#allocation5 + $0x2e4] ss:$24 sps:$4 sm:$0xff]  }
  0x85   :  { %1051 = vmatpush1.bf16.msra.mxu1 %v2585_v18  ;;  %1244 = vmatpush1.bf16.msra.mxu0 %v2588_v19  ;;  %v2657_v18 = vld [vmem:[#allocation5 + $0x2d8] ss:$24 sps:$4 sm:$0xff]  }
  0x86   :  { %1052 = vmatprep.subr.bf16.mxu1 %v2599_v20  ;;  %1245 = vmatprep.subr.bf16.mxu0 %v2602_v21  ;;  %v2660_v19 = vld [vmem:[#allocation5 + $0x2e0] ss:$24 sps:$4 sm:$0xff]  }
  0x88   :  { %916 = vmatmul.mubr.bf16.gmra.mrb[16].mxu0 %v2843_v22  ;;  %996 = vmatmul.mubr.bf16.gmra.mrb[16].mxu1 %v2845_v23 }
  0x89   :  { %1053 = vmatpush1.bf16.msra.mxu1 %v2597_v24  ;;  %1246 = vmatpush1.bf16.msra.mxu0 %v2600_v25 }
  0x8a   :  { %1054 = vmatprep.subr.bf16.mxu1 %v2605_v26  ;;  %1247 = vmatprep.subr.bf16.mxu0 %v2608_v27 }
  0x8b   :  { %925 = vmatprep.mubr.bf16.mxu0 %v2847_v28  ;;  %1005 = vmatprep.mubr.bf16.mxu1 %v2849_v29 }
  0x8d   :  { %1055 = vmatpush1.bf16.msra.mxu1 %v2603_v30  ;;  %1248 = vmatpush1.bf16.msra.mxu0 %v2606_v31 }
  0x8e   :  { %1056 = vmatprep.subr.bf16.mxu1 %v2617_v32  ;;  %1249 = vmatprep.subr.bf16.mxu0 %v2620_v33 }
  0x90   :  { %926 = vmatmul.mubr.bf16.gmra.mrb[20].mxu0 %v2855_v34  ;;  %1006 = vmatmul.mubr.bf16.gmra.mrb[20].mxu1 %v2857_v36 }
  0x91   :  { %1057 = vmatpush1.bf16.msra.mxu1 %v2615_v38  ;;  %1250 = vmatpush1.bf16.msra.mxu0 %v2618_v39 }
  0x92   :  { %1058 = vmatprep.subr.bf16.mxu1 %v2623_v40  ;;  %1251 = vmatprep.subr.bf16.mxu0 %v2626_v41 }
  0x93   :  { %935 = vmatprep.mubr.bf16.mxu0 %v2859_v44  ;;  %1015 = vmatprep.mubr.bf16.mxu1 %v2861_v45 }
  0x95   :  { %1059 = vmatpush1.bf16.msra.mxu1 %v2621_v46  ;;  %1252 = vmatpush1.bf16.msra.mxu0 %v2624_v48 }
  0x96   :  { %1060 = vmatprep.subr.bf16.mxu1 %v2635_v50  ;;  %1253 = vmatprep.subr.bf16.mxu0 %v2638_v51 }
  0x98   :  { %936 = vmatmul.mubr.bf16.gmra.mrb[24].mxu0 %v2867_v52  ;;  %1016 = vmatmul.mubr.bf16.gmra.mrb[24].mxu1 %v2869_v53 }
  0x99   :  { %1061 = vmatpush1.bf16.msra.mxu1 %v2633_v56  ;;  %1254 = vmatpush1.bf16.msra.mxu0 %v2636_v57 }
  0x9a   :  { %1062 = vmatprep.subr.bf16.mxu1 %v2641_v58  ;;  %1255 = vmatprep.subr.bf16.mxu0 %v2644_v60 }
  0x9b   :  { %945 = vmatprep.mubr.bf16.mxu0 %v2645_v62  ;;  %1025 = vmatprep.mubr.bf16.mxu1 %v2871_v63 }
  0x9d   :  { %1063 = vmatpush1.bf16.msra.mxu1 %v2639_v0  ;;  %1256 = vmatpush1.bf16.msra.mxu0 %v2642_v1 }
  0x9e   :  { %1064 = vmatprep.subr.bf16.mxu1 %v2653_v4  ;;  %1257 = vmatprep.subr.bf16.mxu0 %v2656_v5 }
  0xa0   :  { %946 = vmatmul.mubr.bf16.gmra.mrb[28].mxu0 %v2649_v6  ;;  %1026 = vmatmul.mubr.bf16.gmra.mrb[28].mxu1 %v2876_v7 }
  0xa1   :  { %1065 = vmatpush1.bf16.msra.mxu1 %v2651_v10  ;;  %1258 = vmatpush1.bf16.msra.mxu0 %v2654_v11 }
  0xa2   :  { %1066 = vmatprep.subr.bf16.mxu1 %v2659_v12  ;;  %1259 = vmatprep.subr.bf16.mxu0 %v2662_v14 }
  0xa3   :  { %1068 = vmatprep.mubr.bf16.mxu1 %v2789_v13  ;;  %1261 = vmatprep.mubr.bf16.mxu0 %v2789_v13  ;;  %v173_v13 = vlaneseq }
  0xa5   :  { %1067 = vmatpush1.bf16.msra.mxu1 %v2657_v18  ;;  %1260 = vmatpush1.bf16.msra.mxu0 %v2660_v19 }
  0xa8   :  { %1069 = vmatmul.mubr.bf16.vlgmr.msra.gmra.mrb[32].mxu1 %v2795_v35  ;;  %1262 = vmatmul.mubr.bf16.vlgmr.msra.gmra.mrb[32].mxu0 %v2795_v35  ;;  %v174_v35 = vshrl.u32 %v173_v13, 7 }
  0xa9   :  { %1078 = vmatprep.mubr.bf16.mxu1 %v2799_v42  ;;  %1271 = vmatprep.mubr.bf16.mxu0 %v2799_v42  ;;  %v171_v42 = vld [vmem:[%s3163_s2] sm:$0x3f]  ;;  %s2741_s2 = smov [#allocation7]  }
  0xaa   :  { %s2099_s13 = sshll.u32 %s2741_s2, 4  ;;  %s2100_s13 = int_to_ptr.vmem [resolvable:$true] %s2099_s13 }
  0xab   :  { %s2707_s14 = scalar_lea.vmem %s2100_s13, 12288  ;;  %p2712_p3 = scmp.lt.s32.totalorder %s2100_s13, %s2100_s13 }
  0xac   :  { %p2708_p2 = scmp.ne.s32.totalorder %s2100_s13, %s2707_s14  ;;  %p2713_p4 = scmp.lt.s32.totalorder %s2707_s14, %s2707_s14 }
  0xae   :  { %p2714_p5 = por %p2713_p4, %p2712_p3 }
  0xb0   :  { %1079 = vmatmul.mubr.bf16.gmra.mrb[36].mxu1 %v2805_v47  ;;  %1272 = vmatmul.mubr.bf16.gmra.mrb[36].mxu0 %v2805_v47  ;;  %v195_v47 = vsub.s32 5, %v174_v35  ;;  %p2715_p6 = pnand %p2714_p5, %p2708_p2 }
  0xb1   :  { %1088 = vmatprep.mubr.bf16.mxu1 %v2811_v54  ;;  %1281 = vmatprep.mubr.bf16.mxu0 %v2811_v54 }
  0xb8   :  { %1089 = vmatmul.mubr.bf16.gmra.mrb[40].mxu1 %v2817_v59  ;;  %1282 = vmatmul.mubr.bf16.gmra.mrb[40].mxu0 %v2817_v59  ;;  %v2930_v59 = vrot.slane %v171_v42, %v195_v47 }
  0xb9   :  { %1098 = vmatprep.mubr.bf16.mxu1 %v2823_v2  ;;  %1291 = vmatprep.mubr.bf16.mxu0 %v2823_v2  ;;  %v179_v2 = vsub.s32 1, %v174_v35 }
  0xc0   :  { %1099 = vmatmul.mubr.bf16.gmra.mrb[44].mxu1 %v2831_v8  ;;  %1292 = vmatmul.mubr.bf16.gmra.mrb[44].mxu0 %v2831_v8  ;;  %v2952_v8 = vrot.slane %v171_v42, %v179_v2 }
  0xc1   :  { %1108 = vmatprep.mubr.bf16.mxu1 %v2835_v16  ;;  %1301 = vmatprep.mubr.bf16.mxu0 %v2835_v16 }
  0xc8   :  { %1109 = vmatmul.mubr.bf16.gmra.mrb[48].mxu1 %v2843_v22  ;;  %1302 = vmatmul.mubr.bf16.gmra.mrb[48].mxu0 %v2843_v22 }
  0xc9   :  { %1118 = vmatprep.mubr.bf16.mxu1 %v2847_v28  ;;  %1311 = vmatprep.mubr.bf16.mxu0 %v2847_v28 }
  0xd0   :  { %1119 = vmatmul.mubr.bf16.gmra.mrb[52].mxu1 %v2855_v34  ;;  %1312 = vmatmul.mubr.bf16.gmra.mrb[52].mxu0 %v2855_v34 }
  0xd1   :  { %1128 = vmatprep.mubr.bf16.mxu1 %v2859_v44  ;;  %1321 = vmatprep.mubr.bf16.mxu0 %v2859_v44 }
  0xd8   :  { %1129 = vmatmul.mubr.bf16.gmra.mrb[56].mxu1 %v2867_v52  ;;  %1322 = vmatmul.mubr.bf16.gmra.mrb[56].mxu0 %v2867_v52 }
  0xd9   :  { %1138 = vmatprep.mubr.bf16.mxu1 %v2645_v62  ;;  %1331 = vmatprep.mubr.bf16.mxu0 %v2645_v62 }
  0xe0   :  { %1139 = vmatmul.mubr.bf16.gmra.mrb[60].mxu1 %v2649_v6  ;;  %1332 = vmatmul.mubr.bf16.gmra.mrb[60].mxu0 %v2649_v6 }
  0xe1   :  { %1148 = vmatprep.mubr.bf16.mxu1 %v2791_v15  ;;  %1341 = vmatprep.mubr.bf16.mxu0 %v2791_v15  ;;  %v183_v15 = vsub.s32 2, %v174_v35 }
  0xe8   :  { %1149 = vmatmul.mubr.bf16.gmra.mrb[64].mxu1 %v2797_v37  ;;  %1342 = vmatmul.mubr.bf16.gmra.mrb[64].mxu0 %v2797_v37  ;;  %v191_v37 = vsub.s32 4, %v174_v35 }
  0xe9   :  { %1158 = vmatprep.mubr.bf16.mxu1 %v2801_v43  ;;  %1351 = vmatprep.mubr.bf16.mxu0 %v2801_v43  ;;  %v187_v43 = vsub.s32 3, %v174_v35 }
  0xea   :  { %v2926_v54 = vrot.slane %v171_v42, %v191_v37 }
  0xf0   :  { %1159 = vmatmul.mubr.bf16.gmra.mrb[68].mxu1 %v2809_v49  ;;  %1352 = vmatmul.mubr.bf16.gmra.mrb[68].mxu0 %v2809_v49  ;;  %v2924_v49 = vrot.slane %v171_v42, %v183_v15 }
  0xf1   :  { %1168 = vmatprep.mubr.bf16.mxu1 %v2813_v55  ;;  %1361 = vmatprep.mubr.bf16.mxu0 %v2813_v55  ;;  %v2928_v55 = vrot.slane %v171_v42, %v187_v43 }
  0xf8   :  { %1169 = vmatmul.mubr.bf16.gmra.mrb[72].mxu1 %v2821_v61  ;;  %1362 = vmatmul.mubr.bf16.gmra.mrb[72].mxu0 %v2821_v61  ;;  %v175_v61 = vsub.s32 0, %v174_v35 }
  0xf9   :  { %1178 = vmatprep.mubr.bf16.mxu1 %v2825_v3  ;;  %1371 = vmatprep.mubr.bf16.mxu0 %v2825_v3 }
  0xfa   :  { %v2950_v3 = vrot.slane %v171_v42, %v175_v61 }
 0x100   :  { %1179 = vmatmul.mubr.bf16.gmra.mrb[76].mxu1 %v2833_v9  ;;  %1372 = vmatmul.mubr.bf16.gmra.mrb[76].mxu0 %v2833_v9 }
 0x101   :  { %1188 = vmatprep.mubr.bf16.mxu1 %v2837_v17  ;;  %1381 = vmatprep.mubr.bf16.mxu0 %v2837_v17 }
 0x108   :  { %1189 = vmatmul.mubr.bf16.gmra.mrb[80].mxu1 %v2845_v23  ;;  %1382 = vmatmul.mubr.bf16.gmra.mrb[80].mxu0 %v2845_v23 }
 0x109   :  { %1198 = vmatprep.mubr.bf16.mxu1 %v2849_v29  ;;  %1391 = vmatprep.mubr.bf16.mxu0 %v2849_v29 }
 0x110   :  { %1199 = vmatmul.mubr.bf16.gmra.mrb[84].mxu1 %v2857_v36  ;;  %1392 = vmatmul.mubr.bf16.gmra.mrb[84].mxu0 %v2857_v36 }
 0x111   :  { %1208 = vmatprep.mubr.bf16.mxu1 %v2861_v45  ;;  %1401 = vmatprep.mubr.bf16.mxu0 %v2861_v45 }
 0x118   :  { %1209 = vmatmul.mubr.bf16.gmra.mrb[88].mxu1 %v2869_v53  ;;  %1402 = vmatmul.mubr.bf16.gmra.mrb[88].mxu0 %v2869_v53 }
 0x119   :  { %1218 = vmatprep.mubr.bf16.mxu1 %v2871_v63  ;;  %1411 = vmatprep.mubr.bf16.mxu0 %v2871_v63 }
 0x120   :  { %1219 = vmatmul.mubr.bf16.gmra.mrb[92].mxu1 %v2876_v7  ;;  %1412 = vmatmul.mubr.bf16.gmra.mrb[92].mxu0 %v2876_v7 }
 0x13b   :  { %v877_v9 = vpop.f32.mrb[0].mxu0  ;;  %v957_v16 = vpop.f32.mrb[0].mxu1 }
 0x13c   :  { %v878_v17 = vadd.f32 %v877_v9, %v2950_v3  ;;  %v958_v20 = vadd.f32 %v957_v16, %v2950_v3  ;;  %v879_v21 = vpop.f32.mrb[1].mxu0  ;;  %v959_v22 = vpop.f32.mrb[1].mxu1 }
 0x13d   :  { %v880_v23 = vadd.f32 %v879_v21, %v2952_v8  ;;  %v960_v24 = vadd.f32 %v959_v22, %v2952_v8  ;;  %v881_v25 = vpop.f32.mrb[2].mxu0  ;;  %v961_v26 = vpop.f32.mrb[2].mxu1 }
 0x13e   :  { %v882_v27 = vadd.f32 %v881_v25, %v2950_v3  ;;  %v962_v28 = vadd.f32 %v961_v26, %v2950_v3  ;;  %v883_v29 = vpop.f32.mrb[3].mxu0  ;;  %v963_v30 = vpop.f32.mrb[3].mxu1 }
 0x13f   :  { %v2336_v31 = vpack.c.bf16 %v880_v23, %v878_v17  ;;  %v2384_v32 = vpack.c.bf16 %v960_v24, %v958_v20  ;;  %v884_v33 = vadd.f32 %v883_v29, %v2952_v8  ;;  %v964_v34 = vadd.f32 %v963_v30, %v2952_v8 }
 0x141   :  { %1998 = vst [vmem:[#allocation7] sm:$0xff] %v2336_v31  ;;  %2046 = vst [vmem:[#allocation7 + $0x180] sm:$0xff] %v2384_v32  ;;  %v2339_v36 = vpack.c.bf16 %v884_v33, %v882_v27  ;;  %v2387_v38 = vpack.c.bf16 %v964_v34, %v962_v28 }
 0x143   :  { %2001 = vst [vmem:[#allocation7 + $0x18] sm:$0xff] %v2339_v36  ;;  %2049 = vst [vmem:[#allocation7 + $0x198] sm:$0xff] %v2387_v38  ;;  %v887_v39 = vpop.f32.mrb[4].mxu0  ;;  %v967_v40 = vpop.f32.mrb[4].mxu1 }
 0x144   :  { %v888_v41 = vadd.f32 %v887_v39, %v2950_v3  ;;  %v968_v44 = vadd.f32 %v967_v40, %v2950_v3  ;;  %v889_v45 = vpop.f32.mrb[5].mxu0  ;;  %v969_v46 = vpop.f32.mrb[5].mxu1 }
 0x145   :  { %v890_v48 = vadd.f32 %v889_v45, %v2952_v8  ;;  %v970_v50 = vadd.f32 %v969_v46, %v2952_v8  ;;  %v891_v51 = vpop.f32.mrb[6].mxu0  ;;  %v971_v52 = vpop.f32.mrb[6].mxu1 }
 0x146   :  { %v892_v53 = vadd.f32 %v891_v51, %v2950_v3  ;;  %v972_v56 = vadd.f32 %v971_v52, %v2950_v3  ;;  %v893_v57 = vpop.f32.mrb[7].mxu0  ;;  %v973_v58 = vpop.f32.mrb[7].mxu1 }
 0x147   :  { %v2342_v60 = vpack.c.bf16 %v890_v48, %v888_v41  ;;  %v2390_v62 = vpack.c.bf16 %v970_v50, %v968_v44  ;;  %v894_v63 = vadd.f32 %v893_v57, %v2952_v8  ;;  %v974_v0 = vadd.f32 %v973_v58, %v2952_v8 }
 0x149   :  { %2004 = vst [vmem:[#allocation7 + $0x30] sm:$0xff] %v2342_v60  ;;  %2052 = vst [vmem:[#allocation7 + $0x1b0] sm:$0xff] %v2390_v62  ;;  %v2345_v1 = vpack.c.bf16 %v894_v63, %v892_v53  ;;  %v2393_v4 = vpack.c.bf16 %v974_v0, %v972_v56 }
 0x14b   :  { %2007 = vst [vmem:[#allocation7 + $0x48] sm:$0xff] %v2345_v1  ;;  %2055 = vst [vmem:[#allocation7 + $0x1c8] sm:$0xff] %v2393_v4  ;;  %v897_v5 = vpop.f32.mrb[8].mxu0  ;;  %v977_v6 = vpop.f32.mrb[8].mxu1 }
 0x14c   :  { %v898_v7 = vadd.f32 %v897_v5, %v2950_v3  ;;  %v978_v10 = vadd.f32 %v977_v6, %v2950_v3  ;;  %v899_v11 = vpop.f32.mrb[9].mxu0  ;;  %v979_v12 = vpop.f32.mrb[9].mxu1 }
 0x14d   :  { %v900_v14 = vadd.f32 %v899_v11, %v2952_v8  ;;  %v980_v18 = vadd.f32 %v979_v12, %v2952_v8  ;;  %v901_v19 = vpop.f32.mrb[10].mxu0  ;;  %v981_v13 = vpop.f32.mrb[10].mxu1 }
 0x14e   :  { %v902_v35 = vadd.f32 %v901_v19, %v2950_v3  ;;  %v982_v15 = vadd.f32 %v981_v13, %v2950_v3  ;;  %v903_v37 = vpop.f32.mrb[11].mxu0  ;;  %v983_v42 = vpop.f32.mrb[11].mxu1 }
 0x14f   :  { %v2348_v43 = vpack.c.bf16 %v900_v14, %v898_v7  ;;  %v2396_v47 = vpack.c.bf16 %v980_v18, %v978_v10  ;;  %v904_v61 = vadd.f32 %v903_v37, %v2952_v8  ;;  %v984_v2 = vadd.f32 %v983_v42, %v2952_v8 }
 0x151   :  { %2010 = vst [vmem:[#allocation7 + $0x60] sm:$0xff] %v2348_v43  ;;  %2058 = vst [vmem:[#allocation7 + $0x1e0] sm:$0xff] %v2396_v47  ;;  %v2351_v9 = vpack.c.bf16 %v904_v61, %v902_v35  ;;  %v2399_v16 = vpack.c.bf16 %v984_v2, %v982_v15 }
 0x153   :  { %2013 = vst [vmem:[#allocation7 + $0x78] sm:$0xff] %v2351_v9  ;;  %2061 = vst [vmem:[#allocation7 + $0x1f8] sm:$0xff] %v2399_v16  ;;  %v907_v17 = vpop.f32.mrb[12].mxu0  ;;  %v987_v20 = vpop.f32.mrb[12].mxu1 }
 0x154   :  { %v908_v21 = vadd.f32 %v907_v17, %v2950_v3  ;;  %v988_v22 = vadd.f32 %v987_v20, %v2950_v3  ;;  %v909_v23 = vpop.f32.mrb[13].mxu0  ;;  %v989_v24 = vpop.f32.mrb[13].mxu1 }
 0x155   :  { %v910_v25 = vadd.f32 %v909_v23, %v2952_v8  ;;  %v990_v26 = vadd.f32 %v989_v24, %v2952_v8  ;;  %v911_v27 = vpop.f32.mrb[14].mxu0  ;;  %v991_v28 = vpop.f32.mrb[14].mxu1 }
 0x156   :  { %v912_v29 = vadd.f32 %v911_v27, %v2950_v3  ;;  %v992_v30 = vadd.f32 %v991_v28, %v2950_v3  ;;  %v913_v31 = vpop.f32.mrb[15].mxu0  ;;  %v993_v32 = vpop.f32.mrb[15].mxu1 }
 0x157   :  { %v2354_v33 = vpack.c.bf16 %v910_v25, %v908_v21  ;;  %v2402_v34 = vpack.c.bf16 %v990_v26, %v988_v22  ;;  %v914_v36 = vadd.f32 %v913_v31, %v2952_v8  ;;  %v994_v38 = vadd.f32 %v993_v32, %v2952_v8 }
 0x159   :  { %2016 = vst [vmem:[#allocation7 + $0x90] sm:$0xff] %v2354_v33  ;;  %2064 = vst [vmem:[#allocation7 + $0x210] sm:$0xff] %v2402_v34  ;;  %v2357_v39 = vpack.c.bf16 %v914_v36, %v912_v29  ;;  %v2405_v40 = vpack.c.bf16 %v994_v38, %v992_v30 }
 0x15b   :  { %2019 = vst [vmem:[#allocation7 + $0xa8] sm:$0xff] %v2357_v39  ;;  %2067 = vst [vmem:[#allocation7 + $0x228] sm:$0xff] %v2405_v40  ;;  %v917_v41 = vpop.f32.mrb[16].mxu0  ;;  %v997_v44 = vpop.f32.mrb[16].mxu1 }
 0x15c   :  { %v918_v45 = vadd.f32 %v917_v41, %v2950_v3  ;;  %v998_v46 = vadd.f32 %v997_v44, %v2950_v3  ;;  %v919_v48 = vpop.f32.mrb[17].mxu0  ;;  %v999_v50 = vpop.f32.mrb[17].mxu1 }
 0x15d   :  { %v920_v51 = vadd.f32 %v919_v48, %v2952_v8  ;;  %v1000_v52 = vadd.f32 %v999_v50, %v2952_v8  ;;  %v921_v53 = vpop.f32.mrb[18].mxu0  ;;  %v1001_v56 = vpop.f32.mrb[18].mxu1 }
 0x15e   :  { %v922_v57 = vadd.f32 %v921_v53, %v2950_v3  ;;  %v1002_v58 = vadd.f32 %v1001_v56, %v2950_v3  ;;  %v923_v60 = vpop.f32.mrb[19].mxu0  ;;  %v1003_v62 = vpop.f32.mrb[19].mxu1 }
 0x15f   :  { %v2360_v63 = vpack.c.bf16 %v920_v51, %v918_v45  ;;  %v2408_v0 = vpack.c.bf16 %v1000_v52, %v998_v46  ;;  %v924_v1 = vadd.f32 %v923_v60, %v2952_v8  ;;  %v1004_v4 = vadd.f32 %v1003_v62, %v2952_v8 }
 0x161   :  { %2022 = vst [vmem:[#allocation7 + $0xc0] sm:$0xff] %v2360_v63  ;;  %2070 = vst [vmem:[#allocation7 + $0x240] sm:$0xff] %v2408_v0  ;;  %v2363_v5 = vpack.c.bf16 %v924_v1, %v922_v57  ;;  %v2411_v6 = vpack.c.bf16 %v1004_v4, %v1002_v58 }
 0x163   :  { %2025 = vst [vmem:[#allocation7 + $0xd8] sm:$0xff] %v2363_v5  ;;  %2073 = vst [vmem:[#allocation7 + $0x258] sm:$0xff] %v2411_v6  ;;  %v927_v7 = vpop.f32.mrb[20].mxu0  ;;  %v1007_v10 = vpop.f32.mrb[20].mxu1 }
 0x164   :  { %v928_v11 = vadd.f32 %v927_v7, %v2950_v3  ;;  %v1008_v12 = vadd.f32 %v1007_v10, %v2950_v3  ;;  %v929_v14 = vpop.f32.mrb[21].mxu0  ;;  %v1009_v18 = vpop.f32.mrb[21].mxu1 }
 0x165   :  { %v930_v19 = vadd.f32 %v929_v14, %v2952_v8  ;;  %v1010_v13 = vadd.f32 %v1009_v18, %v2952_v8  ;;  %v931_v35 = vpop.f32.mrb[22].mxu0  ;;  %v1011_v15 = vpop.f32.mrb[22].mxu1 }
 0x166   :  { %v932_v37 = vadd.f32 %v931_v35, %v2950_v3  ;;  %v1012_v42 = vadd.f32 %v1011_v15, %v2950_v3  ;;  %v933_v43 = vpop.f32.mrb[23].mxu0  ;;  %v1013_v47 = vpop.f32.mrb[23].mxu1 }
 0x167   :  { %v2366_v61 = vpack.c.bf16 %v930_v19, %v928_v11  ;;  %v2414_v2 = vpack.c.bf16 %v1010_v13, %v1008_v12  ;;  %v934_v9 = vadd.f32 %v933_v43, %v2952_v8  ;;  %v1014_v16 = vadd.f32 %v1013_v47, %v2952_v8 }
 0x169   :  { %2028 = vst [vmem:[#allocation7 + $0xf0] sm:$0xff] %v2366_v61  ;;  %2076 = vst [vmem:[#allocation7 + $0x270] sm:$0xff] %v2414_v2  ;;  %v2369_v17 = vpack.c.bf16 %v934_v9, %v932_v37  ;;  %v2417_v20 = vpack.c.bf16 %v1014_v16, %v1012_v42 }
 0x16b   :  { %2031 = vst [vmem:[#allocation7 + $0x108] sm:$0xff] %v2369_v17  ;;  %2079 = vst [vmem:[#allocation7 + $0x288] sm:$0xff] %v2417_v20  ;;  %v937_v21 = vpop.f32.mrb[24].mxu0  ;;  %v1017_v22 = vpop.f32.mrb[24].mxu1 }
 0x16c   :  { %v938_v23 = vadd.f32 %v937_v21, %v2950_v3  ;;  %v1018_v24 = vadd.f32 %v1017_v22, %v2950_v3  ;;  %v939_v25 = vpop.f32.mrb[25].mxu0  ;;  %v1019_v26 = vpop.f32.mrb[25].mxu1 }
 0x16d   :  { %v940_v27 = vadd.f32 %v939_v25, %v2952_v8  ;;  %v1020_v28 = vadd.f32 %v1019_v26, %v2952_v8  ;;  %v941_v29 = vpop.f32.mrb[26].mxu0  ;;  %v1021_v30 = vpop.f32.mrb[26].mxu1 }
 0x16e   :  { %v942_v31 = vadd.f32 %v941_v29, %v2950_v3  ;;  %v1022_v32 = vadd.f32 %v1021_v30, %v2950_v3  ;;  %v943_v33 = vpop.f32.mrb[27].mxu0  ;;  %v1023_v34 = vpop.f32.mrb[27].mxu1 }
 0x16f   :  { %v2372_v36 = vpack.c.bf16 %v940_v27, %v938_v23  ;;  %v2420_v38 = vpack.c.bf16 %v1020_v28, %v1018_v24  ;;  %v944_v39 = vadd.f32 %v943_v33, %v2952_v8  ;;  %v1024_v40 = vadd.f32 %v1023_v34, %v2952_v8 }
 0x171   :  { %2034 = vst [vmem:[#allocation7 + $0x120] sm:$0xff] %v2372_v36  ;;  %2082 = vst [vmem:[#allocation7 + $0x2a0] sm:$0xff] %v2420_v38  ;;  %v2375_v41 = vpack.c.bf16 %v944_v39, %v942_v31  ;;  %v2423_v44 = vpack.c.bf16 %v1024_v40, %v1022_v32 }
 0x173   :  { %2037 = vst [vmem:[#allocation7 + $0x138] sm:$0xff] %v2375_v41  ;;  %2085 = vst [vmem:[#allocation7 + $0x2b8] sm:$0xff] %v2423_v44  ;;  %v947_v45 = vpop.f32.mrb[28].mxu0  ;;  %v1027_v46 = vpop.f32.mrb[28].mxu1 }
 0x174   :  { %v948_v48 = vadd.f32 %v947_v45, %v2950_v3  ;;  %v1028_v50 = vadd.f32 %v1027_v46, %v2950_v3  ;;  %v949_v51 = vpop.f32.mrb[29].mxu0  ;;  %v1029_v52 = vpop.f32.mrb[29].mxu1 }
 0x175   :  { %v950_v53 = vadd.f32 %v949_v51, %v2952_v8  ;;  %v1030_v56 = vadd.f32 %v1029_v52, %v2952_v8  ;;  %v951_v57 = vpop.f32.mrb[30].mxu0  ;;  %v1031_v58 = vpop.f32.mrb[30].mxu1 }
 0x176   :  { %v952_v60 = vadd.f32 %v951_v57, %v2950_v3  ;;  %v1032_v62 = vadd.f32 %v1031_v58, %v2950_v3  ;;  %v953_v63 = vpop.f32.mrb[31].mxu0  ;;  %v1033_v0 = vpop.f32.mrb[31].mxu1 }
 0x177   :  { %v2378_v1 = vpack.c.bf16 %v950_v53, %v948_v48  ;;  %v2426_v4 = vpack.c.bf16 %v1030_v56, %v1028_v50  ;;  %v954_v5 = vadd.f32 %v953_v63, %v2952_v8  ;;  %v1034_v6 = vadd.f32 %v1033_v0, %v2952_v8 }
 0x179   :  { %2040 = vst [vmem:[#allocation7 + $0x150] sm:$0xff] %v2378_v1  ;;  %2088 = vst [vmem:[#allocation7 + $0x2d0] sm:$0xff] %v2426_v4  ;;  %v2381_v7 = vpack.c.bf16 %v954_v5, %v952_v60  ;;  %v2429_v10 = vpack.c.bf16 %v1034_v6, %v1032_v62 }
 0x17b   :  { %2043 = vst [vmem:[#allocation7 + $0x168] sm:$0xff] %v2381_v7  ;;  %2091 = vst [vmem:[#allocation7 + $0x2e8] sm:$0xff] %v2429_v10  ;;  %v1070_v11 = vpop.f32.mrb[32].mxu1  ;;  %v1263_v12 = vpop.f32.mrb[32].mxu0 }
 0x17c   :  { %v1071_v14 = vadd.f32 %v1070_v11, %v2924_v49  ;;  %v1264_v3 = vadd.f32 %v1263_v12, %v2926_v54  ;;  %v1072_v18 = vpop.f32.mrb[33].mxu1  ;;  %v1265_v19 = vpop.f32.mrb[33].mxu0 }
 0x17d   :  { %v1073_v13 = vadd.f32 %v1072_v18, %v2928_v55  ;;  %v1266_v35 = vadd.f32 %v1265_v19, %v2930_v59  ;;  %v1074_v15 = vpop.f32.mrb[34].mxu1  ;;  %v1267_v8 = vpop.f32.mrb[34].mxu0 }
 0x17e   :  { %v1075_v37 = vadd.f32 %v1074_v15, %v2924_v49  ;;  %v1268_v42 = vadd.f32 %v1267_v8, %v2926_v54  ;;  %v1076_v43 = vpop.f32.mrb[35].mxu1  ;;  %v1269_v47 = vpop.f32.mrb[35].mxu0 }
 0x17f   :  { %v2337_v61 = vpack.c.bf16 %v1073_v13, %v1071_v14  ;;  %v2338_v2 = vpack.c.bf16 %v1266_v35, %v1264_v3  ;;  %v1077_v9 = vadd.f32 %v1076_v43, %v2928_v55  ;;  %v1270_v16 = vadd.f32 %v1269_v47, %v2930_v59 }
 0x181   :  { %1999 = vst [vmem:[#allocation7 + $0x8] sm:$0xff] %v2337_v61  ;;  %2000 = vst [vmem:[#allocation7 + $0x10] sm:$0xff] %v2338_v2  ;;  %v2340_v17 = vpack.c.bf16 %v1077_v9, %v1075_v37  ;;  %v2341_v20 = vpack.c.bf16 %v1270_v16, %v1268_v42 }
 0x183   :  { %2002 = vst [vmem:[#allocation7 + $0x20] sm:$0xff] %v2340_v17  ;;  %2003 = vst [vmem:[#allocation7 + $0x28] sm:$0xff] %v2341_v20  ;;  %v1080_v21 = vpop.f32.mrb[36].mxu1  ;;  %v1273_v22 = vpop.f32.mrb[36].mxu0 }
 0x184   :  { %v1081_v23 = vadd.f32 %v1080_v21, %v2924_v49  ;;  %v1274_v24 = vadd.f32 %v1273_v22, %v2926_v54  ;;  %v1082_v25 = vpop.f32.mrb[37].mxu1  ;;  %v1275_v26 = vpop.f32.mrb[37].mxu0 }
 0x185   :  { %v1083_v27 = vadd.f32 %v1082_v25, %v2928_v55  ;;  %v1276_v28 = vadd.f32 %v1275_v26, %v2930_v59  ;;  %v1084_v29 = vpop.f32.mrb[38].mxu1  ;;  %v1277_v30 = vpop.f32.mrb[38].mxu0 }
 0x186   :  { %v1085_v31 = vadd.f32 %v1084_v29, %v2924_v49  ;;  %v1278_v32 = vadd.f32 %v1277_v30, %v2926_v54  ;;  %v1086_v33 = vpop.f32.mrb[39].mxu1  ;;  %v1279_v34 = vpop.f32.mrb[39].mxu0 }
 0x187   :  { %v2343_v36 = vpack.c.bf16 %v1083_v27, %v1081_v23  ;;  %v2344_v38 = vpack.c.bf16 %v1276_v28, %v1274_v24  ;;  %v1087_v39 = vadd.f32 %v1086_v33, %v2928_v55  ;;  %v1280_v40 = vadd.f32 %v1279_v34, %v2930_v59 }
 0x189   :  { %2005 = vst [vmem:[#allocation7 + $0x38] sm:$0xff] %v2343_v36  ;;  %2006 = vst [vmem:[#allocation7 + $0x40] sm:$0xff] %v2344_v38  ;;  %v2346_v41 = vpack.c.bf16 %v1087_v39, %v1085_v31  ;;  %v2347_v44 = vpack.c.bf16 %v1280_v40, %v1278_v32 }
 0x18b   :  { %2008 = vst [vmem:[#allocation7 + $0x50] sm:$0xff] %v2346_v41  ;;  %2009 = vst [vmem:[#allocation7 + $0x58] sm:$0xff] %v2347_v44  ;;  %v1090_v45 = vpop.f32.mrb[40].mxu1  ;;  %v1283_v46 = vpop.f32.mrb[40].mxu0 }
 0x18c   :  { %v1091_v48 = vadd.f32 %v1090_v45, %v2924_v49  ;;  %v1284_v50 = vadd.f32 %v1283_v46, %v2926_v54  ;;  %v1092_v51 = vpop.f32.mrb[41].mxu1  ;;  %v1285_v52 = vpop.f32.mrb[41].mxu0 }
 0x18d   :  { %v1093_v53 = vadd.f32 %v1092_v51, %v2928_v55  ;;  %v1286_v56 = vadd.f32 %v1285_v52, %v2930_v59  ;;  %v1094_v57 = vpop.f32.mrb[42].mxu1  ;;  %v1287_v58 = vpop.f32.mrb[42].mxu0 }
 0x18e   :  { %v1095_v60 = vadd.f32 %v1094_v57, %v2924_v49  ;;  %v1288_v62 = vadd.f32 %v1287_v58, %v2926_v54  ;;  %v1096_v63 = vpop.f32.mrb[43].mxu1  ;;  %v1289_v0 = vpop.f32.mrb[43].mxu0 }
 0x18f   :  { %v2349_v1 = vpack.c.bf16 %v1093_v53, %v1091_v48  ;;  %v2350_v4 = vpack.c.bf16 %v1286_v56, %v1284_v50  ;;  %v1097_v5 = vadd.f32 %v1096_v63, %v2928_v55  ;;  %v1290_v6 = vadd.f32 %v1289_v0, %v2930_v59 }
 0x191   :  { %2011 = vst [vmem:[#allocation7 + $0x68] sm:$0xff] %v2349_v1  ;;  %2012 = vst [vmem:[#allocation7 + $0x70] sm:$0xff] %v2350_v4  ;;  %v2352_v7 = vpack.c.bf16 %v1097_v5, %v1095_v60  ;;  %v2353_v10 = vpack.c.bf16 %v1290_v6, %v1288_v62 }
 0x193   :  { %2014 = vst [vmem:[#allocation7 + $0x80] sm:$0xff] %v2352_v7  ;;  %2015 = vst [vmem:[#allocation7 + $0x88] sm:$0xff] %v2353_v10  ;;  %v1100_v11 = vpop.f32.mrb[44].mxu1  ;;  %v1293_v12 = vpop.f32.mrb[44].mxu0 }
 0x194   :  { %v1101_v14 = vadd.f32 %v1100_v11, %v2924_v49  ;;  %v1294_v3 = vadd.f32 %v1293_v12, %v2926_v54  ;;  %v1102_v18 = vpop.f32.mrb[45].mxu1  ;;  %v1295_v19 = vpop.f32.mrb[45].mxu0 }
 0x195   :  { %v1103_v13 = vadd.f32 %v1102_v18, %v2928_v55  ;;  %v1296_v35 = vadd.f32 %v1295_v19, %v2930_v59  ;;  %v1104_v15 = vpop.f32.mrb[46].mxu1  ;;  %v1297_v8 = vpop.f32.mrb[46].mxu0 }
 0x196   :  { %v1105_v37 = vadd.f32 %v1104_v15, %v2924_v49  ;;  %v1298_v42 = vadd.f32 %v1297_v8, %v2926_v54  ;;  %v1106_v43 = vpop.f32.mrb[47].mxu1  ;;  %v1299_v47 = vpop.f32.mrb[47].mxu0 }
 0x197   :  { %v2355_v61 = vpack.c.bf16 %v1103_v13, %v1101_v14  ;;  %v2356_v2 = vpack.c.bf16 %v1296_v35, %v1294_v3  ;;  %v1107_v9 = vadd.f32 %v1106_v43, %v2928_v55  ;;  %v1300_v16 = vadd.f32 %v1299_v47, %v2930_v59 }
 0x199   :  { %2017 = vst [vmem:[#allocation7 + $0x98] sm:$0xff] %v2355_v61  ;;  %2018 = vst [vmem:[#allocation7 + $0xa0] sm:$0xff] %v2356_v2  ;;  %v2358_v17 = vpack.c.bf16 %v1107_v9, %v1105_v37  ;;  %v2359_v20 = vpack.c.bf16 %v1300_v16, %v1298_v42 }
 0x19b   :  { %2020 = vst [vmem:[#allocation7 + $0xb0] sm:$0xff] %v2358_v17  ;;  %2021 = vst [vmem:[#allocation7 + $0xb8] sm:$0xff] %v2359_v20  ;;  %v1110_v21 = vpop.f32.mrb[48].mxu1  ;;  %v1303_v22 = vpop.f32.mrb[48].mxu0 }
 0x19c   :  { %v1111_v23 = vadd.f32 %v1110_v21, %v2924_v49  ;;  %v1304_v24 = vadd.f32 %v1303_v22, %v2926_v54  ;;  %v1112_v25 = vpop.f32.mrb[49].mxu1  ;;  %v1305_v26 = vpop.f32.mrb[49].mxu0 }
 0x19d   :  { %v1113_v27 = vadd.f32 %v1112_v25, %v2928_v55  ;;  %v1306_v28 = vadd.f32 %v1305_v26, %v2930_v59  ;;  %v1114_v29 = vpop.f32.mrb[50].mxu1  ;;  %v1307_v30 = vpop.f32.mrb[50].mxu0 }
 0x19e   :  { %v1115_v31 = vadd.f32 %v1114_v29, %v2924_v49  ;;  %v1308_v32 = vadd.f32 %v1307_v30, %v2926_v54  ;;  %v1116_v33 = vpop.f32.mrb[51].mxu1  ;;  %v1309_v34 = vpop.f32.mrb[51].mxu0 }
 0x19f   :  { %v2361_v36 = vpack.c.bf16 %v1113_v27, %v1111_v23  ;;  %v2362_v38 = vpack.c.bf16 %v1306_v28, %v1304_v24  ;;  %v1117_v39 = vadd.f32 %v1116_v33, %v2928_v55  ;;  %v1310_v40 = vadd.f32 %v1309_v34, %v2930_v59 }
 0x1a1   :  { %2023 = vst [vmem:[#allocation7 + $0xc8] sm:$0xff] %v2361_v36  ;;  %2024 = vst [vmem:[#allocation7 + $0xd0] sm:$0xff] %v2362_v38  ;;  %v2364_v41 = vpack.c.bf16 %v1117_v39, %v1115_v31  ;;  %v2365_v44 = vpack.c.bf16 %v1310_v40, %v1308_v32 }
 0x1a3   :  { %2026 = vst [vmem:[#allocation7 + $0xe0] sm:$0xff] %v2364_v41  ;;  %2027 = vst [vmem:[#allocation7 + $0xe8] sm:$0xff] %v2365_v44  ;;  %v1120_v45 = vpop.f32.mrb[52].mxu1  ;;  %v1313_v46 = vpop.f32.mrb[52].mxu0 }
 0x1a4   :  { %v1121_v48 = vadd.f32 %v1120_v45, %v2924_v49  ;;  %v1314_v50 = vadd.f32 %v1313_v46, %v2926_v54  ;;  %v1122_v51 = vpop.f32.mrb[53].mxu1  ;;  %v1315_v52 = vpop.f32.mrb[53].mxu0 }
 0x1a5   :  { %v1123_v53 = vadd.f32 %v1122_v51, %v2928_v55  ;;  %v1316_v56 = vadd.f32 %v1315_v52, %v2930_v59  ;;  %v1124_v57 = vpop.f32.mrb[54].mxu1  ;;  %v1317_v58 = vpop.f32.mrb[54].mxu0 }
 0x1a6   :  { %v1125_v60 = vadd.f32 %v1124_v57, %v2924_v49  ;;  %v1318_v62 = vadd.f32 %v1317_v58, %v2926_v54  ;;  %v1126_v63 = vpop.f32.mrb[55].mxu1  ;;  %v1319_v0 = vpop.f32.mrb[55].mxu0 }
 0x1a7   :  { %v2367_v1 = vpack.c.bf16 %v1123_v53, %v1121_v48  ;;  %v2368_v4 = vpack.c.bf16 %v1316_v56, %v1314_v50  ;;  %v1127_v5 = vadd.f32 %v1126_v63, %v2928_v55  ;;  %v1320_v6 = vadd.f32 %v1319_v0, %v2930_v59 }
 0x1a9   :  { %2029 = vst [vmem:[#allocation7 + $0xf8] sm:$0xff] %v2367_v1  ;;  %2030 = vst [vmem:[#allocation7 + $0x100] sm:$0xff] %v2368_v4  ;;  %v2370_v7 = vpack.c.bf16 %v1127_v5, %v1125_v60  ;;  %v2371_v10 = vpack.c.bf16 %v1320_v6, %v1318_v62 }
 0x1ab   :  { %2032 = vst [vmem:[#allocation7 + $0x110] sm:$0xff] %v2370_v7  ;;  %2033 = vst [vmem:[#allocation7 + $0x118] sm:$0xff] %v2371_v10  ;;  %v1130_v11 = vpop.f32.mrb[56].mxu1  ;;  %v1323_v12 = vpop.f32.mrb[56].mxu0 }
 0x1ac   :  { %v1131_v14 = vadd.f32 %v1130_v11, %v2924_v49  ;;  %v1324_v3 = vadd.f32 %v1323_v12, %v2926_v54  ;;  %v1132_v18 = vpop.f32.mrb[57].mxu1  ;;  %v1325_v19 = vpop.f32.mrb[57].mxu0 }
 0x1ad   :  { %v1133_v13 = vadd.f32 %v1132_v18, %v2928_v55  ;;  %v1326_v35 = vadd.f32 %v1325_v19, %v2930_v59  ;;  %v1134_v15 = vpop.f32.mrb[58].mxu1  ;;  %v1327_v8 = vpop.f32.mrb[58].mxu0 }
 0x1ae   :  { %v1135_v37 = vadd.f32 %v1134_v15, %v2924_v49  ;;  %v1328_v42 = vadd.f32 %v1327_v8, %v2926_v54  ;;  %v1136_v43 = vpop.f32.mrb[59].mxu1  ;;  %v1329_v47 = vpop.f32.mrb[59].mxu0 }
 0x1af   :  { %v2373_v61 = vpack.c.bf16 %v1133_v13, %v1131_v14  ;;  %v2374_v2 = vpack.c.bf16 %v1326_v35, %v1324_v3  ;;  %v1137_v9 = vadd.f32 %v1136_v43, %v2928_v55  ;;  %v1330_v16 = vadd.f32 %v1329_v47, %v2930_v59 }
 0x1b1   :  { %2035 = vst [vmem:[#allocation7 + $0x128] sm:$0xff] %v2373_v61  ;;  %2036 = vst [vmem:[#allocation7 + $0x130] sm:$0xff] %v2374_v2  ;;  %v2376_v17 = vpack.c.bf16 %v1137_v9, %v1135_v37  ;;  %v2377_v20 = vpack.c.bf16 %v1330_v16, %v1328_v42 }
 0x1b3   :  { %2038 = vst [vmem:[#allocation7 + $0x140] sm:$0xff] %v2376_v17  ;;  %2039 = vst [vmem:[#allocation7 + $0x148] sm:$0xff] %v2377_v20  ;;  %v1140_v21 = vpop.f32.mrb[60].mxu1  ;;  %v1333_v22 = vpop.f32.mrb[60].mxu0 }
 0x1b4   :  { %v1141_v23 = vadd.f32 %v1140_v21, %v2924_v49  ;;  %v1334_v24 = vadd.f32 %v1333_v22, %v2926_v54  ;;  %v1142_v25 = vpop.f32.mrb[61].mxu1  ;;  %v1335_v26 = vpop.f32.mrb[61].mxu0 }
 0x1b5   :  { %v1143_v27 = vadd.f32 %v1142_v25, %v2928_v55  ;;  %v1336_v28 = vadd.f32 %v1335_v26, %v2930_v59  ;;  %v1144_v29 = vpop.f32.mrb[62].mxu1  ;;  %v1337_v30 = vpop.f32.mrb[62].mxu0 }
 0x1b6   :  { %v1145_v31 = vadd.f32 %v1144_v29, %v2924_v49  ;;  %v1338_v32 = vadd.f32 %v1337_v30, %v2926_v54  ;;  %v1146_v33 = vpop.f32.mrb[63].mxu1  ;;  %v1339_v34 = vpop.f32.mrb[63].mxu0 }
 0x1b7   :  { %v2379_v36 = vpack.c.bf16 %v1143_v27, %v1141_v23  ;;  %v2380_v38 = vpack.c.bf16 %v1336_v28, %v1334_v24  ;;  %v1147_v39 = vadd.f32 %v1146_v33, %v2928_v55  ;;  %v1340_v40 = vadd.f32 %v1339_v34, %v2930_v59 }
 0x1b9   :  { %2041 = vst [vmem:[#allocation7 + $0x158] sm:$0xff] %v2379_v36  ;;  %2042 = vst [vmem:[#allocation7 + $0x160] sm:$0xff] %v2380_v38  ;;  %v2382_v41 = vpack.c.bf16 %v1147_v39, %v1145_v31  ;;  %v2383_v44 = vpack.c.bf16 %v1340_v40, %v1338_v32 }
 0x1bb   :  { %2044 = vst [vmem:[#allocation7 + $0x170] sm:$0xff] %v2382_v41  ;;  %2045 = vst [vmem:[#allocation7 + $0x178] sm:$0xff] %v2383_v44  ;;  %v1150_v45 = vpop.f32.mrb[64].mxu1  ;;  %v1343_v46 = vpop.f32.mrb[64].mxu0 }
 0x1bc   :  { %v1151_v48 = vadd.f32 %v1150_v45, %v2924_v49  ;;  %v1344_v50 = vadd.f32 %v1343_v46, %v2926_v54  ;;  %v1152_v51 = vpop.f32.mrb[65].mxu1  ;;  %v1345_v52 = vpop.f32.mrb[65].mxu0 }
 0x1bd   :  { %v1153_v53 = vadd.f32 %v1152_v51, %v2928_v55  ;;  %v1346_v56 = vadd.f32 %v1345_v52, %v2930_v59  ;;  %v1154_v57 = vpop.f32.mrb[66].mxu1  ;;  %v1347_v58 = vpop.f32.mrb[66].mxu0 }
 0x1be   :  { %v1155_v60 = vadd.f32 %v1154_v57, %v2924_v49  ;;  %v1348_v62 = vadd.f32 %v1347_v58, %v2926_v54  ;;  %v1156_v63 = vpop.f32.mrb[67].mxu1  ;;  %v1349_v0 = vpop.f32.mrb[67].mxu0 }
 0x1bf   :  { %v2385_v1 = vpack.c.bf16 %v1153_v53, %v1151_v48  ;;  %v2386_v4 = vpack.c.bf16 %v1346_v56, %v1344_v50  ;;  %v1157_v5 = vadd.f32 %v1156_v63, %v2928_v55  ;;  %v1350_v6 = vadd.f32 %v1349_v0, %v2930_v59 }
 0x1c1   :  { %2047 = vst [vmem:[#allocation7 + $0x188] sm:$0xff] %v2385_v1  ;;  %2048 = vst [vmem:[#allocation7 + $0x190] sm:$0xff] %v2386_v4  ;;  %v2388_v7 = vpack.c.bf16 %v1157_v5, %v1155_v60  ;;  %v2389_v10 = vpack.c.bf16 %v1350_v6, %v1348_v62 }
 0x1c3   :  { %2050 = vst [vmem:[#allocation7 + $0x1a0] sm:$0xff] %v2388_v7  ;;  %2051 = vst [vmem:[#allocation7 + $0x1a8] sm:$0xff] %v2389_v10  ;;  %v1160_v11 = vpop.f32.mrb[68].mxu1  ;;  %v1353_v12 = vpop.f32.mrb[68].mxu0 }
 0x1c4   :  { %v1161_v14 = vadd.f32 %v1160_v11, %v2924_v49  ;;  %v1354_v3 = vadd.f32 %v1353_v12, %v2926_v54  ;;  %v1162_v18 = vpop.f32.mrb[69].mxu1  ;;  %v1355_v19 = vpop.f32.mrb[69].mxu0 }
 0x1c5   :  { %v1163_v13 = vadd.f32 %v1162_v18, %v2928_v55  ;;  %v1356_v35 = vadd.f32 %v1355_v19, %v2930_v59  ;;  %v1164_v15 = vpop.f32.mrb[70].mxu1  ;;  %v1357_v8 = vpop.f32.mrb[70].mxu0 }
 0x1c6   :  { %v1165_v37 = vadd.f32 %v1164_v15, %v2924_v49  ;;  %v1358_v42 = vadd.f32 %v1357_v8, %v2926_v54  ;;  %v1166_v43 = vpop.f32.mrb[71].mxu1  ;;  %v1359_v47 = vpop.f32.mrb[71].mxu0 }
 0x1c7   :  { %v2391_v61 = vpack.c.bf16 %v1163_v13, %v1161_v14  ;;  %v2392_v2 = vpack.c.bf16 %v1356_v35, %v1354_v3  ;;  %v1167_v9 = vadd.f32 %v1166_v43, %v2928_v55  ;;  %v1360_v16 = vadd.f32 %v1359_v47, %v2930_v59 }
 0x1c9   :  { %2053 = vst [vmem:[#allocation7 + $0x1b8] sm:$0xff] %v2391_v61  ;;  %2054 = vst [vmem:[#allocation7 + $0x1c0] sm:$0xff] %v2392_v2  ;;  %v2394_v17 = vpack.c.bf16 %v1167_v9, %v1165_v37  ;;  %v2395_v20 = vpack.c.bf16 %v1360_v16, %v1358_v42 }
 0x1cb   :  { %2056 = vst [vmem:[#allocation7 + $0x1d0] sm:$0xff] %v2394_v17  ;;  %2057 = vst [vmem:[#allocation7 + $0x1d8] sm:$0xff] %v2395_v20  ;;  %v1170_v21 = vpop.f32.mrb[72].mxu1  ;;  %v1363_v22 = vpop.f32.mrb[72].mxu0 }
 0x1cc   :  { %v1171_v23 = vadd.f32 %v1170_v21, %v2924_v49  ;;  %v1364_v24 = vadd.f32 %v1363_v22, %v2926_v54  ;;  %v1172_v25 = vpop.f32.mrb[73].mxu1  ;;  %v1365_v26 = vpop.f32.mrb[73].mxu0 }
 0x1cd   :  { %v1173_v27 = vadd.f32 %v1172_v25, %v2928_v55  ;;  %v1366_v28 = vadd.f32 %v1365_v26, %v2930_v59  ;;  %v1174_v29 = vpop.f32.mrb[74].mxu1  ;;  %v1367_v30 = vpop.f32.mrb[74].mxu0 }
 0x1ce   :  { %v1175_v31 = vadd.f32 %v1174_v29, %v2924_v49  ;;  %v1368_v32 = vadd.f32 %v1367_v30, %v2926_v54  ;;  %v1176_v33 = vpop.f32.mrb[75].mxu1  ;;  %v1369_v34 = vpop.f32.mrb[75].mxu0 }
 0x1cf   :  { %v2397_v36 = vpack.c.bf16 %v1173_v27, %v1171_v23  ;;  %v2398_v38 = vpack.c.bf16 %v1366_v28, %v1364_v24  ;;  %v1177_v39 = vadd.f32 %v1176_v33, %v2928_v55  ;;  %v1370_v40 = vadd.f32 %v1369_v34, %v2930_v59 }
 0x1d1   :  { %2059 = vst [vmem:[#allocation7 + $0x1e8] sm:$0xff] %v2397_v36  ;;  %2060 = vst [vmem:[#allocation7 + $0x1f0] sm:$0xff] %v2398_v38  ;;  %v2400_v41 = vpack.c.bf16 %v1177_v39, %v1175_v31  ;;  %v2401_v44 = vpack.c.bf16 %v1370_v40, %v1368_v32 }
 0x1d3   :  { %2062 = vst [vmem:[#allocation7 + $0x200] sm:$0xff] %v2400_v41  ;;  %2063 = vst [vmem:[#allocation7 + $0x208] sm:$0xff] %v2401_v44  ;;  %v1180_v45 = vpop.f32.mrb[76].mxu1  ;;  %v1373_v46 = vpop.f32.mrb[76].mxu0 }
 0x1d4   :  { %v1181_v48 = vadd.f32 %v1180_v45, %v2924_v49  ;;  %v1374_v50 = vadd.f32 %v1373_v46, %v2926_v54  ;;  %v1182_v51 = vpop.f32.mrb[77].mxu1  ;;  %v1375_v52 = vpop.f32.mrb[77].mxu0 }
 0x1d5   :  { %v1183_v53 = vadd.f32 %v1182_v51, %v2928_v55  ;;  %v1376_v56 = vadd.f32 %v1375_v52, %v2930_v59  ;;  %v1184_v57 = vpop.f32.mrb[78].mxu1  ;;  %v1377_v58 = vpop.f32.mrb[78].mxu0 }
 0x1d6   :  { %v1185_v60 = vadd.f32 %v1184_v57, %v2924_v49  ;;  %v1378_v62 = vadd.f32 %v1377_v58, %v2926_v54  ;;  %v1186_v63 = vpop.f32.mrb[79].mxu1  ;;  %v1379_v0 = vpop.f32.mrb[79].mxu0 }
 0x1d7   :  { %v2403_v1 = vpack.c.bf16 %v1183_v53, %v1181_v48  ;;  %v2404_v4 = vpack.c.bf16 %v1376_v56, %v1374_v50  ;;  %v1187_v5 = vadd.f32 %v1186_v63, %v2928_v55  ;;  %v1380_v6 = vadd.f32 %v1379_v0, %v2930_v59 }
 0x1d9   :  { %2065 = vst [vmem:[#allocation7 + $0x218] sm:$0xff] %v2403_v1  ;;  %2066 = vst [vmem:[#allocation7 + $0x220] sm:$0xff] %v2404_v4  ;;  %v2406_v7 = vpack.c.bf16 %v1187_v5, %v1185_v60  ;;  %v2407_v10 = vpack.c.bf16 %v1380_v6, %v1378_v62 }
 0x1db   :  { %2068 = vst [vmem:[#allocation7 + $0x230] sm:$0xff] %v2406_v7  ;;  %2069 = vst [vmem:[#allocation7 + $0x238] sm:$0xff] %v2407_v10  ;;  %v1190_v11 = vpop.f32.mrb[80].mxu1  ;;  %v1383_v12 = vpop.f32.mrb[80].mxu0 }
 0x1dc   :  { %v1191_v14 = vadd.f32 %v1190_v11, %v2924_v49  ;;  %v1384_v3 = vadd.f32 %v1383_v12, %v2926_v54  ;;  %v1192_v18 = vpop.f32.mrb[81].mxu1  ;;  %v1385_v19 = vpop.f32.mrb[81].mxu0 }
 0x1dd   :  { %v1193_v13 = vadd.f32 %v1192_v18, %v2928_v55  ;;  %v1386_v35 = vadd.f32 %v1385_v19, %v2930_v59  ;;  %v1194_v15 = vpop.f32.mrb[82].mxu1  ;;  %v1387_v8 = vpop.f32.mrb[82].mxu0 }
 0x1de   :  { %v1195_v37 = vadd.f32 %v1194_v15, %v2924_v49  ;;  %v1388_v42 = vadd.f32 %v1387_v8, %v2926_v54  ;;  %v1196_v43 = vpop.f32.mrb[83].mxu1  ;;  %v1389_v47 = vpop.f32.mrb[83].mxu0 }
 0x1df   :  { %v2409_v61 = vpack.c.bf16 %v1193_v13, %v1191_v14  ;;  %v2410_v2 = vpack.c.bf16 %v1386_v35, %v1384_v3  ;;  %v1197_v9 = vadd.f32 %v1196_v43, %v2928_v55  ;;  %v1390_v16 = vadd.f32 %v1389_v47, %v2930_v59 }
 0x1e1   :  { %2071 = vst [vmem:[#allocation7 + $0x248] sm:$0xff] %v2409_v61  ;;  %2072 = vst [vmem:[#allocation7 + $0x250] sm:$0xff] %v2410_v2  ;;  %v2412_v17 = vpack.c.bf16 %v1197_v9, %v1195_v37  ;;  %v2413_v20 = vpack.c.bf16 %v1390_v16, %v1388_v42 }
 0x1e3   :  { %2074 = vst [vmem:[#allocation7 + $0x260] sm:$0xff] %v2412_v17  ;;  %2075 = vst [vmem:[#allocation7 + $0x268] sm:$0xff] %v2413_v20  ;;  %v1200_v21 = vpop.f32.mrb[84].mxu1  ;;  %v1393_v22 = vpop.f32.mrb[84].mxu0 }
 0x1e4   :  { %v1201_v23 = vadd.f32 %v1200_v21, %v2924_v49  ;;  %v1394_v24 = vadd.f32 %v1393_v22, %v2926_v54  ;;  %v1202_v25 = vpop.f32.mrb[85].mxu1  ;;  %v1395_v26 = vpop.f32.mrb[85].mxu0 }
 0x1e5   :  { %v1203_v27 = vadd.f32 %v1202_v25, %v2928_v55  ;;  %v1396_v28 = vadd.f32 %v1395_v26, %v2930_v59  ;;  %v1204_v29 = vpop.f32.mrb[86].mxu1  ;;  %v1397_v30 = vpop.f32.mrb[86].mxu0 }
 0x1e6   :  { %v1205_v31 = vadd.f32 %v1204_v29, %v2924_v49  ;;  %v1398_v32 = vadd.f32 %v1397_v30, %v2926_v54  ;;  %v1206_v33 = vpop.f32.mrb[87].mxu1  ;;  %v1399_v34 = vpop.f32.mrb[87].mxu0 }
 0x1e7   :  { %v2415_v36 = vpack.c.bf16 %v1203_v27, %v1201_v23  ;;  %v2416_v38 = vpack.c.bf16 %v1396_v28, %v1394_v24  ;;  %v1207_v39 = vadd.f32 %v1206_v33, %v2928_v55  ;;  %v1400_v40 = vadd.f32 %v1399_v34, %v2930_v59 }
 0x1e9   :  { %2077 = vst [vmem:[#allocation7 + $0x278] sm:$0xff] %v2415_v36  ;;  %2078 = vst [vmem:[#allocation7 + $0x280] sm:$0xff] %v2416_v38  ;;  %v2418_v41 = vpack.c.bf16 %v1207_v39, %v1205_v31  ;;  %v2419_v44 = vpack.c.bf16 %v1400_v40, %v1398_v32 }
 0x1eb   :  { %2080 = vst [vmem:[#allocation7 + $0x290] sm:$0xff] %v2418_v41  ;;  %2081 = vst [vmem:[#allocation7 + $0x298] sm:$0xff] %v2419_v44  ;;  %v1210_v45 = vpop.f32.mrb[88].mxu1  ;;  %v1403_v46 = vpop.f32.mrb[88].mxu0 }
 0x1ec   :  { %v1211_v48 = vadd.f32 %v1210_v45, %v2924_v49  ;;  %v1404_v50 = vadd.f32 %v1403_v46, %v2926_v54  ;;  %v1212_v51 = vpop.f32.mrb[89].mxu1  ;;  %v1405_v52 = vpop.f32.mrb[89].mxu0 }
 0x1ed   :  { %v1213_v53 = vadd.f32 %v1212_v51, %v2928_v55  ;;  %v1406_v56 = vadd.f32 %v1405_v52, %v2930_v59  ;;  %v1214_v57 = vpop.f32.mrb[90].mxu1  ;;  %v1407_v58 = vpop.f32.mrb[90].mxu0 }
 0x1ee   :  { %v1215_v60 = vadd.f32 %v1214_v57, %v2924_v49  ;;  %v1408_v62 = vadd.f32 %v1407_v58, %v2926_v54  ;;  %v1216_v63 = vpop.f32.mrb[91].mxu1  ;;  %v1409_v0 = vpop.f32.mrb[91].mxu0 }
 0x1ef   :  { %v2421_v1 = vpack.c.bf16 %v1213_v53, %v1211_v48  ;;  %v2422_v4 = vpack.c.bf16 %v1406_v56, %v1404_v50  ;;  %v1217_v5 = vadd.f32 %v1216_v63, %v2928_v55  ;;  %v1410_v6 = vadd.f32 %v1409_v0, %v2930_v59 }
 0x1f1   :  { %2083 = vst [vmem:[#allocation7 + $0x2a8] sm:$0xff] %v2421_v1  ;;  %2084 = vst [vmem:[#allocation7 + $0x2b0] sm:$0xff] %v2422_v4  ;;  %v2424_v7 = vpack.c.bf16 %v1217_v5, %v1215_v60  ;;  %v2425_v10 = vpack.c.bf16 %v1410_v6, %v1408_v62 }
 0x1f3   :  { %2086 = vst [vmem:[#allocation7 + $0x2c0] sm:$0xff] %v2424_v7  ;;  %2087 = vst [vmem:[#allocation7 + $0x2c8] sm:$0xff] %v2425_v10  ;;  %v1220_v11 = vpop.f32.mrb[92].mxu1  ;;  %v1413_v12 = vpop.f32.mrb[92].mxu0 }
 0x1f4   :  { %v1221_v14 = vadd.f32 %v1220_v11, %v2924_v49  ;;  %v1414_v3 = vadd.f32 %v1413_v12, %v2926_v54  ;;  %v1222_v18 = vpop.f32.mrb[93].mxu1  ;;  %v1415_v19 = vpop.f32.mrb[93].mxu0 }
 0x1f5   :  { %v1223_v13 = vadd.f32 %v1222_v18, %v2928_v55  ;;  %v1416_v35 = vadd.f32 %v1415_v19, %v2930_v59  ;;  %v1224_v15 = vpop.f32.mrb[94].mxu1  ;;  %v1417_v8 = vpop.f32.mrb[94].mxu0 }
 0x1f6   :  { %v1225_v37 = vadd.f32 %v1224_v15, %v2924_v49  ;;  %v1418_v42 = vadd.f32 %v1417_v8, %v2926_v54  ;;  %v1226_v43 = vpop.f32.mrb[95].mxu1  ;;  %v1419_v47 = vpop.f32.mrb[95].mxu0 }
 0x1f7   :  { %v2427_v61 = vpack.c.bf16 %v1223_v13, %v1221_v14  ;;  %v2428_v2 = vpack.c.bf16 %v1416_v35, %v1414_v3  ;;  %v1227_v9 = vadd.f32 %v1226_v43, %v2928_v55  ;;  %v1420_v16 = vadd.f32 %v1419_v47, %v2930_v59 }
 0x1f9   :  { %2089 = vst [vmem:[#allocation7 + $0x2d8] sm:$0xff] %v2427_v61  ;;  %2090 = vst [vmem:[#allocation7 + $0x2e0] sm:$0xff] %v2428_v2  ;;  %v2430_v17 = vpack.c.bf16 %v1227_v9, %v1225_v37  ;;  %v2431_v20 = vpack.c.bf16 %v1420_v16, %v1418_v42 }
 0x1fb   :  { %2092 = vst [vmem:[#allocation7 + $0x2f0] sm:$0xff] %v2430_v17  ;;  %2093 = vst [vmem:[#allocation7 + $0x2f8] sm:$0xff] %v2431_v20 }
 0x1fc   :  { %2718 = shalt.err (!%p2715_p6)
}
 0x1fd   :  { %s2719_s17 = scalar_lea.hbm %s3164_s3, 12288 }
 0x1fe   :  { %p2720_p7 = scmp.ne.s32.totalorder %s3164_s3, %s2719_s17  ;;  %p2723_p8 = scmp.lt.u32.totalorder %s2719_s17, %s3164_s3 }
 0x200   :  { %p2725_p9 = pnand %p2723_p8, %p2720_p7 }
 0x202   :  { %2728 = shalt.err (!%p2725_p9)
}
 0x203   :  { %2105 = dma.vmem_to_hbm [thread:$0]  %s2100_s13, 12288, %s3164_s3, [#allocation4], %s2739_s0, %s2739_s0, %s2740_s9  }
 0x204   :  { %2733 = dma.done.wait [#allocation4], 12288  }
 0x205   :  { %2734 = vsyncadd [#allocation4], 4294955008 }
 0x206   :  { %2109 = vsyncpa [#allocation3], 1 }
 0x207   :  { %2110 = vsyncpa [#allocation6], 1 }
 0x208   :  { %2111 = vsyncpa [#allocation4], 1 }

</bundles_post_ra>
